<compile_context>
chip_gen: v5e
topology: v5e:2x2
jax: 0.10.0
libtpu: 0.0.40
codegen_flags: <defaults>
</compile_context>

<pallas_src>
import math

import jax
import jax.numpy as jnp
from jax import lax
from jax.experimental import pallas as pl
from jax.experimental.pallas import tpu as pltpu  # noqa: F401  (kept for TPU-specific tuning hooks)

# ---- model config (small shapes consistent with the module's forward) -----
NUM_POINTS = 64           # num_points
DIM_INPUT = 3             # dim_input
DIM_HIDDEN = 32           # dim_hidden
NUM_HEADS = 4             # num_heads
NUM_INDS = 8              # num_inds
EMBED_DIM = 4             # embedding_dim
NUM_EMBED = 64            # num_embeddings
BETA = 0.25
HEAD_DIM = DIM_HIDDEN // NUM_HEADS
DEC_H1, DEC_H2 = 128, 64  # fixed in the module's decoder
DEC_OUT = NUM_POINTS * DIM_INPUT      # 192
DEC_OUT_PAD = 256                     # lane-dense padded decoder output width
BATCH = 2

# ---- packed encoder slab layout (rows, width = DIM_HIDDEN = 32) -----------
R_I = 0          # inducing points I          (8, 32)
R_WK0 = 8        # mab0.fc_k  (3, 32)   [8-row block]
R_WV0 = 16       # mab0.fc_v  (3, 32)
R_WQ1 = 24       # mab1.fc_q  (3, 32)
R_WQ0 = 32       # mab0.fc_q  (32, 32)
R_WO0 = 64       # mab0.fc_o  (32, 32)
R_WK1 = 96       # mab1.fc_k  (32, 32)
R_WV1 = 128      # mab1.fc_v  (32, 32)
R_WO1 = 160      # mab1.fc_o  (32, 32)
R_WENC = 192     # fc_enc     (32, 4)  padded to (32, 32)
R_BQ0, R_BK0, R_BV0, R_BO0 = 224, 232, 240, 248
R_BQ1, R_BK1, R_BV1, R_BO1 = 256, 264, 272, 280
R_BENC = 288
ENC_SLAB_ROWS = 296

# ---- packed decoder slab layout (rows, width = DEC_OUT_PAD = 256) ---------
RD_W1 = 0        # ConvT1 weight  (4,128) padded to (32,256)
RD_B1 = 32       # ConvT1 bias
RD_W2 = 40       # ConvT2 weight  (128,64)
RD_B2 = 168      # ConvT2 bias
RD_W3 = 176      # ConvT3 weight  (64,192) padded to (64,256)
RD_B3 = 240      # ConvT3 bias
DEC_SLAB_ROWS = 248


# ---- matmul helpers (MXU, no explicit transposes) --------------------------
def _mm(a, b):  # a @ b
    return lax.dot_general(a, b, (((1,), (0,)), ((), ())),
                           preferred_element_type=jnp.float32)


def _mm_nt(a, b):  # a @ b.T
    return lax.dot_general(a, b, (((1,), (1,)), ((), ())),
                           preferred_element_type=jnp.float32)


# ---- the single fused kernel -----------------------------------------------
def isab_vqvae_kernel(x_ref, enc_ref, cb_ref, dec_ref,
                      recon_ref, z_ref, loss_ref):
    bsz = x_ref.shape[0]
    scale = 1.0 / math.sqrt(DIM_HIDDEN)

    # -- unpack encoder slab with static ref windows (no per-piece DMA) -----
    i_pts = enc_ref[R_I:R_I + NUM_INDS, :]
    wk0 = enc_ref[R_WK0:R_WK0 + DIM_INPUT, :]
    wv0 = enc_ref[R_WV0:R_WV0 + DIM_INPUT, :]
    wq1 = enc_ref[R_WQ1:R_WQ1 + DIM_INPUT, :]
    wq0 = enc_ref[R_WQ0:R_WQ0 + DIM_HIDDEN, :]
    wo0 = enc_ref[R_WO0:R_WO0 + DIM_HIDDEN, :]
    wk1 = enc_ref[R_WK1:R_WK1 + DIM_HIDDEN, :]
    wv1 = enc_ref[R_WV1:R_WV1 + DIM_HIDDEN, :]
    wo1 = enc_ref[R_WO1:R_WO1 + DIM_HIDDEN, :]
    wenc = enc_ref[R_WENC:R_WENC + DIM_HIDDEN, :]        # cols >= EMBED_DIM are zero
    bq0 = enc_ref[R_BQ0:R_BQ0 + 1, :]
    bk0 = enc_ref[R_BK0:R_BK0 + 1, :]
    bv0 = enc_ref[R_BV0:R_BV0 + 1, :]
    bo0 = enc_ref[R_BO0:R_BO0 + 1, :]
    bq1 = enc_ref[R_BQ1:R_BQ1 + 1, :]
    bk1 = enc_ref[R_BK1:R_BK1 + 1, :]
    bv1 = enc_ref[R_BV1:R_BV1 + 1, :]
    bo1 = enc_ref[R_BO1:R_BO1 + 1, :]
    benc = enc_ref[R_BENC:R_BENC + 1, :]

    # -- per-head lane masks (hoisted constants; avoid lane slicing/concat) --
    lane = lax.broadcasted_iota(jnp.int32, (1, DIM_HIDDEN), 1)
    head_masks = [
        ((lane >= h * HEAD_DIM) & (lane < (h + 1) * HEAD_DIM)).astype(jnp.float32)
        for h in range(NUM_HEADS)
    ]

    def mha(q, k, v):
        # Multi-head attention without lane slices / lane concatenation:
        # masking q (and v) to one head's lanes keeps the full-width MXU
        # contraction correct because off-head lanes contribute zero, and the
        # per-head outputs land directly in their own lanes (sum == concat).
        av = jnp.zeros_like(q)
        for m in head_masks:
            logits = _mm_nt(q * m, k) * scale                       # (Lq, Lk)
            mx = jnp.max(logits, axis=-1, keepdims=True)
            p = jnp.exp(logits - mx)
            attn = p * pl.reciprocal(jnp.sum(p, axis=-1, keepdims=True),
                                     approx=True)
            av = av + _mm(attn, v * m)                              # (Lq, D)
        return q + av

    def mab(q_in, k_in, wq, bq, wk, bk, wv, bv, wo, bo):
        q = _mm(q_in, wq) + bq
        k = _mm(k_in, wk) + bk
        v = _mm(k_in, wv) + bv
        o = mha(q, k, v)
        return o + jnp.maximum(_mm(o, wo) + bo, 0.0)                # ReLU branch

    # -- ISAB encoder + mean pool + fc_enc, whole batch unrolled -------------
    z_rows = []
    for b in range(bsz):
        xb = x_ref[b]                                               # (N, Ci)
        h_ind = mab(i_pts, xb, wq0, bq0, wk0, bk0, wv0, bv0, wo0, bo0)  # (M, D)
        y = mab(xb, h_ind, wq1, bq1, wk1, bk1, wv1, bv1, wo1, bo1)      # (N, D)
        pooled = jnp.mean(y, axis=0, keepdims=True)                 # (1, D)
        z_rows.append(_mm(pooled, wenc) + benc)                     # (1, D), cols>=E zero
    z = jnp.concatenate(z_rows, axis=0)                             # (B, D)
    z_ref[...] = z

    # -- vector quantizer (distances + first-match argmin + gather + loss) ---
    cb = cb_ref[...]                                                # (K, D), cols>=E zero
    z_sq = jnp.sum(z * z, axis=1, keepdims=True)                    # (B, 1)
    ones_row = jnp.ones((1, DIM_HIDDEN), jnp.float32)
    cb_sq = _mm_nt(ones_row, cb * cb)                               # (1, K) via MXU (no transpose)
    dist = z_sq + cb_sq - 2.0 * _mm_nt(z, cb)                       # (B, K)
    col = lax.broadcasted_iota(jnp.int32, dist.shape, 1)
    min_d = jnp.min(dist, axis=1, keepdims=True)
    idx = jnp.min(jnp.where(dist == min_d, col, NUM_EMBED), axis=1, keepdims=True)
    one_hot = (col == idx).astype(jnp.float32)                      # (B, K)
    z_q = _mm(one_hot, cb)                                          # (B, D) straight-through fwd value
    diff = z_q - z
    # mse(z_q.detach(), z) + beta*mse(z_q, z.detach()) == (1+beta)*mse in fwd;
    # divide by the number of *valid* elements (B * EMBED_DIM).
    loss_ref[...] = ((1.0 + BETA) / float(bsz * EMBED_DIM)) * \
        jnp.sum(diff * diff, keepdims=True)                         # (1, 1) VMEM

    # -- decoder: 3x ConvTranspose1d(k=1) == per-position MLP ----------------
    wd1 = dec_ref[RD_W1:RD_W1 + DIM_HIDDEN, 0:DEC_H1]               # (32, 128)
    bd1 = dec_ref[RD_B1:RD_B1 + 1, 0:DEC_H1]
    wd2 = dec_ref[RD_W2:RD_W2 + DEC_H1, 0:DEC_H2]                   # (128, 64)
    bd2 = dec_ref[RD_B2:RD_B2 + 1, 0:DEC_H2]
    wd3 = dec_ref[RD_W3:RD_W3 + DEC_H2, :]                          # (64, 256), cols>=192 zero
    bd3 = dec_ref[RD_B3:RD_B3 + 1, :]
    h = _mm(z_q, wd1) + bd1
    h = jnp.where(h > 0, h, 0.001 * h)                              # LeakyReLU(0.001)
    h = _mm(h, wd2) + bd2
    h = jnp.where(h > 0, h, 0.001 * h)
    recon_ref[...] = _mm(h, wd3) + bd3                              # (B, 256) lane-dense store


# ---- parameter init + slab packing (deterministic, zero biases) ------------
def init_params(key):
    ks = jax.random.split(key, 16)

    def kaiming(k, fan_in, fan_out):
        return math.sqrt(2.0 / fan_in) * jax.random.normal(
            k, (fan_in, fan_out), jnp.float32)

    zrow = lambda n: jnp.zeros((1, n), jnp.float32)

    i_pts = 0.1 * jax.random.normal(ks[0], (NUM_INDS, DIM_HIDDEN), jnp.float32)
    # MAB0: Q = inducing points (D), K/V = input set (Ci)
    wq0 = kaiming(ks[1], DIM_HIDDEN, DIM_HIDDEN); bq0 = zrow(DIM_HIDDEN)
    wk0 = kaiming(ks[2], DIM_INPUT, DIM_HIDDEN);  bk0 = zrow(DIM_HIDDEN)
    wv0 = kaiming(ks[3], DIM_INPUT, DIM_HIDDEN);  bv0 = zrow(DIM_HIDDEN)
    wo0 = kaiming(ks[4], DIM_HIDDEN, DIM_HIDDEN); bo0 = zrow(DIM_HIDDEN)
    # MAB1: Q = input set (Ci), K/V = H (D)
    wq1 = kaiming(ks[5], DIM_INPUT, DIM_HIDDEN);  bq1 = zrow(DIM_HIDDEN)
    wk1 = kaiming(ks[6], DIM_HIDDEN, DIM_HIDDEN); bk1 = zrow(DIM_HIDDEN)
    wv1 = kaiming(ks[7], DIM_HIDDEN, DIM_HIDDEN); bv1 = zrow(DIM_HIDDEN)
    wo1 = kaiming(ks[8], DIM_HIDDEN, DIM_HIDDEN); bo1 = zrow(DIM_HIDDEN)
    # fc_enc
    wenc = kaiming(ks[9], DIM_HIDDEN, EMBED_DIM); benc = zrow(EMBED_DIM)
    # VQ codebook ~ U(-1/K, 1/K)
    codebook = jax.random.uniform(ks[10], (NUM_EMBED, EMBED_DIM), jnp.float32,
                                  minval=-1.0 / NUM_EMBED, maxval=1.0 / NUM_EMBED)
    # decoder (ConvTranspose1d k=1 weights stored as (in, out))
    wd1 = kaiming(ks[11], EMBED_DIM, DEC_H1); bd1 = zrow(DEC_H1)
    wd2 = kaiming(ks[12], DEC_H1, DEC_H2);    bd2 = zrow(DEC_H2)
    wd3 = kaiming(ks[13], DEC_H2, DEC_OUT);   bd3 = zrow(DEC_OUT)

    def pad_to(a, rows, cols):
        return jnp.pad(a, ((0, rows - a.shape[0]), (0, cols - a.shape[1])))

    enc_slab = jnp.concatenate([
        i_pts,                                                      # 0:8
        pad_to(wk0, 8, DIM_HIDDEN),                                 # 8:16
        pad_to(wv0, 8, DIM_HIDDEN),                                 # 16:24
        pad_to(wq1, 8, DIM_HIDDEN),                                 # 24:32
        wq0, wo0, wk1, wv1, wo1,                                    # 32:192
        pad_to(wenc, DIM_HIDDEN, DIM_HIDDEN),                       # 192:224
        pad_to(bq0, 8, DIM_HIDDEN), pad_to(bk0, 8, DIM_HIDDEN),
        pad_to(bv0, 8, DIM_HIDDEN), pad_to(bo0, 8, DIM_HIDDEN),
        pad_to(bq1, 8, DIM_HIDDEN), pad_to(bk1, 8, DIM_HIDDEN),
        pad_to(bv1, 8, DIM_HIDDEN), pad_to(bo1, 8, DIM_HIDDEN),
        pad_to(benc, 8, DIM_HIDDEN),                                # 288:296
    ], axis=0)
    assert enc_slab.shape == (ENC_SLAB_ROWS, DIM_HIDDEN)

    cb_pad = pad_to(codebook, NUM_EMBED, DIM_HIDDEN)                # (K, 32)

    dec_slab = jnp.concatenate([
        pad_to(wd1, DIM_HIDDEN, DEC_OUT_PAD),                       # 0:32
        pad_to(bd1, 8, DEC_OUT_PAD),                                # 32:40
        pad_to(wd2, DEC_H1, DEC_OUT_PAD),                           # 40:168
        pad_to(bd2, 8, DEC_OUT_PAD),                                # 168:176
        pad_to(wd3, DEC_H2, DEC_OUT_PAD),                           # 176:240
        pad_to(bd3, 8, DEC_OUT_PAD),                                # 240:248
    ], axis=0)
    assert dec_slab.shape == (DEC_SLAB_ROWS, DEC_OUT_PAD)

    return {"enc_slab": enc_slab, "cb_pad": cb_pad, "dec_slab": dec_slab}


# ---- wrapper: full forward (single fused pallas_call) ----------------------
def isab_vqvae_forward(x, params):
    # x: (B, dim_input, num_points) -- PyTorch NCW convention
    bsz = x.shape[0]
    x_bnc = jnp.transpose(x, (0, 2, 1)).astype(jnp.float32)         # (B, N, Ci)

    recon_pad, z_pad, loss = pl.pallas_call(
        isab_vqvae_kernel,
        out_shape=(
            jax.ShapeDtypeStruct((bsz, DEC_OUT_PAD), jnp.float32),  # padded reconstruction
            jax.ShapeDtypeStruct((bsz, DIM_HIDDEN), jnp.float32),   # z (first EMBED_DIM cols valid)
            jax.ShapeDtypeStruct((1, 1), jnp.float32),              # quantization loss
        ),
    )(x_bnc, params["enc_slab"], params["cb_pad"], params["dec_slab"])

    x_recon = recon_pad[:, :DEC_OUT].reshape(-1, NUM_POINTS, DIM_INPUT)
    z = z_pad[:, :EMBED_DIM]
    quantization_loss = loss[0, 0]
    # forward returns (x_recon, quantization_loss, z, embedding_dim)
    return x_recon, quantization_loss, z, EMBED_DIM


if __name__ == "__main__":
    key = jax.random.PRNGKey(0)
    pkey, xkey = jax.random.split(key)
    params = init_params(pkey)
    x = jax.random.normal(xkey, (BATCH, DIM_INPUT, NUM_POINTS), jnp.float32)

    x_recon, q_loss, z, edim = isab_vqvae_forward(x, params)
    jax.block_until_ready((x_recon, q_loss, z))

    assert x_recon.shape == (BATCH, NUM_POINTS, DIM_INPUT)
    assert z.shape == (BATCH, EMBED_DIM)
    assert q_loss.shape == ()
    assert edim == EMBED_DIM
    assert bool(jnp.all(jnp.isfinite(x_recon)))
    assert bool(jnp.isfinite(q_loss))
    print("KERNEL_OK")
</pallas_src>

<mosaic_0001>
module attributes {stable_mosaic.version = 11 : i64} {
  func.func @isab_vqvae_kernel(%arg0: memref<2x64x3xf32, #tpu.memory_space<vmem>>, %arg1: memref<296x32xf32, #tpu.memory_space<vmem>>, %arg2: memref<64x32xf32, #tpu.memory_space<vmem>>, %arg3: memref<248x256xf32, #tpu.memory_space<vmem>>, %arg4: memref<2x256xf32, #tpu.memory_space<vmem>>, %arg5: memref<2x32xf32, #tpu.memory_space<vmem>>, %arg6: memref<1x1xf32, #tpu.memory_space<vmem>>) attributes {dimension_semantics = [], scalar_prefetch = 0 : i64, scratch_operands = 0 : i64, tpu.core_type = #tpu.core_type<tc>} {
    %c0 = arith.constant 0 : index
    %c0_0 = arith.constant 0 : index
    %0 = vector.load %arg1[%c0, %c0_0] : memref<296x32xf32, #tpu.memory_space<vmem>>, vector<8x32xf32>
    %c8 = arith.constant 8 : index
    %c0_1 = arith.constant 0 : index
    %1 = vector.load %arg1[%c8, %c0_1] : memref<296x32xf32, #tpu.memory_space<vmem>>, vector<3x32xf32>
    %c16 = arith.constant 16 : index
    %c0_2 = arith.constant 0 : index
    %2 = vector.load %arg1[%c16, %c0_2] : memref<296x32xf32, #tpu.memory_space<vmem>>, vector<3x32xf32>
    %c24 = arith.constant 24 : index
    %c0_3 = arith.constant 0 : index
    %3 = vector.load %arg1[%c24, %c0_3] : memref<296x32xf32, #tpu.memory_space<vmem>>, vector<3x32xf32>
    %c32 = arith.constant 32 : index
    %c0_4 = arith.constant 0 : index
    %4 = vector.load %arg1[%c32, %c0_4] : memref<296x32xf32, #tpu.memory_space<vmem>>, vector<32x32xf32>
    %c64 = arith.constant 64 : index
    %c0_5 = arith.constant 0 : index
    %5 = vector.load %arg1[%c64, %c0_5] : memref<296x32xf32, #tpu.memory_space<vmem>>, vector<32x32xf32>
    %c96 = arith.constant 96 : index
    %c0_6 = arith.constant 0 : index
    %6 = vector.load %arg1[%c96, %c0_6] : memref<296x32xf32, #tpu.memory_space<vmem>>, vector<32x32xf32>
    %c128 = arith.constant 128 : index
    %c0_7 = arith.constant 0 : index
    %7 = vector.load %arg1[%c128, %c0_7] : memref<296x32xf32, #tpu.memory_space<vmem>>, vector<32x32xf32>
    %c160 = arith.constant 160 : index
    %c0_8 = arith.constant 0 : index
    %8 = vector.load %arg1[%c160, %c0_8] : memref<296x32xf32, #tpu.memory_space<vmem>>, vector<32x32xf32>
    %c192 = arith.constant 192 : index
    %c0_9 = arith.constant 0 : index
    %9 = vector.load %arg1[%c192, %c0_9] : memref<296x32xf32, #tpu.memory_space<vmem>>, vector<32x32xf32>
    %c224 = arith.constant 224 : index
    %c0_10 = arith.constant 0 : index
    %10 = vector.load %arg1[%c224, %c0_10] : memref<296x32xf32, #tpu.memory_space<vmem>>, vector<1x32xf32>
    %c232 = arith.constant 232 : index
    %c0_11 = arith.constant 0 : index
    %11 = vector.load %arg1[%c232, %c0_11] : memref<296x32xf32, #tpu.memory_space<vmem>>, vector<1x32xf32>
    %c240 = arith.constant 240 : index
    %c0_12 = arith.constant 0 : index
    %12 = vector.load %arg1[%c240, %c0_12] : memref<296x32xf32, #tpu.memory_space<vmem>>, vector<1x32xf32>
    %c248 = arith.constant 248 : index
    %c0_13 = arith.constant 0 : index
    %13 = vector.load %arg1[%c248, %c0_13] : memref<296x32xf32, #tpu.memory_space<vmem>>, vector<1x32xf32>
    %c256 = arith.constant 256 : index
    %c0_14 = arith.constant 0 : index
    %14 = vector.load %arg1[%c256, %c0_14] : memref<296x32xf32, #tpu.memory_space<vmem>>, vector<1x32xf32>
    %c264 = arith.constant 264 : index
    %c0_15 = arith.constant 0 : index
    %15 = vector.load %arg1[%c264, %c0_15] : memref<296x32xf32, #tpu.memory_space<vmem>>, vector<1x32xf32>
    %c272 = arith.constant 272 : index
    %c0_16 = arith.constant 0 : index
    %16 = vector.load %arg1[%c272, %c0_16] : memref<296x32xf32, #tpu.memory_space<vmem>>, vector<1x32xf32>
    %c280 = arith.constant 280 : index
    %c0_17 = arith.constant 0 : index
    %17 = vector.load %arg1[%c280, %c0_17] : memref<296x32xf32, #tpu.memory_space<vmem>>, vector<1x32xf32>
    %c288 = arith.constant 288 : index
    %c0_18 = arith.constant 0 : index
    %18 = vector.load %arg1[%c288, %c0_18] : memref<296x32xf32, #tpu.memory_space<vmem>>, vector<1x32xf32>
    %19 = tpu.iota {dimensions = array<i32: 1>} : vector<1x32xi32>
    %c0_i32 = arith.constant 0 : i32
    %20 = vector.broadcast %c0_i32 : i32 to vector<1x32xi32>
    %21 = arith.cmpi sge, %19, %20 : vector<1x32xi32>
    %c8_i32 = arith.constant 8 : i32
    %22 = vector.broadcast %c8_i32 : i32 to vector<1x32xi32>
    %23 = arith.cmpi slt, %19, %22 : vector<1x32xi32>
    %24 = arith.andi %21, %23 : vector<1x32xi1>
    %25 = arith.extui %24 : vector<1x32xi1> to vector<1x32xi32>
    %26 = arith.sitofp %25 : vector<1x32xi32> to vector<1x32xf32>
    %c8_i32_19 = arith.constant 8 : i32
    %27 = vector.broadcast %c8_i32_19 : i32 to vector<1x32xi32>
    %28 = arith.cmpi sge, %19, %27 : vector<1x32xi32>
    %c16_i32 = arith.constant 16 : i32
    %29 = vector.broadcast %c16_i32 : i32 to vector<1x32xi32>
    %30 = arith.cmpi slt, %19, %29 : vector<1x32xi32>
    %31 = arith.andi %28, %30 : vector<1x32xi1>
    %32 = arith.extui %31 : vector<1x32xi1> to vector<1x32xi32>
    %33 = arith.sitofp %32 : vector<1x32xi32> to vector<1x32xf32>
    %c16_i32_20 = arith.constant 16 : i32
    %34 = vector.broadcast %c16_i32_20 : i32 to vector<1x32xi32>
    %35 = arith.cmpi sge, %19, %34 : vector<1x32xi32>
    %c24_i32 = arith.constant 24 : i32
    %36 = vector.broadcast %c24_i32 : i32 to vector<1x32xi32>
    %37 = arith.cmpi slt, %19, %36 : vector<1x32xi32>
    %38 = arith.andi %35, %37 : vector<1x32xi1>
    %39 = arith.extui %38 : vector<1x32xi1> to vector<1x32xi32>
    %40 = arith.sitofp %39 : vector<1x32xi32> to vector<1x32xf32>
    %c24_i32_21 = arith.constant 24 : i32
    %41 = vector.broadcast %c24_i32_21 : i32 to vector<1x32xi32>
    %42 = arith.cmpi sge, %19, %41 : vector<1x32xi32>
    %c32_i32 = arith.constant 32 : i32
    %43 = vector.broadcast %c32_i32 : i32 to vector<1x32xi32>
    %44 = arith.cmpi slt, %19, %43 : vector<1x32xi32>
    %45 = arith.andi %42, %44 : vector<1x32xi1>
    %46 = arith.extui %45 : vector<1x32xi1> to vector<1x32xi32>
    %47 = arith.sitofp %46 : vector<1x32xi32> to vector<1x32xf32>
    %c0_22 = arith.constant 0 : index
    %c0_23 = arith.constant 0 : index
    %c0_24 = arith.constant 0 : index
    %48 = vector.load %arg0[%c0_22, %c0_23, %c0_24] : memref<2x64x3xf32, #tpu.memory_space<vmem>>, vector<1x64x3xf32>
    %49 = vector.shape_cast %48 : vector<1x64x3xf32> to vector<64x3xf32>
    %cst = arith.constant dense<0.000000e+00> : vector<8x32xf32>
    %50 = tpu.matmul %0, %4, %cst {dimension_numbers = #tpu.dot_dimension_numbers<[1], [0], [0], [1], [0, 0, 1, 1], [], []>} : vector<8x32xf32>, vector<32x32xf32>, vector<8x32xf32> -> vector<8x32xf32>
    %51 = vector.broadcast %10 : vector<1x32xf32> to vector<8x32xf32>
    %52 = arith.addf %50, %51 : vector<8x32xf32>
    %cst_25 = arith.constant dense<0.000000e+00> : vector<64x32xf32>
    %53 = tpu.matmul %49, %1, %cst_25 {dimension_numbers = #tpu.dot_dimension_numbers<[1], [0], [0], [1], [0, 0, 1, 1], [], []>} : vector<64x3xf32>, vector<3x32xf32>, vector<64x32xf32> -> vector<64x32xf32>
    %54 = vector.broadcast %11 : vector<1x32xf32> to vector<64x32xf32>
    %55 = arith.addf %53, %54 : vector<64x32xf32>
    %cst_26 = arith.constant dense<0.000000e+00> : vector<64x32xf32>
    %56 = tpu.matmul %49, %2, %cst_26 {dimension_numbers = #tpu.dot_dimension_numbers<[1], [0], [0], [1], [0, 0, 1, 1], [], []>} : vector<64x3xf32>, vector<3x32xf32>, vector<64x32xf32> -> vector<64x32xf32>
    %57 = vector.broadcast %12 : vector<1x32xf32> to vector<64x32xf32>
    %58 = arith.addf %56, %57 : vector<64x32xf32>
    %cst_27 = arith.constant 0.000000e+00 : f32
    %59 = vector.broadcast %cst_27 : f32 to vector<8x32xf32>
    %60 = vector.broadcast %26 : vector<1x32xf32> to vector<8x32xf32>
    %61 = arith.mulf %52, %60 : vector<8x32xf32>
    %cst_28 = arith.constant dense<0.000000e+00> : vector<8x64xf32>
    %62 = tpu.matmul %61, %55, %cst_28 {dimension_numbers = #tpu.dot_dimension_numbers<[1], [1], [0], [0], [0, 0, 1, 0], [], []>} : vector<8x32xf32>, vector<64x32xf32>, vector<8x64xf32> -> vector<8x64xf32>
    %cst_29 = arith.constant 0.176776692 : f32
    %63 = vector.broadcast %cst_29 : f32 to vector<8x64xf32>
    %64 = arith.mulf %62, %63 : vector<8x64xf32>
    %cst_30 = arith.constant dense<0xFF800000> : vector<8xf32>
    %65 = vector.multi_reduction <maximumf>, %64, %cst_30 [1] : vector<8x64xf32> to vector<8xf32>
    %66 = vector.shape_cast %65 : vector<8xf32> to vector<8x1xf32>
    %67 = vector.broadcast %66 : vector<8x1xf32> to vector<8x64xf32>
    %68 = arith.subf %64, %67 : vector<8x64xf32>
    %69 = math.exp %68 : vector<8x64xf32>
    %cst_31 = arith.constant dense<0.000000e+00> : vector<8xf32>
    %70 = vector.multi_reduction <add>, %69, %cst_31 [1] : vector<8x64xf32> to vector<8xf32>
    %71 = vector.shape_cast %70 : vector<8xf32> to vector<8x1xf32>
    %72 = tpu.reciprocal %71 {approx = true} : vector<8x1xf32> -> vector<8x1xf32>
    %73 = vector.broadcast %72 : vector<8x1xf32> to vector<8x64xf32>
    %74 = arith.mulf %69, %73 : vector<8x64xf32>
    %75 = vector.broadcast %26 : vector<1x32xf32> to vector<64x32xf32>
    %76 = arith.mulf %58, %75 : vector<64x32xf32>
    %cst_32 = arith.constant dense<0.000000e+00> : vector<8x32xf32>
    %77 = tpu.matmul %74, %76, %cst_32 {dimension_numbers = #tpu.dot_dimension_numbers<[1], [0], [0], [1], [0, 0, 1, 1], [], []>} : vector<8x64xf32>, vector<64x32xf32>, vector<8x32xf32> -> vector<8x32xf32>
    %78 = arith.addf %59, %77 : vector<8x32xf32>
    %79 = vector.broadcast %33 : vector<1x32xf32> to vector<8x32xf32>
    %80 = arith.mulf %52, %79 : vector<8x32xf32>
    %cst_33 = arith.constant dense<0.000000e+00> : vector<8x64xf32>
    %81 = tpu.matmul %80, %55, %cst_33 {dimension_numbers = #tpu.dot_dimension_numbers<[1], [1], [0], [0], [0, 0, 1, 0], [], []>} : vector<8x32xf32>, vector<64x32xf32>, vector<8x64xf32> -> vector<8x64xf32>
    %cst_34 = arith.constant 0.176776692 : f32
    %82 = vector.broadcast %cst_34 : f32 to vector<8x64xf32>
    %83 = arith.mulf %81, %82 : vector<8x64xf32>
    %cst_35 = arith.constant dense<0xFF800000> : vector<8xf32>
    %84 = vector.multi_reduction <maximumf>, %83, %cst_35 [1] : vector<8x64xf32> to vector<8xf32>
    %85 = vector.shape_cast %84 : vector<8xf32> to vector<8x1xf32>
    %86 = vector.broadcast %85 : vector<8x1xf32> to vector<8x64xf32>
    %87 = arith.subf %83, %86 : vector<8x64xf32>
    %88 = math.exp %87 : vector<8x64xf32>
    %cst_36 = arith.constant dense<0.000000e+00> : vector<8xf32>
    %89 = vector.multi_reduction <add>, %88, %cst_36 [1] : vector<8x64xf32> to vector<8xf32>
    %90 = vector.shape_cast %89 : vector<8xf32> to vector<8x1xf32>
    %91 = tpu.reciprocal %90 {approx = true} : vector<8x1xf32> -> vector<8x1xf32>
    %92 = vector.broadcast %91 : vector<8x1xf32> to vector<8x64xf32>
    %93 = arith.mulf %88, %92 : vector<8x64xf32>
    %94 = vector.broadcast %33 : vector<1x32xf32> to vector<64x32xf32>
    %95 = arith.mulf %58, %94 : vector<64x32xf32>
    %cst_37 = arith.constant dense<0.000000e+00> : vector<8x32xf32>
    %96 = tpu.matmul %93, %95, %cst_37 {dimension_numbers = #tpu.dot_dimension_numbers<[1], [0], [0], [1], [0, 0, 1, 1], [], []>} : vector<8x64xf32>, vector<64x32xf32>, vector<8x32xf32> -> vector<8x32xf32>
    %97 = arith.addf %78, %96 : vector<8x32xf32>
    %98 = vector.broadcast %40 : vector<1x32xf32> to vector<8x32xf32>
    %99 = arith.mulf %52, %98 : vector<8x32xf32>
    %cst_38 = arith.constant dense<0.000000e+00> : vector<8x64xf32>
    %100 = tpu.matmul %99, %55, %cst_38 {dimension_numbers = #tpu.dot_dimension_numbers<[1], [1], [0], [0], [0, 0, 1, 0], [], []>} : vector<8x32xf32>, vector<64x32xf32>, vector<8x64xf32> -> vector<8x64xf32>
    %cst_39 = arith.constant 0.176776692 : f32
    %101 = vector.broadcast %cst_39 : f32 to vector<8x64xf32>
    %102 = arith.mulf %100, %101 : vector<8x64xf32>
    %cst_40 = arith.constant dense<0xFF800000> : vector<8xf32>
    %103 = vector.multi_reduction <maximumf>, %102, %cst_40 [1] : vector<8x64xf32> to vector<8xf32>
    %104 = vector.shape_cast %103 : vector<8xf32> to vector<8x1xf32>
    %105 = vector.broadcast %104 : vector<8x1xf32> to vector<8x64xf32>
    %106 = arith.subf %102, %105 : vector<8x64xf32>
    %107 = math.exp %106 : vector<8x64xf32>
    %cst_41 = arith.constant dense<0.000000e+00> : vector<8xf32>
    %108 = vector.multi_reduction <add>, %107, %cst_41 [1] : vector<8x64xf32> to vector<8xf32>
    %109 = vector.shape_cast %108 : vector<8xf32> to vector<8x1xf32>
    %110 = tpu.reciprocal %109 {approx = true} : vector<8x1xf32> -> vector<8x1xf32>
    %111 = vector.broadcast %110 : vector<8x1xf32> to vector<8x64xf32>
    %112 = arith.mulf %107, %111 : vector<8x64xf32>
    %113 = vector.broadcast %40 : vector<1x32xf32> to vector<64x32xf32>
    %114 = arith.mulf %58, %113 : vector<64x32xf32>
    %cst_42 = arith.constant dense<0.000000e+00> : vector<8x32xf32>
    %115 = tpu.matmul %112, %114, %cst_42 {dimension_numbers = #tpu.dot_dimension_numbers<[1], [0], [0], [1], [0, 0, 1, 1], [], []>} : vector<8x64xf32>, vector<64x32xf32>, vector<8x32xf32> -> vector<8x32xf32>
    %116 = arith.addf %97, %115 : vector<8x32xf32>
    %117 = vector.broadcast %47 : vector<1x32xf32> to vector<8x32xf32>
    %118 = arith.mulf %52, %117 : vector<8x32xf32>
    %cst_43 = arith.constant dense<0.000000e+00> : vector<8x64xf32>
    %119 = tpu.matmul %118, %55, %cst_43 {dimension_numbers = #tpu.dot_dimension_numbers<[1], [1], [0], [0], [0, 0, 1, 0], [], []>} : vector<8x32xf32>, vector<64x32xf32>, vector<8x64xf32> -> vector<8x64xf32>
    %cst_44 = arith.constant 0.176776692 : f32
    %120 = vector.broadcast %cst_44 : f32 to vector<8x64xf32>
    %121 = arith.mulf %119, %120 : vector<8x64xf32>
    %cst_45 = arith.constant dense<0xFF800000> : vector<8xf32>
    %122 = vector.multi_reduction <maximumf>, %121, %cst_45 [1] : vector<8x64xf32> to vector<8xf32>
    %123 = vector.shape_cast %122 : vector<8xf32> to vector<8x1xf32>
    %124 = vector.broadcast %123 : vector<8x1xf32> to vector<8x64xf32>
    %125 = arith.subf %121, %124 : vector<8x64xf32>
    %126 = math.exp %125 : vector<8x64xf32>
    %cst_46 = arith.constant dense<0.000000e+00> : vector<8xf32>
    %127 = vector.multi_reduction <add>, %126, %cst_46 [1] : vector<8x64xf32> to vector<8xf32>
    %128 = vector.shape_cast %127 : vector<8xf32> to vector<8x1xf32>
    %129 = tpu.reciprocal %128 {approx = true} : vector<8x1xf32> -> vector<8x1xf32>
    %130 = vector.broadcast %129 : vector<8x1xf32> to vector<8x64xf32>
    %131 = arith.mulf %126, %130 : vector<8x64xf32>
    %132 = vector.broadcast %47 : vector<1x32xf32> to vector<64x32xf32>
    %133 = arith.mulf %58, %132 : vector<64x32xf32>
    %cst_47 = arith.constant dense<0.000000e+00> : vector<8x32xf32>
    %134 = tpu.matmul %131, %133, %cst_47 {dimension_numbers = #tpu.dot_dimension_numbers<[1], [0], [0], [1], [0, 0, 1, 1], [], []>} : vector<8x64xf32>, vector<64x32xf32>, vector<8x32xf32> -> vector<8x32xf32>
    %135 = arith.addf %116, %134 : vector<8x32xf32>
    %136 = arith.addf %52, %135 : vector<8x32xf32>
    %cst_48 = arith.constant dense<0.000000e+00> : vector<8x32xf32>
    %137 = tpu.matmul %136, %5, %cst_48 {dimension_numbers = #tpu.dot_dimension_numbers<[1], [0], [0], [1], [0, 0, 1, 1], [], []>} : vector<8x32xf32>, vector<32x32xf32>, vector<8x32xf32> -> vector<8x32xf32>
    %138 = vector.broadcast %13 : vector<1x32xf32> to vector<8x32xf32>
    %139 = arith.addf %137, %138 : vector<8x32xf32>
    %cst_49 = arith.constant 0.000000e+00 : f32
    %140 = vector.broadcast %cst_49 : f32 to vector<8x32xf32>
    %141 = arith.maximumf %139, %140 : vector<8x32xf32>
    %142 = arith.addf %136, %141 : vector<8x32xf32>
    %cst_50 = arith.constant dense<0.000000e+00> : vector<64x32xf32>
    %143 = tpu.matmul %49, %3, %cst_50 {dimension_numbers = #tpu.dot_dimension_numbers<[1], [0], [0], [1], [0, 0, 1, 1], [], []>} : vector<64x3xf32>, vector<3x32xf32>, vector<64x32xf32> -> vector<64x32xf32>
    %144 = vector.broadcast %14 : vector<1x32xf32> to vector<64x32xf32>
    %145 = arith.addf %143, %144 : vector<64x32xf32>
    %cst_51 = arith.constant dense<0.000000e+00> : vector<8x32xf32>
    %146 = tpu.matmul %142, %6, %cst_51 {dimension_numbers = #tpu.dot_dimension_numbers<[1], [0], [0], [1], [0, 0, 1, 1], [], []>} : vector<8x32xf32>, vector<32x32xf32>, vector<8x32xf32> -> vector<8x32xf32>
    %147 = vector.broadcast %15 : vector<1x32xf32> to vector<8x32xf32>
    %148 = arith.addf %146, %147 : vector<8x32xf32>
    %cst_52 = arith.constant dense<0.000000e+00> : vector<8x32xf32>
    %149 = tpu.matmul %142, %7, %cst_52 {dimension_numbers = #tpu.dot_dimension_numbers<[1], [0], [0], [1], [0, 0, 1, 1], [], []>} : vector<8x32xf32>, vector<32x32xf32>, vector<8x32xf32> -> vector<8x32xf32>
    %150 = vector.broadcast %16 : vector<1x32xf32> to vector<8x32xf32>
    %151 = arith.addf %149, %150 : vector<8x32xf32>
    %cst_53 = arith.constant 0.000000e+00 : f32
    %152 = vector.broadcast %cst_53 : f32 to vector<64x32xf32>
    %153 = vector.broadcast %26 : vector<1x32xf32> to vector<64x32xf32>
    %154 = arith.mulf %145, %153 : vector<64x32xf32>
    %cst_54 = arith.constant dense<0.000000e+00> : vector<64x8xf32>
    %155 = tpu.matmul %154, %148, %cst_54 {dimension_numbers = #tpu.dot_dimension_numbers<[1], [1], [0], [0], [0, 0, 1, 0], [], []>} : vector<64x32xf32>, vector<8x32xf32>, vector<64x8xf32> -> vector<64x8xf32>
    %cst_55 = arith.constant 0.176776692 : f32
    %156 = vector.broadcast %cst_55 : f32 to vector<64x8xf32>
    %157 = arith.mulf %155, %156 : vector<64x8xf32>
    %cst_56 = arith.constant dense<0xFF800000> : vector<64xf32>
    %158 = vector.multi_reduction <maximumf>, %157, %cst_56 [1] : vector<64x8xf32> to vector<64xf32>
    %159 = vector.shape_cast %158 : vector<64xf32> to vector<64x1xf32>
    %160 = vector.broadcast %159 : vector<64x1xf32> to vector<64x8xf32>
    %161 = arith.subf %157, %160 : vector<64x8xf32>
    %162 = math.exp %161 : vector<64x8xf32>
    %cst_57 = arith.constant dense<0.000000e+00> : vector<64xf32>
    %163 = vector.multi_reduction <add>, %162, %cst_57 [1] : vector<64x8xf32> to vector<64xf32>
    %164 = vector.shape_cast %163 : vector<64xf32> to vector<64x1xf32>
    %165 = tpu.reciprocal %164 {approx = true} : vector<64x1xf32> -> vector<64x1xf32>
    %166 = vector.broadcast %165 : vector<64x1xf32> to vector<64x8xf32>
    %167 = arith.mulf %162, %166 : vector<64x8xf32>
    %168 = vector.broadcast %26 : vector<1x32xf32> to vector<8x32xf32>
    %169 = arith.mulf %151, %168 : vector<8x32xf32>
    %cst_58 = arith.constant dense<0.000000e+00> : vector<64x32xf32>
    %170 = tpu.matmul %167, %169, %cst_58 {dimension_numbers = #tpu.dot_dimension_numbers<[1], [0], [0], [1], [0, 0, 1, 1], [], []>} : vector<64x8xf32>, vector<8x32xf32>, vector<64x32xf32> -> vector<64x32xf32>
    %171 = arith.addf %152, %170 : vector<64x32xf32>
    %172 = vector.broadcast %33 : vector<1x32xf32> to vector<64x32xf32>
    %173 = arith.mulf %145, %172 : vector<64x32xf32>
    %cst_59 = arith.constant dense<0.000000e+00> : vector<64x8xf32>
    %174 = tpu.matmul %173, %148, %cst_59 {dimension_numbers = #tpu.dot_dimension_numbers<[1], [1], [0], [0], [0, 0, 1, 0], [], []>} : vector<64x32xf32>, vector<8x32xf32>, vector<64x8xf32> -> vector<64x8xf32>
    %cst_60 = arith.constant 0.176776692 : f32
    %175 = vector.broadcast %cst_60 : f32 to vector<64x8xf32>
    %176 = arith.mulf %174, %175 : vector<64x8xf32>
    %cst_61 = arith.constant dense<0xFF800000> : vector<64xf32>
    %177 = vector.multi_reduction <maximumf>, %176, %cst_61 [1] : vector<64x8xf32> to vector<64xf32>
    %178 = vector.shape_cast %177 : vector<64xf32> to vector<64x1xf32>
    %179 = vector.broadcast %178 : vector<64x1xf32> to vector<64x8xf32>
    %180 = arith.subf %176, %179 : vector<64x8xf32>
    %181 = math.exp %180 : vector<64x8xf32>
    %cst_62 = arith.constant dense<0.000000e+00> : vector<64xf32>
    %182 = vector.multi_reduction <add>, %181, %cst_62 [1] : vector<64x8xf32> to vector<64xf32>
    %183 = vector.shape_cast %182 : vector<64xf32> to vector<64x1xf32>
    %184 = tpu.reciprocal %183 {approx = true} : vector<64x1xf32> -> vector<64x1xf32>
    %185 = vector.broadcast %184 : vector<64x1xf32> to vector<64x8xf32>
    %186 = arith.mulf %181, %185 : vector<64x8xf32>
    %187 = vector.broadcast %33 : vector<1x32xf32> to vector<8x32xf32>
    %188 = arith.mulf %151, %187 : vector<8x32xf32>
    %cst_63 = arith.constant dense<0.000000e+00> : vector<64x32xf32>
    %189 = tpu.matmul %186, %188, %cst_63 {dimension_numbers = #tpu.dot_dimension_numbers<[1], [0], [0], [1], [0, 0, 1, 1], [], []>} : vector<64x8xf32>, vector<8x32xf32>, vector<64x32xf32> -> vector<64x32xf32>
    %190 = arith.addf %171, %189 : vector<64x32xf32>
    %191 = vector.broadcast %40 : vector<1x32xf32> to vector<64x32xf32>
    %192 = arith.mulf %145, %191 : vector<64x32xf32>
    %cst_64 = arith.constant dense<0.000000e+00> : vector<64x8xf32>
    %193 = tpu.matmul %192, %148, %cst_64 {dimension_numbers = #tpu.dot_dimension_numbers<[1], [1], [0], [0], [0, 0, 1, 0], [], []>} : vector<64x32xf32>, vector<8x32xf32>, vector<64x8xf32> -> vector<64x8xf32>
    %cst_65 = arith.constant 0.176776692 : f32
    %194 = vector.broadcast %cst_65 : f32 to vector<64x8xf32>
    %195 = arith.mulf %193, %194 : vector<64x8xf32>
    %cst_66 = arith.constant dense<0xFF800000> : vector<64xf32>
    %196 = vector.multi_reduction <maximumf>, %195, %cst_66 [1] : vector<64x8xf32> to vector<64xf32>
    %197 = vector.shape_cast %196 : vector<64xf32> to vector<64x1xf32>
    %198 = vector.broadcast %197 : vector<64x1xf32> to vector<64x8xf32>
    %199 = arith.subf %195, %198 : vector<64x8xf32>
    %200 = math.exp %199 : vector<64x8xf32>
    %cst_67 = arith.constant dense<0.000000e+00> : vector<64xf32>
    %201 = vector.multi_reduction <add>, %200, %cst_67 [1] : vector<64x8xf32> to vector<64xf32>
    %202 = vector.shape_cast %201 : vector<64xf32> to vector<64x1xf32>
    %203 = tpu.reciprocal %202 {approx = true} : vector<64x1xf32> -> vector<64x1xf32>
    %204 = vector.broadcast %203 : vector<64x1xf32> to vector<64x8xf32>
    %205 = arith.mulf %200, %204 : vector<64x8xf32>
    %206 = vector.broadcast %40 : vector<1x32xf32> to vector<8x32xf32>
    %207 = arith.mulf %151, %206 : vector<8x32xf32>
    %cst_68 = arith.constant dense<0.000000e+00> : vector<64x32xf32>
    %208 = tpu.matmul %205, %207, %cst_68 {dimension_numbers = #tpu.dot_dimension_numbers<[1], [0], [0], [1], [0, 0, 1, 1], [], []>} : vector<64x8xf32>, vector<8x32xf32>, vector<64x32xf32> -> vector<64x32xf32>
    %209 = arith.addf %190, %208 : vector<64x32xf32>
    %210 = vector.broadcast %47 : vector<1x32xf32> to vector<64x32xf32>
    %211 = arith.mulf %145, %210 : vector<64x32xf32>
    %cst_69 = arith.constant dense<0.000000e+00> : vector<64x8xf32>
    %212 = tpu.matmul %211, %148, %cst_69 {dimension_numbers = #tpu.dot_dimension_numbers<[1], [1], [0], [0], [0, 0, 1, 0], [], []>} : vector<64x32xf32>, vector<8x32xf32>, vector<64x8xf32> -> vector<64x8xf32>
    %cst_70 = arith.constant 0.176776692 : f32
    %213 = vector.broadcast %cst_70 : f32 to vector<64x8xf32>
    %214 = arith.mulf %212, %213 : vector<64x8xf32>
    %cst_71 = arith.constant dense<0xFF800000> : vector<64xf32>
    %215 = vector.multi_reduction <maximumf>, %214, %cst_71 [1] : vector<64x8xf32> to vector<64xf32>
    %216 = vector.shape_cast %215 : vector<64xf32> to vector<64x1xf32>
    %217 = vector.broadcast %216 : vector<64x1xf32> to vector<64x8xf32>
    %218 = arith.subf %214, %217 : vector<64x8xf32>
    %219 = math.exp %218 : vector<64x8xf32>
    %cst_72 = arith.constant dense<0.000000e+00> : vector<64xf32>
    %220 = vector.multi_reduction <add>, %219, %cst_72 [1] : vector<64x8xf32> to vector<64xf32>
    %221 = vector.shape_cast %220 : vector<64xf32> to vector<64x1xf32>
    %222 = tpu.reciprocal %221 {approx = true} : vector<64x1xf32> -> vector<64x1xf32>
    %223 = vector.broadcast %222 : vector<64x1xf32> to vector<64x8xf32>
    %224 = arith.mulf %219, %223 : vector<64x8xf32>
    %225 = vector.broadcast %47 : vector<1x32xf32> to vector<8x32xf32>
    %226 = arith.mulf %151, %225 : vector<8x32xf32>
    %cst_73 = arith.constant dense<0.000000e+00> : vector<64x32xf32>
    %227 = tpu.matmul %224, %226, %cst_73 {dimension_numbers = #tpu.dot_dimension_numbers<[1], [0], [0], [1], [0, 0, 1, 1], [], []>} : vector<64x8xf32>, vector<8x32xf32>, vector<64x32xf32> -> vector<64x32xf32>
    %228 = arith.addf %209, %227 : vector<64x32xf32>
    %229 = arith.addf %145, %228 : vector<64x32xf32>
    %cst_74 = arith.constant dense<0.000000e+00> : vector<64x32xf32>
    %230 = tpu.matmul %229, %8, %cst_74 {dimension_numbers = #tpu.dot_dimension_numbers<[1], [0], [0], [1], [0, 0, 1, 1], [], []>} : vector<64x32xf32>, vector<32x32xf32>, vector<64x32xf32> -> vector<64x32xf32>
    %231 = vector.broadcast %17 : vector<1x32xf32> to vector<64x32xf32>
    %232 = arith.addf %230, %231 : vector<64x32xf32>
    %cst_75 = arith.constant 0.000000e+00 : f32
    %233 = vector.broadcast %cst_75 : f32 to vector<64x32xf32>
    %234 = arith.maximumf %232, %233 : vector<64x32xf32>
    %235 = arith.addf %229, %234 : vector<64x32xf32>
    %cst_76 = arith.constant dense<0.000000e+00> : vector<32xf32>
    %236 = vector.multi_reduction <add>, %235, %cst_76 [0] : vector<64x32xf32> to vector<32xf32>
    %237 = vector.shape_cast %236 : vector<32xf32> to vector<1x32xf32>
    %cst_77 = arith.constant 6.400000e+01 : f32
    %238 = vector.broadcast %cst_77 : f32 to vector<1x32xf32>
    %239 = arith.divf %237, %238 : vector<1x32xf32>
    %cst_78 = arith.constant dense<0.000000e+00> : vector<1x32xf32>
    %240 = tpu.matmul %239, %9, %cst_78 {dimension_numbers = #tpu.dot_dimension_numbers<[1], [0], [0], [1], [0, 0, 1, 1], [], []>} : vector<1x32xf32>, vector<32x32xf32>, vector<1x32xf32> -> vector<1x32xf32>
    %241 = arith.addf %240, %18 : vector<1x32xf32>
    %c1 = arith.constant 1 : index
    %c0_79 = arith.constant 0 : index
    %c0_80 = arith.constant 0 : index
    %242 = vector.load %arg0[%c1, %c0_79, %c0_80] : memref<2x64x3xf32, #tpu.memory_space<vmem>>, vector<1x64x3xf32>
    %243 = vector.shape_cast %242 : vector<1x64x3xf32> to vector<64x3xf32>
    %cst_81 = arith.constant dense<0.000000e+00> : vector<8x32xf32>
    %244 = tpu.matmul %0, %4, %cst_81 {dimension_numbers = #tpu.dot_dimension_numbers<[1], [0], [0], [1], [0, 0, 1, 1], [], []>} : vector<8x32xf32>, vector<32x32xf32>, vector<8x32xf32> -> vector<8x32xf32>
    %245 = vector.broadcast %10 : vector<1x32xf32> to vector<8x32xf32>
    %246 = arith.addf %244, %245 : vector<8x32xf32>
    %cst_82 = arith.constant dense<0.000000e+00> : vector<64x32xf32>
    %247 = tpu.matmul %243, %1, %cst_82 {dimension_numbers = #tpu.dot_dimension_numbers<[1], [0], [0], [1], [0, 0, 1, 1], [], []>} : vector<64x3xf32>, vector<3x32xf32>, vector<64x32xf32> -> vector<64x32xf32>
    %248 = vector.broadcast %11 : vector<1x32xf32> to vector<64x32xf32>
    %249 = arith.addf %247, %248 : vector<64x32xf32>
    %cst_83 = arith.constant dense<0.000000e+00> : vector<64x32xf32>
    %250 = tpu.matmul %243, %2, %cst_83 {dimension_numbers = #tpu.dot_dimension_numbers<[1], [0], [0], [1], [0, 0, 1, 1], [], []>} : vector<64x3xf32>, vector<3x32xf32>, vector<64x32xf32> -> vector<64x32xf32>
    %251 = vector.broadcast %12 : vector<1x32xf32> to vector<64x32xf32>
    %252 = arith.addf %250, %251 : vector<64x32xf32>
    %cst_84 = arith.constant 0.000000e+00 : f32
    %253 = vector.broadcast %cst_84 : f32 to vector<8x32xf32>
    %254 = vector.broadcast %26 : vector<1x32xf32> to vector<8x32xf32>
    %255 = arith.mulf %246, %254 : vector<8x32xf32>
    %cst_85 = arith.constant dense<0.000000e+00> : vector<8x64xf32>
    %256 = tpu.matmul %255, %249, %cst_85 {dimension_numbers = #tpu.dot_dimension_numbers<[1], [1], [0], [0], [0, 0, 1, 0], [], []>} : vector<8x32xf32>, vector<64x32xf32>, vector<8x64xf32> -> vector<8x64xf32>
    %cst_86 = arith.constant 0.176776692 : f32
    %257 = vector.broadcast %cst_86 : f32 to vector<8x64xf32>
    %258 = arith.mulf %256, %257 : vector<8x64xf32>
    %cst_87 = arith.constant dense<0xFF800000> : vector<8xf32>
    %259 = vector.multi_reduction <maximumf>, %258, %cst_87 [1] : vector<8x64xf32> to vector<8xf32>
    %260 = vector.shape_cast %259 : vector<8xf32> to vector<8x1xf32>
    %261 = vector.broadcast %260 : vector<8x1xf32> to vector<8x64xf32>
    %262 = arith.subf %258, %261 : vector<8x64xf32>
    %263 = math.exp %262 : vector<8x64xf32>
    %cst_88 = arith.constant dense<0.000000e+00> : vector<8xf32>
    %264 = vector.multi_reduction <add>, %263, %cst_88 [1] : vector<8x64xf32> to vector<8xf32>
    %265 = vector.shape_cast %264 : vector<8xf32> to vector<8x1xf32>
    %266 = tpu.reciprocal %265 {approx = true} : vector<8x1xf32> -> vector<8x1xf32>
    %267 = vector.broadcast %266 : vector<8x1xf32> to vector<8x64xf32>
    %268 = arith.mulf %263, %267 : vector<8x64xf32>
    %269 = vector.broadcast %26 : vector<1x32xf32> to vector<64x32xf32>
    %270 = arith.mulf %252, %269 : vector<64x32xf32>
    %cst_89 = arith.constant dense<0.000000e+00> : vector<8x32xf32>
    %271 = tpu.matmul %268, %270, %cst_89 {dimension_numbers = #tpu.dot_dimension_numbers<[1], [0], [0], [1], [0, 0, 1, 1], [], []>} : vector<8x64xf32>, vector<64x32xf32>, vector<8x32xf32> -> vector<8x32xf32>
    %272 = arith.addf %253, %271 : vector<8x32xf32>
    %273 = vector.broadcast %33 : vector<1x32xf32> to vector<8x32xf32>
    %274 = arith.mulf %246, %273 : vector<8x32xf32>
    %cst_90 = arith.constant dense<0.000000e+00> : vector<8x64xf32>
    %275 = tpu.matmul %274, %249, %cst_90 {dimension_numbers = #tpu.dot_dimension_numbers<[1], [1], [0], [0], [0, 0, 1, 0], [], []>} : vector<8x32xf32>, vector<64x32xf32>, vector<8x64xf32> -> vector<8x64xf32>
    %cst_91 = arith.constant 0.176776692 : f32
    %276 = vector.broadcast %cst_91 : f32 to vector<8x64xf32>
    %277 = arith.mulf %275, %276 : vector<8x64xf32>
    %cst_92 = arith.constant dense<0xFF800000> : vector<8xf32>
    %278 = vector.multi_reduction <maximumf>, %277, %cst_92 [1] : vector<8x64xf32> to vector<8xf32>
    %279 = vector.shape_cast %278 : vector<8xf32> to vector<8x1xf32>
    %280 = vector.broadcast %279 : vector<8x1xf32> to vector<8x64xf32>
    %281 = arith.subf %277, %280 : vector<8x64xf32>
    %282 = math.exp %281 : vector<8x64xf32>
    %cst_93 = arith.constant dense<0.000000e+00> : vector<8xf32>
    %283 = vector.multi_reduction <add>, %282, %cst_93 [1] : vector<8x64xf32> to vector<8xf32>
    %284 = vector.shape_cast %283 : vector<8xf32> to vector<8x1xf32>
    %285 = tpu.reciprocal %284 {approx = true} : vector<8x1xf32> -> vector<8x1xf32>
    %286 = vector.broadcast %285 : vector<8x1xf32> to vector<8x64xf32>
    %287 = arith.mulf %282, %286 : vector<8x64xf32>
    %288 = vector.broadcast %33 : vector<1x32xf32> to vector<64x32xf32>
    %289 = arith.mulf %252, %288 : vector<64x32xf32>
    %cst_94 = arith.constant dense<0.000000e+00> : vector<8x32xf32>
    %290 = tpu.matmul %287, %289, %cst_94 {dimension_numbers = #tpu.dot_dimension_numbers<[1], [0], [0], [1], [0, 0, 1, 1], [], []>} : vector<8x64xf32>, vector<64x32xf32>, vector<8x32xf32> -> vector<8x32xf32>
    %291 = arith.addf %272, %290 : vector<8x32xf32>
    %292 = vector.broadcast %40 : vector<1x32xf32> to vector<8x32xf32>
    %293 = arith.mulf %246, %292 : vector<8x32xf32>
    %cst_95 = arith.constant dense<0.000000e+00> : vector<8x64xf32>
    %294 = tpu.matmul %293, %249, %cst_95 {dimension_numbers = #tpu.dot_dimension_numbers<[1], [1], [0], [0], [0, 0, 1, 0], [], []>} : vector<8x32xf32>, vector<64x32xf32>, vector<8x64xf32> -> vector<8x64xf32>
    %cst_96 = arith.constant 0.176776692 : f32
    %295 = vector.broadcast %cst_96 : f32 to vector<8x64xf32>
    %296 = arith.mulf %294, %295 : vector<8x64xf32>
    %cst_97 = arith.constant dense<0xFF800000> : vector<8xf32>
    %297 = vector.multi_reduction <maximumf>, %296, %cst_97 [1] : vector<8x64xf32> to vector<8xf32>
    %298 = vector.shape_cast %297 : vector<8xf32> to vector<8x1xf32>
    %299 = vector.broadcast %298 : vector<8x1xf32> to vector<8x64xf32>
    %300 = arith.subf %296, %299 : vector<8x64xf32>
    %301 = math.exp %300 : vector<8x64xf32>
    %cst_98 = arith.constant dense<0.000000e+00> : vector<8xf32>
    %302 = vector.multi_reduction <add>, %301, %cst_98 [1] : vector<8x64xf32> to vector<8xf32>
    %303 = vector.shape_cast %302 : vector<8xf32> to vector<8x1xf32>
    %304 = tpu.reciprocal %303 {approx = true} : vector<8x1xf32> -> vector<8x1xf32>
    %305 = vector.broadcast %304 : vector<8x1xf32> to vector<8x64xf32>
    %306 = arith.mulf %301, %305 : vector<8x64xf32>
    %307 = vector.broadcast %40 : vector<1x32xf32> to vector<64x32xf32>
    %308 = arith.mulf %252, %307 : vector<64x32xf32>
    %cst_99 = arith.constant dense<0.000000e+00> : vector<8x32xf32>
    %309 = tpu.matmul %306, %308, %cst_99 {dimension_numbers = #tpu.dot_dimension_numbers<[1], [0], [0], [1], [0, 0, 1, 1], [], []>} : vector<8x64xf32>, vector<64x32xf32>, vector<8x32xf32> -> vector<8x32xf32>
    %310 = arith.addf %291, %309 : vector<8x32xf32>
    %311 = vector.broadcast %47 : vector<1x32xf32> to vector<8x32xf32>
    %312 = arith.mulf %246, %311 : vector<8x32xf32>
    %cst_100 = arith.constant dense<0.000000e+00> : vector<8x64xf32>
    %313 = tpu.matmul %312, %249, %cst_100 {dimension_numbers = #tpu.dot_dimension_numbers<[1], [1], [0], [0], [0, 0, 1, 0], [], []>} : vector<8x32xf32>, vector<64x32xf32>, vector<8x64xf32> -> vector<8x64xf32>
    %cst_101 = arith.constant 0.176776692 : f32
    %314 = vector.broadcast %cst_101 : f32 to vector<8x64xf32>
    %315 = arith.mulf %313, %314 : vector<8x64xf32>
    %cst_102 = arith.constant dense<0xFF800000> : vector<8xf32>
    %316 = vector.multi_reduction <maximumf>, %315, %cst_102 [1] : vector<8x64xf32> to vector<8xf32>
    %317 = vector.shape_cast %316 : vector<8xf32> to vector<8x1xf32>
    %318 = vector.broadcast %317 : vector<8x1xf32> to vector<8x64xf32>
    %319 = arith.subf %315, %318 : vector<8x64xf32>
    %320 = math.exp %319 : vector<8x64xf32>
    %cst_103 = arith.constant dense<0.000000e+00> : vector<8xf32>
    %321 = vector.multi_reduction <add>, %320, %cst_103 [1] : vector<8x64xf32> to vector<8xf32>
    %322 = vector.shape_cast %321 : vector<8xf32> to vector<8x1xf32>
    %323 = tpu.reciprocal %322 {approx = true} : vector<8x1xf32> -> vector<8x1xf32>
    %324 = vector.broadcast %323 : vector<8x1xf32> to vector<8x64xf32>
    %325 = arith.mulf %320, %324 : vector<8x64xf32>
    %326 = vector.broadcast %47 : vector<1x32xf32> to vector<64x32xf32>
    %327 = arith.mulf %252, %326 : vector<64x32xf32>
    %cst_104 = arith.constant dense<0.000000e+00> : vector<8x32xf32>
    %328 = tpu.matmul %325, %327, %cst_104 {dimension_numbers = #tpu.dot_dimension_numbers<[1], [0], [0], [1], [0, 0, 1, 1], [], []>} : vector<8x64xf32>, vector<64x32xf32>, vector<8x32xf32> -> vector<8x32xf32>
    %329 = arith.addf %310, %328 : vector<8x32xf32>
    %330 = arith.addf %246, %329 : vector<8x32xf32>
    %cst_105 = arith.constant dense<0.000000e+00> : vector<8x32xf32>
    %331 = tpu.matmul %330, %5, %cst_105 {dimension_numbers = #tpu.dot_dimension_numbers<[1], [0], [0], [1], [0, 0, 1, 1], [], []>} : vector<8x32xf32>, vector<32x32xf32>, vector<8x32xf32> -> vector<8x32xf32>
    %332 = vector.broadcast %13 : vector<1x32xf32> to vector<8x32xf32>
    %333 = arith.addf %331, %332 : vector<8x32xf32>
    %cst_106 = arith.constant 0.000000e+00 : f32
    %334 = vector.broadcast %cst_106 : f32 to vector<8x32xf32>
    %335 = arith.maximumf %333, %334 : vector<8x32xf32>
    %336 = arith.addf %330, %335 : vector<8x32xf32>
    %cst_107 = arith.constant dense<0.000000e+00> : vector<64x32xf32>
    %337 = tpu.matmul %243, %3, %cst_107 {dimension_numbers = #tpu.dot_dimension_numbers<[1], [0], [0], [1], [0, 0, 1, 1], [], []>} : vector<64x3xf32>, vector<3x32xf32>, vector<64x32xf32> -> vector<64x32xf32>
    %338 = vector.broadcast %14 : vector<1x32xf32> to vector<64x32xf32>
    %339 = arith.addf %337, %338 : vector<64x32xf32>
    %cst_108 = arith.constant dense<0.000000e+00> : vector<8x32xf32>
    %340 = tpu.matmul %336, %6, %cst_108 {dimension_numbers = #tpu.dot_dimension_numbers<[1], [0], [0], [1], [0, 0, 1, 1], [], []>} : vector<8x32xf32>, vector<32x32xf32>, vector<8x32xf32> -> vector<8x32xf32>
    %341 = vector.broadcast %15 : vector<1x32xf32> to vector<8x32xf32>
    %342 = arith.addf %340, %341 : vector<8x32xf32>
    %cst_109 = arith.constant dense<0.000000e+00> : vector<8x32xf32>
    %343 = tpu.matmul %336, %7, %cst_109 {dimension_numbers = #tpu.dot_dimension_numbers<[1], [0], [0], [1], [0, 0, 1, 1], [], []>} : vector<8x32xf32>, vector<32x32xf32>, vector<8x32xf32> -> vector<8x32xf32>
    %344 = vector.broadcast %16 : vector<1x32xf32> to vector<8x32xf32>
    %345 = arith.addf %343, %344 : vector<8x32xf32>
    %cst_110 = arith.constant 0.000000e+00 : f32
    %346 = vector.broadcast %cst_110 : f32 to vector<64x32xf32>
    %347 = vector.broadcast %26 : vector<1x32xf32> to vector<64x32xf32>
    %348 = arith.mulf %339, %347 : vector<64x32xf32>
    %cst_111 = arith.constant dense<0.000000e+00> : vector<64x8xf32>
    %349 = tpu.matmul %348, %342, %cst_111 {dimension_numbers = #tpu.dot_dimension_numbers<[1], [1], [0], [0], [0, 0, 1, 0], [], []>} : vector<64x32xf32>, vector<8x32xf32>, vector<64x8xf32> -> vector<64x8xf32>
    %cst_112 = arith.constant 0.176776692 : f32
    %350 = vector.broadcast %cst_112 : f32 to vector<64x8xf32>
    %351 = arith.mulf %349, %350 : vector<64x8xf32>
    %cst_113 = arith.constant dense<0xFF800000> : vector<64xf32>
    %352 = vector.multi_reduction <maximumf>, %351, %cst_113 [1] : vector<64x8xf32> to vector<64xf32>
    %353 = vector.shape_cast %352 : vector<64xf32> to vector<64x1xf32>
    %354 = vector.broadcast %353 : vector<64x1xf32> to vector<64x8xf32>
    %355 = arith.subf %351, %354 : vector<64x8xf32>
    %356 = math.exp %355 : vector<64x8xf32>
    %cst_114 = arith.constant dense<0.000000e+00> : vector<64xf32>
    %357 = vector.multi_reduction <add>, %356, %cst_114 [1] : vector<64x8xf32> to vector<64xf32>
    %358 = vector.shape_cast %357 : vector<64xf32> to vector<64x1xf32>
    %359 = tpu.reciprocal %358 {approx = true} : vector<64x1xf32> -> vector<64x1xf32>
    %360 = vector.broadcast %359 : vector<64x1xf32> to vector<64x8xf32>
    %361 = arith.mulf %356, %360 : vector<64x8xf32>
    %362 = vector.broadcast %26 : vector<1x32xf32> to vector<8x32xf32>
    %363 = arith.mulf %345, %362 : vector<8x32xf32>
    %cst_115 = arith.constant dense<0.000000e+00> : vector<64x32xf32>
    %364 = tpu.matmul %361, %363, %cst_115 {dimension_numbers = #tpu.dot_dimension_numbers<[1], [0], [0], [1], [0, 0, 1, 1], [], []>} : vector<64x8xf32>, vector<8x32xf32>, vector<64x32xf32> -> vector<64x32xf32>
    %365 = arith.addf %346, %364 : vector<64x32xf32>
    %366 = vector.broadcast %33 : vector<1x32xf32> to vector<64x32xf32>
    %367 = arith.mulf %339, %366 : vector<64x32xf32>
    %cst_116 = arith.constant dense<0.000000e+00> : vector<64x8xf32>
    %368 = tpu.matmul %367, %342, %cst_116 {dimension_numbers = #tpu.dot_dimension_numbers<[1], [1], [0], [0], [0, 0, 1, 0], [], []>} : vector<64x32xf32>, vector<8x32xf32>, vector<64x8xf32> -> vector<64x8xf32>
    %cst_117 = arith.constant 0.176776692 : f32
    %369 = vector.broadcast %cst_117 : f32 to vector<64x8xf32>
    %370 = arith.mulf %368, %369 : vector<64x8xf32>
    %cst_118 = arith.constant dense<0xFF800000> : vector<64xf32>
    %371 = vector.multi_reduction <maximumf>, %370, %cst_118 [1] : vector<64x8xf32> to vector<64xf32>
    %372 = vector.shape_cast %371 : vector<64xf32> to vector<64x1xf32>
    %373 = vector.broadcast %372 : vector<64x1xf32> to vector<64x8xf32>
    %374 = arith.subf %370, %373 : vector<64x8xf32>
    %375 = math.exp %374 : vector<64x8xf32>
    %cst_119 = arith.constant dense<0.000000e+00> : vector<64xf32>
    %376 = vector.multi_reduction <add>, %375, %cst_119 [1] : vector<64x8xf32> to vector<64xf32>
    %377 = vector.shape_cast %376 : vector<64xf32> to vector<64x1xf32>
    %378 = tpu.reciprocal %377 {approx = true} : vector<64x1xf32> -> vector<64x1xf32>
    %379 = vector.broadcast %378 : vector<64x1xf32> to vector<64x8xf32>
    %380 = arith.mulf %375, %379 : vector<64x8xf32>
    %381 = vector.broadcast %33 : vector<1x32xf32> to vector<8x32xf32>
    %382 = arith.mulf %345, %381 : vector<8x32xf32>
    %cst_120 = arith.constant dense<0.000000e+00> : vector<64x32xf32>
    %383 = tpu.matmul %380, %382, %cst_120 {dimension_numbers = #tpu.dot_dimension_numbers<[1], [0], [0], [1], [0, 0, 1, 1], [], []>} : vector<64x8xf32>, vector<8x32xf32>, vector<64x32xf32> -> vector<64x32xf32>
    %384 = arith.addf %365, %383 : vector<64x32xf32>
    %385 = vector.broadcast %40 : vector<1x32xf32> to vector<64x32xf32>
    %386 = arith.mulf %339, %385 : vector<64x32xf32>
    %cst_121 = arith.constant dense<0.000000e+00> : vector<64x8xf32>
    %387 = tpu.matmul %386, %342, %cst_121 {dimension_numbers = #tpu.dot_dimension_numbers<[1], [1], [0], [0], [0, 0, 1, 0], [], []>} : vector<64x32xf32>, vector<8x32xf32>, vector<64x8xf32> -> vector<64x8xf32>
    %cst_122 = arith.constant 0.176776692 : f32
    %388 = vector.broadcast %cst_122 : f32 to vector<64x8xf32>
    %389 = arith.mulf %387, %388 : vector<64x8xf32>
    %cst_123 = arith.constant dense<0xFF800000> : vector<64xf32>
    %390 = vector.multi_reduction <maximumf>, %389, %cst_123 [1] : vector<64x8xf32> to vector<64xf32>
    %391 = vector.shape_cast %390 : vector<64xf32> to vector<64x1xf32>
    %392 = vector.broadcast %391 : vector<64x1xf32> to vector<64x8xf32>
    %393 = arith.subf %389, %392 : vector<64x8xf32>
    %394 = math.exp %393 : vector<64x8xf32>
    %cst_124 = arith.constant dense<0.000000e+00> : vector<64xf32>
    %395 = vector.multi_reduction <add>, %394, %cst_124 [1] : vector<64x8xf32> to vector<64xf32>
    %396 = vector.shape_cast %395 : vector<64xf32> to vector<64x1xf32>
    %397 = tpu.reciprocal %396 {approx = true} : vector<64x1xf32> -> vector<64x1xf32>
    %398 = vector.broadcast %397 : vector<64x1xf32> to vector<64x8xf32>
    %399 = arith.mulf %394, %398 : vector<64x8xf32>
    %400 = vector.broadcast %40 : vector<1x32xf32> to vector<8x32xf32>
    %401 = arith.mulf %345, %400 : vector<8x32xf32>
    %cst_125 = arith.constant dense<0.000000e+00> : vector<64x32xf32>
    %402 = tpu.matmul %399, %401, %cst_125 {dimension_numbers = #tpu.dot_dimension_numbers<[1], [0], [0], [1], [0, 0, 1, 1], [], []>} : vector<64x8xf32>, vector<8x32xf32>, vector<64x32xf32> -> vector<64x32xf32>
    %403 = arith.addf %384, %402 : vector<64x32xf32>
    %404 = vector.broadcast %47 : vector<1x32xf32> to vector<64x32xf32>
    %405 = arith.mulf %339, %404 : vector<64x32xf32>
    %cst_126 = arith.constant dense<0.000000e+00> : vector<64x8xf32>
    %406 = tpu.matmul %405, %342, %cst_126 {dimension_numbers = #tpu.dot_dimension_numbers<[1], [1], [0], [0], [0, 0, 1, 0], [], []>} : vector<64x32xf32>, vector<8x32xf32>, vector<64x8xf32> -> vector<64x8xf32>
    %cst_127 = arith.constant 0.176776692 : f32
    %407 = vector.broadcast %cst_127 : f32 to vector<64x8xf32>
    %408 = arith.mulf %406, %407 : vector<64x8xf32>
    %cst_128 = arith.constant dense<0xFF800000> : vector<64xf32>
    %409 = vector.multi_reduction <maximumf>, %408, %cst_128 [1] : vector<64x8xf32> to vector<64xf32>
    %410 = vector.shape_cast %409 : vector<64xf32> to vector<64x1xf32>
    %411 = vector.broadcast %410 : vector<64x1xf32> to vector<64x8xf32>
    %412 = arith.subf %408, %411 : vector<64x8xf32>
    %413 = math.exp %412 : vector<64x8xf32>
    %cst_129 = arith.constant dense<0.000000e+00> : vector<64xf32>
    %414 = vector.multi_reduction <add>, %413, %cst_129 [1] : vector<64x8xf32> to vector<64xf32>
    %415 = vector.shape_cast %414 : vector<64xf32> to vector<64x1xf32>
    %416 = tpu.reciprocal %415 {approx = true} : vector<64x1xf32> -> vector<64x1xf32>
    %417 = vector.broadcast %416 : vector<64x1xf32> to vector<64x8xf32>
    %418 = arith.mulf %413, %417 : vector<64x8xf32>
    %419 = vector.broadcast %47 : vector<1x32xf32> to vector<8x32xf32>
    %420 = arith.mulf %345, %419 : vector<8x32xf32>
    %cst_130 = arith.constant dense<0.000000e+00> : vector<64x32xf32>
    %421 = tpu.matmul %418, %420, %cst_130 {dimension_numbers = #tpu.dot_dimension_numbers<[1], [0], [0], [1], [0, 0, 1, 1], [], []>} : vector<64x8xf32>, vector<8x32xf32>, vector<64x32xf32> -> vector<64x32xf32>
    %422 = arith.addf %403, %421 : vector<64x32xf32>
    %423 = arith.addf %339, %422 : vector<64x32xf32>
    %cst_131 = arith.constant dense<0.000000e+00> : vector<64x32xf32>
    %424 = tpu.matmul %423, %8, %cst_131 {dimension_numbers = #tpu.dot_dimension_numbers<[1], [0], [0], [1], [0, 0, 1, 1], [], []>} : vector<64x32xf32>, vector<32x32xf32>, vector<64x32xf32> -> vector<64x32xf32>
    %425 = vector.broadcast %17 : vector<1x32xf32> to vector<64x32xf32>
    %426 = arith.addf %424, %425 : vector<64x32xf32>
    %cst_132 = arith.constant 0.000000e+00 : f32
    %427 = vector.broadcast %cst_132 : f32 to vector<64x32xf32>
    %428 = arith.maximumf %426, %427 : vector<64x32xf32>
    %429 = arith.addf %423, %428 : vector<64x32xf32>
    %cst_133 = arith.constant dense<0.000000e+00> : vector<32xf32>
    %430 = vector.multi_reduction <add>, %429, %cst_133 [0] : vector<64x32xf32> to vector<32xf32>
    %431 = vector.shape_cast %430 : vector<32xf32> to vector<1x32xf32>
    %cst_134 = arith.constant 6.400000e+01 : f32
    %432 = vector.broadcast %cst_134 : f32 to vector<1x32xf32>
    %433 = arith.divf %431, %432 : vector<1x32xf32>
    %cst_135 = arith.constant dense<0.000000e+00> : vector<1x32xf32>
    %434 = tpu.matmul %433, %9, %cst_135 {dimension_numbers = #tpu.dot_dimension_numbers<[1], [0], [0], [1], [0, 0, 1, 1], [], []>} : vector<1x32xf32>, vector<32x32xf32>, vector<1x32xf32> -> vector<1x32xf32>
    %435 = arith.addf %434, %18 : vector<1x32xf32>
    %436 = tpu.concatenate %241, %435 in 0 : vector<1x32xf32>, vector<1x32xf32> -> vector<2x32xf32>
    %c0_136 = arith.constant 0 : index
    %c0_137 = arith.constant 0 : index
    %437 = vector.load %arg5[%c0_136, %c0_137] : memref<2x32xf32, #tpu.memory_space<vmem>>, vector<2x32xf32>
    tpu.vector_store %arg5[%c0_136, %c0_137], %436 {strides = array<i32>} : memref<2x32xf32, #tpu.memory_space<vmem>>, vector<2x32xf32>,
    %c0_138 = arith.constant 0 : index
    %c0_139 = arith.constant 0 : index
    %438 = vector.load %arg2[%c0_138, %c0_139] : memref<64x32xf32, #tpu.memory_space<vmem>>, vector<64x32xf32>
    %439 = arith.mulf %436, %436 : vector<2x32xf32>
    %cst_140 = arith.constant dense<0.000000e+00> : vector<2xf32>
    %440 = vector.multi_reduction <add>, %439, %cst_140 [1] : vector<2x32xf32> to vector<2xf32>
    %441 = vector.shape_cast %440 : vector<2xf32> to vector<2x1xf32>
    %cst_141 = arith.constant 1.000000e+00 : f32
    %442 = vector.broadcast %cst_141 : f32 to vector<1x32xf32>
    %443 = arith.mulf %438, %438 : vector<64x32xf32>
    %cst_142 = arith.constant dense<0.000000e+00> : vector<1x64xf32>
    %444 = tpu.matmul %442, %443, %cst_142 {dimension_numbers = #tpu.dot_dimension_numbers<[1], [1], [0], [0], [0, 0, 1, 0], [], []>} : vector<1x32xf32>, vector<64x32xf32>, vector<1x64xf32> -> vector<1x64xf32>
    %445 = vector.broadcast %441 : vector<2x1xf32> to vector<2x64xf32>
    %446 = vector.broadcast %444 : vector<1x64xf32> to vector<2x64xf32>
    %447 = arith.addf %445, %446 : vector<2x64xf32>
    %cst_143 = arith.constant dense<0.000000e+00> : vector<2x64xf32>
    %448 = tpu.matmul %436, %438, %cst_143 {dimension_numbers = #tpu.dot_dimension_numbers<[1], [1], [0], [0], [0, 0, 1, 0], [], []>} : vector<2x32xf32>, vector<64x32xf32>, vector<2x64xf32> -> vector<2x64xf32>
    %cst_144 = arith.constant 2.000000e+00 : f32
    %449 = vector.broadcast %cst_144 : f32 to vector<2x64xf32>
    %450 = arith.mulf %449, %448 : vector<2x64xf32>
    %451 = arith.subf %447, %450 : vector<2x64xf32>
    %452 = tpu.iota {dimensions = array<i32: 1>} : vector<2x64xi32>
    %cst_145 = arith.constant dense<0x7F800000> : vector<2xf32>
    %453 = vector.multi_reduction <minimumf>, %451, %cst_145 [1] : vector<2x64xf32> to vector<2xf32>
    %454 = vector.shape_cast %453 : vector<2xf32> to vector<2x1xf32>
    %455 = vector.broadcast %454 : vector<2x1xf32> to vector<2x64xf32>
    %456 = arith.cmpf oeq, %451, %455 : vector<2x64xf32>
    %c64_i32 = arith.constant 64 : i32
    %457 = vector.broadcast %c64_i32 : i32 to vector<2x64xi32>
    %458 = arith.select %456, %452, %457 : vector<2x64xi1>, vector<2x64xi32>
    %cst_146 = arith.constant dense<2147483647> : vector<2xi32>
    %459 = vector.multi_reduction <minsi>, %458, %cst_146 [1] : vector<2x64xi32> to vector<2xi32>
    %460 = vector.shape_cast %459 : vector<2xi32> to vector<2x1xi32>
    %461 = vector.broadcast %460 : vector<2x1xi32> to vector<2x64xi32>
    %462 = arith.cmpi eq, %452, %461 : vector<2x64xi32>
    %463 = arith.extui %462 : vector<2x64xi1> to vector<2x64xi32>
    %464 = arith.sitofp %463 : vector<2x64xi32> to vector<2x64xf32>
    %cst_147 = arith.constant dense<0.000000e+00> : vector<2x32xf32>
    %465 = tpu.matmul %464, %438, %cst_147 {dimension_numbers = #tpu.dot_dimension_numbers<[1], [0], [0], [1], [0, 0, 1, 1], [], []>} : vector<2x64xf32>, vector<64x32xf32>, vector<2x32xf32> -> vector<2x32xf32>
    %466 = arith.subf %465, %436 : vector<2x32xf32>
    %467 = arith.mulf %466, %466 : vector<2x32xf32>
    %468 = vector.shape_cast %467 : vector<2x32xf32> to vector<1x2x32xf32>
    %cst_148 = arith.constant dense<0.000000e+00> : vector<1xf32>
    %469 = vector.multi_reduction <add>, %468, %cst_148 [1, 2] : vector<1x2x32xf32> to vector<1xf32>
    %470 = vector.shape_cast %469 : vector<1xf32> to vector<1x1x1xf32>
    %471 = vector.extract %470[0, 0, 0] : f32 from vector<1x1x1xf32>
    %472 = vector.broadcast %471 : f32 to vector<1x1xf32>
    %cst_149 = arith.constant 1.562500e-01 : f32
    %473 = vector.broadcast %cst_149 : f32 to vector<1x1xf32>
    %474 = arith.mulf %473, %472 : vector<1x1xf32>
    %c0_150 = arith.constant 0 : index
    %c0_151 = arith.constant 0 : index
    %475 = vector.load %arg6[%c0_150, %c0_151] : memref<1x1xf32, #tpu.memory_space<vmem>>, vector<1x1xf32>
    tpu.vector_store %arg6[%c0_150, %c0_151], %474 {strides = array<i32>} : memref<1x1xf32, #tpu.memory_space<vmem>>, vector<1x1xf32>,
    %c0_152 = arith.constant 0 : index
    %c0_153 = arith.constant 0 : index
    %476 = vector.load %arg3[%c0_152, %c0_153] : memref<248x256xf32, #tpu.memory_space<vmem>>, vector<32x128xf32>
    %c32_154 = arith.constant 32 : index
    %c0_155 = arith.constant 0 : index
    %477 = vector.load %arg3[%c32_154, %c0_155] : memref<248x256xf32, #tpu.memory_space<vmem>>, vector<1x128xf32>
    %c40 = arith.constant 40 : index
    %c0_156 = arith.constant 0 : index
    %478 = vector.load %arg3[%c40, %c0_156] : memref<248x256xf32, #tpu.memory_space<vmem>>, vector<128x64xf32>
    %c168 = arith.constant 168 : index
    %c0_157 = arith.constant 0 : index
    %479 = vector.load %arg3[%c168, %c0_157] : memref<248x256xf32, #tpu.memory_space<vmem>>, vector<1x64xf32>
    %c176 = arith.constant 176 : index
    %c0_158 = arith.constant 0 : index
    %480 = vector.load %arg3[%c176, %c0_158] : memref<248x256xf32, #tpu.memory_space<vmem>>, vector<64x256xf32>
    %c240_159 = arith.constant 240 : index
    %c0_160 = arith.constant 0 : index
    %481 = vector.load %arg3[%c240_159, %c0_160] : memref<248x256xf32, #tpu.memory_space<vmem>>, vector<1x256xf32>
    %cst_161 = arith.constant dense<0.000000e+00> : vector<2x128xf32>
    %482 = tpu.matmul %465, %476, %cst_161 {dimension_numbers = #tpu.dot_dimension_numbers<[1], [0], [0], [1], [0, 0, 1, 1], [], []>} : vector<2x32xf32>, vector<32x128xf32>, vector<2x128xf32> -> vector<2x128xf32>
    %483 = vector.broadcast %477 : vector<1x128xf32> to vector<2x128xf32>
    %484 = arith.addf %482, %483 : vector<2x128xf32>
    %cst_162 = arith.constant 0.000000e+00 : f32
    %485 = vector.broadcast %cst_162 : f32 to vector<2x128xf32>
    %486 = arith.cmpf ogt, %484, %485 : vector<2x128xf32>
    %cst_163 = arith.constant 1.000000e-03 : f32
    %487 = vector.broadcast %cst_163 : f32 to vector<2x128xf32>
    %488 = arith.mulf %487, %484 : vector<2x128xf32>
    %489 = arith.select %486, %484, %488 : vector<2x128xi1>, vector<2x128xf32>
    %cst_164 = arith.constant dense<0.000000e+00> : vector<2x64xf32>
    %490 = tpu.matmul %489, %478, %cst_164 {dimension_numbers = #tpu.dot_dimension_numbers<[1], [0], [0], [1], [0, 0, 1, 1], [], []>} : vector<2x128xf32>, vector<128x64xf32>, vector<2x64xf32> -> vector<2x64xf32>
    %491 = vector.broadcast %479 : vector<1x64xf32> to vector<2x64xf32>
    %492 = arith.addf %490, %491 : vector<2x64xf32>
    %cst_165 = arith.constant 0.000000e+00 : f32
    %493 = vector.broadcast %cst_165 : f32 to vector<2x64xf32>
    %494 = arith.cmpf ogt, %492, %493 : vector<2x64xf32>
    %cst_166 = arith.constant 1.000000e-03 : f32
    %495 = vector.broadcast %cst_166 : f32 to vector<2x64xf32>
    %496 = arith.mulf %495, %492 : vector<2x64xf32>
    %497 = arith.select %494, %492, %496 : vector<2x64xi1>, vector<2x64xf32>
    %cst_167 = arith.constant dense<0.000000e+00> : vector<2x256xf32>
    %498 = tpu.matmul %497, %480, %cst_167 {dimension_numbers = #tpu.dot_dimension_numbers<[1], [0], [0], [1], [0, 0, 1, 1], [], []>} : vector<2x64xf32>, vector<64x256xf32>, vector<2x256xf32> -> vector<2x256xf32>
    %499 = vector.broadcast %481 : vector<1x256xf32> to vector<2x256xf32>
    %500 = arith.addf %498, %499 : vector<2x256xf32>
    %c0_168 = arith.constant 0 : index
    %c0_169 = arith.constant 0 : index
    %501 = vector.load %arg4[%c0_168, %c0_169] : memref<2x256xf32, #tpu.memory_space<vmem>>, vector<2x256xf32>
    tpu.vector_store %arg4[%c0_168, %c0_169], %500 {strides = array<i32>} : memref<2x256xf32, #tpu.memory_space<vmem>>, vector<2x256xf32>,
    return
  }
}

</mosaic_0001>

<bundles_post_ra>
// kernel: tpu_custom_call.1
= control target key start
LH: loop header
LB: loop body
LE: loop exit
PB: predicated region body
PF: predicated region fallthrough
CT: control target
= control target key end

     0   :  { %12 = vsyncpa [#allocation3], 0  ;;  %vm140_vm0 = vcmask 1042432   ;;  %vm115_vm1 = vcmask 23552   ;;  %s6449_s0 = inlined_call_operand.vmem [shape: f32[2,64,3], index: 0, kind: input, shape index: {}]   ;;  %s6450_s1 = inlined_call_operand.vmem [shape: f32[296,32], index: 1, kind: input, shape index: {}]   ;;  %s6451_s2 = inlined_call_operand.vmem [shape: f32[64,32], index: 2, kind: input, shape index: {}]   ;;  %s6452_s3 = inlined_call_operand.vmem [shape: f32[248,256], index: 3, kind: input, shape index: {}]   ;;  %s6453_s4 = inlined_call_operand.hbm [shape: f32[2,256], index: 4, kind: output, shape index: {0}]   ;;  %s6454_s5 = inlined_call_operand.hbm [shape: f32[2,32], index: 5, kind: output, shape index: {1}]   ;;  %s6455_s6 = inlined_call_operand.hbm [shape: f32[1,1], index: 6, kind: output, shape index: {2}]  }
   0x1   :  { %v23_v0 = vld [vmem:[%s6450_s1 + $0x8] sm:$0x7]  ;;  %v4508_v1 = vld [vmem:[%s6449_s0] sm:$0xff] }
   0x2   :  { %3724 = vmatpush.msk.msra.mxu1 %vm140_vm0, %v23_v0 }
   0x3   :  { %3725 = vmatmul.msk.f32.vlgmr.msra.gmra.mxu1 %vm115_vm1, %v4508_v1 }
   0x4   :  { %13 = vsyncpa [#allocation5], 0  ;;  %v4516_v2 = vld [vmem:[%s6449_s0 + $0x8] sm:$0xff]  ;;  %v4523_v3 = vld [vmem:[%s6449_s0 + $0x10] sm:$0xff]  ;;  %vm90_vm2 = vcmask 261120   ;;  %v59_v30 = vlaneseq  ;;  %v6456_v40 = vmov 0.0  }
   0x5   :  { %v4530_v4 = vld [vmem:[%s6449_s0 + $0x18] sm:$0xff]  ;;  %v24_v5 = vld [vmem:[%s6450_s1 + $0x10] sm:$0x7]  ;;  %v27_v8 = vld [vmem:[%s6450_s1 + $0x28] sm:$0xff]  ;;  %vm279_vm13 = vcmask 523264   ;;  %vm726_vm14 = vcmask 64512  }
   0x6   :  { %v29_v6 = vld [vmem:[%s6450_s1 + $0x38] sm:$0xff]  ;;  %v28_v7 = vld [vmem:[%s6450_s1 + $0x30] sm:$0xff]  ;;  %3733 = vmatpush.msk.msra.mxu2 %vm140_vm0, %v24_v5  ;;  %v26_v9 = vld [vmem:[%s6450_s1 + $0x20] sm:$0xff]  ;;  %v4625_v32 = vand.u32 127, %v59_v30  ;;  %s4464_s29 = smov [#allocation4]   ;;  %s4465_s30 = smov [#allocation6]  }
   0x7   :  { %106 = vmatpush.msra.mxu0 %v29_v6  ;;  %3734 = vmatmul.msk.f32.vlgmr.msra.gmra.mxu2 %vm115_vm1, %v4508_v1  ;;  %v4555_v10 = vld [vmem:[%s6449_s0 + $0x20] sm:$0xff]  ;;  %v4568_v12 = vld [vmem:[%s6449_s0 + $0x28] sm:$0xff]  ;;  %v4577_v13 = vld [vmem:[%s6449_s0 + $0x30] sm:$0xff]  ;;  %s3699_s7 = sshll.u32 %s4465_s30, 4  ;;  %s3701_s10 = sshll.u32 %s6455_s6, 4  ;;  %s3700_s7 = int_to_ptr.vmem [resolvable:$true] %s3699_s7  ;;  %s3702_s10 = int_to_ptr.hbm [resolvable:$true] %s3701_s10 }
   0x8   :  { %v22_v11 = vld [vmem:[%s6450_s1] sm:$0xff]  ;;  %v4586_v14 = vld [vmem:[%s6449_s0 + $0x38] sm:$0xff]  ;;  %v4058_v23 = vld [vmem:[%s6450_s1 + $0xe8] ss:$0 sm:$0xff]  ;;  %6460 = vst [vmem:[#allocation9_spill] sm:$0xff] %v4625_v32  ;;  %vm66_vm3 = vcmp.ge.s32.totalorder %v4625_v32, 8 }
   0x9   :  { %107 = vmatpush.msra.mxu0 %v28_v7  ;;  %vm67_vm4 = vcmp.lt.s32.totalorder %v4625_v32, 16  ;;  %vm71_vm5 = vcmp.ge.s32.totalorder %v4625_v32, 16  ;;  %vm72_vm6 = vcmp.lt.s32.totalorder %v4625_v32, 24  ;;  %v4060_v36 = vld [vmem:[%s6450_s1 + $0xe0] ss:$0 sm:$0xff]  ;;  %vm76_vm7 = vcmp.ge.s32.totalorder %v4625_v32, 24 }
   0xa   :  { %vm77_vm8 = vcmp.lt.s32.totalorder %v4625_v32, 32  ;;  %vm68_vm9 = vmand %vm66_vm3, %vm67_vm4  ;;  %vm62_vm11 = vcmp.lt.s32.totalorder %v4625_v32, 8  ;;  %v4059_v53 = vld [vmem:[%s6450_s1 + $0xf0] ss:$0 sm:$0xff]  ;;  %vm3465_vm3 = vcmask 517120   ;;  %s3679_s16 = sshll.u32 %s6453_s4, 4  ;;  %s3680_s16 = int_to_ptr.hbm [resolvable:$true] %s3679_s16 }
   0xb   :  { %3726 = vmatmul.msk.f32.gmra.mxu1 %vm115_vm1, %v4516_v2  ;;  %108 = vmatpush.msra.mxu0 %v27_v8  ;;  %vm73_vm10 = vmand %vm71_vm5, %vm72_vm6  ;;  %v4650_v41 = vsel %vm68_vm9, 1.0, %v6456_v40  ;;  %v4653_v42 = vsel %vm62_vm11, 1.0, %v6456_v40  ;;  %vm3668_vm9 = vcmask 1041408  }
   0xc   :  { %vm78_vm12 = vmand %vm76_vm7, %vm77_vm8  ;;  %v4658_v44 = vsel %vm73_vm10, 1.0, %v6456_v40  ;;  %vm3526_vm7 = vcmask 0  }
   0xd   :  { %109 = vmatpush.msra.mxu0 %v26_v9  ;;  %v4661_v45 = vsel %vm78_vm12, 1.0, %v6456_v40 }
   0xe   :  { %3723 = vmatmul.msk.f32.vlgmr.msra.gmra.mxu0 %vm90_vm2, %v22_v11 }
   0xf   :  { %3735 = vmatmul.msk.f32.gmra.mxu2 %vm115_vm1, %v4516_v2 }
  0x13   :  { %3727 = vmatmul.msk.f32.gmra.mxu1 %vm115_vm1, %v4523_v3 }
  0x17   :  { %3736 = vmatmul.msk.f32.gmra.mxu2 %vm115_vm1, %v4523_v3 }
  0x1b   :  { %3728 = vmatmul.msk.f32.gmra.mxu1 %vm115_vm1, %v4530_v4 }
  0x1f   :  { %3737 = vmatmul.msk.f32.gmra.mxu2 %vm115_vm1, %v4530_v4 }
  0x23   :  { %3729 = vmatmul.msk.f32.gmra.mxu1 %vm115_vm1, %v4555_v10 }
  0x27   :  { %3738 = vmatmul.msk.f32.gmra.mxu2 %vm115_vm1, %v4555_v10 }
  0x2b   :  { %3730 = vmatmul.msk.f32.gmra.mxu1 %vm115_vm1, %v4568_v12 }
  0x2f   :  { %3739 = vmatmul.msk.f32.gmra.mxu2 %vm115_vm1, %v4568_v12 }
  0x33   :  { %3731 = vmatmul.msk.f32.gmra.mxu1 %vm115_vm1, %v4577_v13 }
  0x37   :  { %3740 = vmatmul.msk.f32.gmra.mxu2 %vm115_vm1, %v4577_v13 }
  0x3b   :  { %3732 = vmatmul.msk.f32.gmra.mxu1 %vm115_vm1, %v4586_v14 }
  0x3f   :  { %3741 = vmatmul.msk.f32.gmra.mxu2 %vm115_vm1, %v4586_v14 }
  0x80   :  { %v4598_v15 = vpop.f32.mrf.mxu1 }
  0x81   :  { %v162_v46 = vadd.f32 %v4058_v23, %v4598_v15 }
  0x88   :  { %v164_v16 = vpop.f32.mrf.mxu1 }
  0x89   :  { %v165_v38 = vadd.f32 %v4058_v23, %v164_v16 }
  0x8a   :  { %v4600_v22 = vpop.f32.mrf.mxu2 }
  0x8b   :  { %v111_v37 = vpop.f32.mrf.mxu0  ;;  %v207_v16 = vadd.f32 %v4059_v53, %v4600_v22 }
  0x8c   :  { %v4645_v39 = vadd.f32 %v4060_v36, %v111_v37 }
  0x8e   :  { %v4666_v47 = vmul.f32 %v4650_v41, %v4645_v39  ;;  %v4670_v48 = vmul.f32 %v4653_v42, %v4645_v39  ;;  %v4676_v49 = vmul.f32 %v4658_v44, %v4645_v39  ;;  %v4680_v50 = vmul.f32 %v4661_v45, %v4645_v39 }
  0x90   :  { %v167_v17 = vpop.f32.mrf.mxu1 }
  0x91   :  { %v168_v35 = vadd.f32 %v4058_v23, %v167_v17 }
  0x92   :  { %v4607_v26 = vpop.f32.mrf.mxu2 }
  0x93   :  { %v210_v9 = vadd.f32 %v4059_v53, %v4607_v26 }
  0x95   :  { %v426_v36 = vmul.f32 %v4658_v44, %v210_v9  ;;  %v494_v37 = vmul.f32 %v4661_v45, %v210_v9 }
  0x98   :  { %v170_v18 = vpop.f32.mrf.mxu1 }
  0x99   :  { %v171_v33 = vadd.f32 %v4058_v23, %v170_v18 }
  0x9a   :  { %v4617_v29 = vpop.f32.mrf.mxu2 }
  0x9b   :  { %v213_v6 = vadd.f32 %v4059_v53, %v4617_v29 }
  0x9d   :  { %v337_v17 = vmul.f32 %v4650_v41, %v213_v6  ;;  %v293_v18 = vmul.f32 %v4653_v42, %v213_v6 }
  0xa0   :  { %v173_v19 = vpop.f32.mrf.mxu1 }
  0xa1   :  { %v174_v31 = vadd.f32 %v4058_v23, %v173_v19  ;;  %v336_v19 = vmul.f32 %v4650_v41, %v210_v9 }
  0xa2   :  { %v215_v34 = vpop.f32.mrf.mxu2 }
  0xa3   :  { %v216_v63 = vadd.f32 %v4059_v53, %v215_v34  ;;  %v427_v34 = vmul.f32 %v4658_v44, %v213_v6 }
  0xa5   :  { %v338_v11 = vmul.f32 %v4650_v41, %v216_v63  ;;  %v294_v15 = vmul.f32 %v4653_v42, %v216_v63 }
  0xa8   :  { %v176_v20 = vpop.f32.mrf.mxu1 }
  0xa9   :  { %v177_v28 = vadd.f32 %v4058_v23, %v176_v20  ;;  %v292_v20 = vmul.f32 %v4653_v42, %v210_v9 }
  0xaa   :  { %v218_v43 = vpop.f32.mrf.mxu2 }
  0xab   :  { %v219_v58 = vadd.f32 %v4059_v53, %v218_v43  ;;  %v493_v43 = vmul.f32 %v4661_v45, %v207_v16 }
  0xad   :  { %v339_v7 = vmul.f32 %v4650_v41, %v219_v58  ;;  %v295_v8 = vmul.f32 %v4653_v42, %v219_v58  ;;  %v429_v29 = vmul.f32 %v4658_v44, %v219_v58  ;;  %v497_v30 = vmul.f32 %v4661_v45, %v219_v58 }
  0xb0   :  { %v179_v21 = vpop.f32.mrf.mxu1 }
  0xb1   :  { %v180_v27 = vadd.f32 %v4058_v23, %v179_v21  ;;  %v335_v21 = vmul.f32 %v4650_v41, %v207_v16 }
  0xb2   :  { %v221_v51 = vpop.f32.mrf.mxu2 }
  0xb3   :  { %v222_v56 = vadd.f32 %v4059_v53, %v221_v51 }
  0xb5   :  { %v340_v0 = vmul.f32 %v4650_v41, %v222_v56  ;;  %v296_v5 = vmul.f32 %v4653_v42, %v222_v56 }
  0xb8   :  { %v182_v24 = vpop.f32.mrf.mxu1 }
  0xb9   :  { %v183_v25 = vadd.f32 %v4058_v23, %v182_v24  ;;  %v291_v23 = vmul.f32 %v4653_v42, %v207_v16 }
  0xba   :  { %v224_v52 = vpop.f32.mrf.mxu2 }
  0xbb   :  { %3742 = vmatpush.xpose.msk.msra.mxu3 %vm90_vm2, %v183_v25  ;;  %3751 = vmatpush.xpose.msk.msrb.mxu0 %vm90_vm2, %v183_v25  ;;  %v225_v54 = vadd.f32 %v4059_v53, %v224_v52 }
  0xbc   :  { %3762 = vmatpush.xpose.msk.msrb.mxu1 %vm90_vm2, %v183_v25  ;;  %3772 = vmatpush.xpose.msk.msrb.mxu2 %vm90_vm2, %v183_v25 }
  0xbd   :  { %v341_v61 = vmul.f32 %v4650_v41, %v225_v54  ;;  %v297_v62 = vmul.f32 %v4653_v42, %v225_v54  ;;  %v431_v25 = vmul.f32 %v4658_v44, %v225_v54  ;;  %v499_v26 = vmul.f32 %v4661_v45, %v225_v54 }
  0xbf   :  { %3743 = vmatpush.xpose.msk.msra.mxu3 %vm90_vm2, %v180_v27  ;;  %3752 = vmatpush.xpose.msk.msrb.mxu0 %vm90_vm2, %v180_v27 }
  0xc0   :  { %3763 = vmatpush.xpose.msk.msrb.mxu1 %vm90_vm2, %v180_v27  ;;  %3773 = vmatpush.xpose.msk.msrb.mxu2 %vm90_vm2, %v180_v27  ;;  %v430_v27 = vmul.f32 %v4658_v44, %v222_v56 }
  0xc2   :  { %v227_v55 = vpop.f32.mrf.mxu2 }
  0xc3   :  { %3744 = vmatpush.xpose.msk.msra.mxu3 %vm90_vm2, %v177_v28  ;;  %3753 = vmatpush.xpose.msk.msrb.mxu0 %vm90_vm2, %v177_v28  ;;  %v228_v57 = vadd.f32 %v4059_v53, %v227_v55 }
  0xc4   :  { %3764 = vmatpush.xpose.msk.msrb.mxu1 %vm90_vm2, %v177_v28  ;;  %3774 = vmatpush.xpose.msk.msrb.mxu2 %vm90_vm2, %v177_v28  ;;  %v498_v28 = vmul.f32 %v4661_v45, %v222_v56 }
  0xc5   :  { %v342_v59 = vmul.f32 %v4650_v41, %v228_v57  ;;  %v298_v60 = vmul.f32 %v4653_v42, %v228_v57  ;;  %v432_v22 = vmul.f32 %v4658_v44, %v228_v57  ;;  %v500_v24 = vmul.f32 %v4661_v45, %v228_v57 }
  0xc7   :  { %3745 = vmatpush.xpose.msk.msra.mxu3 %vm90_vm2, %v174_v31  ;;  %3754 = vmatpush.xpose.msk.msrb.mxu0 %vm90_vm2, %v174_v31 }
  0xc8   :  { %3765 = vmatpush.xpose.msk.msrb.mxu1 %vm90_vm2, %v174_v31  ;;  %3775 = vmatpush.xpose.msk.msrb.mxu2 %vm90_vm2, %v174_v31  ;;  %v428_v31 = vmul.f32 %v4658_v44, %v216_v63 }
  0xcb   :  { %3746 = vmatpush.xpose.msk.msra.mxu3 %vm90_vm2, %v171_v33  ;;  %3755 = vmatpush.xpose.msk.msrb.mxu0 %vm90_vm2, %v171_v33 }
  0xcc   :  { %3766 = vmatpush.xpose.msk.msrb.mxu1 %vm90_vm2, %v171_v33  ;;  %3776 = vmatpush.xpose.msk.msrb.mxu2 %vm90_vm2, %v171_v33  ;;  %v496_v33 = vmul.f32 %v4661_v45, %v216_v63 }
  0xcf   :  { %3747 = vmatpush.xpose.msk.msra.mxu3 %vm90_vm2, %v168_v35  ;;  %3756 = vmatpush.xpose.msk.msrb.mxu0 %vm90_vm2, %v168_v35 }
  0xd0   :  { %3767 = vmatpush.xpose.msk.msrb.mxu1 %vm90_vm2, %v168_v35  ;;  %3777 = vmatpush.xpose.msk.msrb.mxu2 %vm90_vm2, %v168_v35  ;;  %v495_v35 = vmul.f32 %v4661_v45, %v213_v6 }
  0xd3   :  { %3748 = vmatpush.xpose.msk.msra.mxu3 %vm90_vm2, %v165_v38  ;;  %3757 = vmatpush.xpose.msk.msrb.mxu0 %vm90_vm2, %v165_v38 }
  0xd4   :  { %3768 = vmatpush.xpose.msk.msrb.mxu1 %vm90_vm2, %v165_v38  ;;  %3778 = vmatpush.xpose.msk.msrb.mxu2 %vm90_vm2, %v165_v38  ;;  %v425_v38 = vmul.f32 %v4658_v44, %v207_v16 }
  0xd7   :  { %3749 = vmatpush.xpose.msk.msra.mxu3 %vm90_vm2, %v162_v46  ;;  %3758 = vmatpush.xpose.msk.msrb.mxu0 %vm90_vm2, %v162_v46 }
  0xd8   :  { %3769 = vmatpush.xpose.msk.msrb.mxu1 %vm90_vm2, %v162_v46  ;;  %3779 = vmatpush.xpose.msk.msrb.mxu2 %vm90_vm2, %v162_v46 }
  0xda   :  { %3759 = vmatmul.msk.f32.vlgmr.msrb.gmra.mxu0 %vm90_vm2, %v4666_v47  ;;  %3750 = vmatmul.msk.f32.vlgmr.msra.gmra.mxu3 %vm90_vm2, %v4670_v48 }
  0xdb   :  { %3770 = vmatmul.msk.f32.vlgmr.msrb.gmra.mxu1 %vm90_vm2, %v4676_v49  ;;  %3780 = vmatmul.msk.f32.vlgmr.msrb.gmra.mxu2 %vm90_vm2, %v4680_v50 }
  0xdc   :  { %354 = vmatpush.msrb.mxu3 %v342_v59  ;;  %377 = vmatpush.msra.mxu0 %v298_v60 }
  0xde   :  { %355 = vmatpush.msrb.mxu3 %v341_v61  ;;  %378 = vmatpush.msra.mxu0 %v297_v62 }
  0xe0   :  { %356 = vmatpush.msrb.mxu3 %v340_v0  ;;  %379 = vmatpush.msra.mxu0 %v296_v5 }
  0xe2   :  { %357 = vmatpush.msrb.mxu3 %v339_v7  ;;  %380 = vmatpush.msra.mxu0 %v295_v8 }
  0xe4   :  { %358 = vmatpush.msrb.mxu3 %v338_v11  ;;  %381 = vmatpush.msra.mxu0 %v294_v15 }
  0xe6   :  { %359 = vmatpush.msrb.mxu3 %v337_v17  ;;  %382 = vmatpush.msra.mxu0 %v293_v18 }
  0xe8   :  { %360 = vmatpush.msrb.mxu3 %v336_v19  ;;  %383 = vmatpush.msra.mxu0 %v292_v20 }
  0xea   :  { %361 = vmatpush.msrb.mxu3 %v335_v21  ;;  %384 = vmatpush.msra.mxu0 %v291_v23 }
  0xec   :  { %444 = vmatpush.msra.mxu3 %v432_v22  ;;  %512 = vmatpush.msrb.mxu0 %v500_v24 }
  0xee   :  { %445 = vmatpush.msra.mxu3 %v431_v25  ;;  %513 = vmatpush.msrb.mxu0 %v499_v26 }
  0xf0   :  { %446 = vmatpush.msra.mxu3 %v430_v27  ;;  %514 = vmatpush.msrb.mxu0 %v498_v28 }
  0xf2   :  { %447 = vmatpush.msra.mxu3 %v429_v29  ;;  %515 = vmatpush.msrb.mxu0 %v497_v30 }
  0xf4   :  { %448 = vmatpush.msra.mxu3 %v428_v31  ;;  %516 = vmatpush.msrb.mxu0 %v496_v33 }
  0xf6   :  { %449 = vmatpush.msra.mxu3 %v427_v34  ;;  %517 = vmatpush.msrb.mxu0 %v495_v35 }
  0xf8   :  { %450 = vmatpush.msra.mxu3 %v426_v36  ;;  %518 = vmatpush.msrb.mxu0 %v494_v37 }
  0xfa   :  { %451 = vmatpush.msra.mxu3 %v425_v38  ;;  %519 = vmatpush.msrb.mxu0 %v493_v43  ;;  %v33_v43 = vld [vmem:[%s6450_s1 + $0x58] sm:$0xff] }
 0x157   :  { %v320_v46 = vpop.f32.mrf.mxu0 }
 0x158   :  { %v410_v51 = vpop.f32.mrf.mxu1  ;;  %v323_v52 = vmul.f32 0.17677669, %v320_v46  ;;  %v32_v46 = vld [vmem:[%s6450_s1 + $0x50] sm:$0xff] }
 0x159   :  { %v413_v53 = vmul.f32 0.17677669, %v410_v51  ;;  %v31_v51 = vld [vmem:[%s6450_s1 + $0x48] sm:$0xff] }
 0x15a   :  { %v324_v54 = vsel %vm279_vm13, %v323_v52, -inf }
 0x15b   :  { %v414_v55 = vsel %vm279_vm13, %v413_v53, -inf  ;;  %325 = vmax.xlane.f32.xlu0 %v324_v54 }
 0x15c   :  { %415 = vmax.xlane.f32.xlu1 %v414_v55 }
 0x15d   :  { %v275_v56 = vpop.f32.mrf.mxu3 }
 0x15e   :  { %v278_v57 = vmul.f32 0.17677669, %v275_v56  ;;  %v478_v58 = vpop.f32.mrf.mxu2 }
 0x15f   :  { %v481_v59 = vmul.f32 0.17677669, %v478_v58 }
 0x160   :  { %v280_v60 = vsel %vm279_vm13, %v278_v57, -inf }
 0x161   :  { %v482_v61 = vsel %vm279_vm13, %v481_v59, -inf }
 0x163   :  { %281 = vmax.xlane.f32.xlu0 %v280_v60 }
 0x164   :  { %483 = vmax.xlane.f32.xlu1 %v482_v61  ;;  %v37_v61 = vld [vmem:[%s6450_s1 + $0x78] sm:$0xff] }
 0x165   :  { %613 = vmatpush.msra.mxu2 %v37_v61 }
 0x1ce   :  { %v326_v62 = vpop.xlane.xlu0 %325 }
 0x1cf   :  { %v416_v63 = vpop.xlane.xlu1 %415  ;;  %v327_v0 = vsub.f32 %v323_v52, %v326_v62  ;;  %v30_v52 = vld [vmem:[%s6450_s1 + $0x40] sm:$0xff]  ;;  %v41_v62 = vld [vmem:[%s6450_s1 + $0x98] sm:$0xff] }
 0x1d0   :  { %v417_v5 = vsub.f32 %v413_v53, %v416_v63  ;;  %v36_v63 = vld [vmem:[%s6450_s1 + $0x70] sm:$0xff] }
 0x1d1   :  { %v328_v6 = vmul.f32 1.442695, %v327_v0  ;;  %v40_v0 = vld [vmem:[%s6450_s1 + $0x90] sm:$0xff]  ;;  %614 = vmatpush.msra.mxu2 %v36_v63 }
 0x1d2   :  { %v418_v7 = vmul.f32 1.442695, %v417_v5  ;;  %v35_v5 = vld [vmem:[%s6450_s1 + $0x68] sm:$0xff] }
 0x1d3   :  { %4066 = vpow2.f32 %v328_v6  ;;  %v39_v6 = vld [vmem:[%s6450_s1 + $0x88] sm:$0xff]  ;;  %615 = vmatpush.msra.mxu2 %v35_v5 }
 0x1d4   :  { %4068 = vpow2.f32 %v418_v7  ;;  %v34_v7 = vld [vmem:[%s6450_s1 + $0x60] sm:$0xff] }
 0x1d5   :  { %616 = vmatpush.msra.mxu2 %v34_v7 }
 0x1d6   :  { %v282_v8 = vpop.xlane.xlu0 %281 }
 0x1d7   :  { %v484_v9 = vpop.xlane.xlu1 %483  ;;  %v283_v11 = vsub.f32 %v278_v57, %v282_v8  ;;  %v38_v8 = vld [vmem:[%s6450_s1 + $0x80] sm:$0xff] }
 0x1d8   :  { %v485_v15 = vsub.f32 %v481_v59, %v484_v9  ;;  %v25_v9 = vld [vmem:[%s6450_s1 + $0x18] sm:$0x7] }
 0x1d9   :  { %v4067_v16 = vpop.eup %4066  ;;  %v284_v17 = vmul.f32 1.442695, %v283_v11  ;;  %3783 = vmatpush.msk.msra.mxu1 %vm140_vm0, %v25_v9  ;;  %v4061_v11 = vld [vmem:[%s6450_s1 + $0xf8] ss:$0 sm:$0xff] }
 0x1da   :  { %v4069_v18 = vpop.eup %4068  ;;  %v486_v19 = vmul.f32 1.442695, %v485_v15  ;;  %v330_v20 = vsel %vm279_vm13, %v4067_v16, 0.0  ;;  %3784 = vmatmul.msk.f32.vlgmr.msra.gmra.mxu1 %vm115_vm1, %v4508_v1 }
 0x1db   :  { %4070 = vpow2.f32 %v284_v17  ;;  %331 = vadd.xlane.f32.xlu2 %v330_v20  ;;  %v420_v21 = vsel %vm279_vm13, %v4069_v18, 0.0 }
 0x1dc   :  { %4072 = vpow2.f32 %v486_v19  ;;  %421 = vadd.xlane.f32.xlu0 %v420_v21 }
 0x1e1   :  { %v4071_v23 = vpop.eup %4070 }
 0x1e2   :  { %v4073_v22 = vpop.eup %4072  ;;  %v286_v24 = vsel %vm279_vm13, %v4071_v23, 0.0  ;;  %3785 = vmatmul.msk.f32.gmra.mxu1 %vm115_vm1, %v4516_v2  ;;  %v4062_v2 = vld [vmem:[%s6450_s1 + $0x110] ss:$0 sm:$0xff] }
 0x1e3   :  { %v488_v25 = vsel %vm279_vm13, %v4073_v22, 0.0  ;;  %287 = vadd.xlane.f32.xlu2 %v286_v24 }
 0x1e4   :  { %489 = vadd.xlane.f32.xlu1 %v488_v25 }
 0x1ea   :  { %3786 = vmatmul.msk.f32.gmra.mxu1 %vm115_vm1, %v4523_v3 }
 0x1f2   :  { %3787 = vmatmul.msk.f32.gmra.mxu1 %vm115_vm1, %v4530_v4 }
 0x1fa   :  { %3788 = vmatmul.msk.f32.gmra.mxu1 %vm115_vm1, %v4555_v10  ;;  %v4064_v10 = vld [vmem:[%s6450_s1 + $0x100] ss:$0 sm:$0xff] }
 0x202   :  { %3789 = vmatmul.msk.f32.gmra.mxu1 %vm115_vm1, %v4568_v12 }
 0x20a   :  { %3790 = vmatmul.msk.f32.gmra.mxu1 %vm115_vm1, %v4577_v13  ;;  %v4063_v13 = vld [vmem:[%s6450_s1 + $0x108] ss:$0 sm:$0xff] }
 0x212   :  { %3791 = vmatmul.msk.f32.gmra.mxu1 %vm115_vm1, %v4586_v14 }
 0x24e   :  { %v332_v26 = vpop.xlane.xlu2 %331 }
 0x24f   :  { %4074 = vrcp.f32 %v332_v26  ;;  %v422_v27 = vpop.xlane.xlu0 %421 }
 0x250   :  { %4076 = vrcp.f32 %v422_v27 }
 0x255   :  { %v4075_v28 = vpop.eup %4074 }
 0x256   :  { %v288_v29 = vpop.xlane.xlu2 %287  ;;  %v334_v30 = vmul.f32 %v4075_v28, %v4067_v16  ;;  %v4077_v33 = vpop.eup %4076 }
 0x257   :  { %4078 = vrcp.f32 %v288_v29  ;;  %v490_v31 = vpop.xlane.xlu1 %489  ;;  %v424_v35 = vmul.f32 %v4077_v33, %v4069_v18  ;;  %v573_v1 = vpop.f32.mrf.mxu1 }
 0x258   :  { %3760 = vmatmul.msk.f32.vlgmr.msrb.gmra.mxu3 %vm279_vm13, %v334_v30  ;;  %4080 = vrcp.f32 %v490_v31  ;;  %v4817_v21 = vadd.f32 %v4064_v10, %v573_v1 }
 0x259   :  { %542 = vmatpush.msrb.mxu3 %v33_v43 }
 0x25a   :  { %v642_v25 = vmul.f32 %v4653_v42, %v4817_v21  ;;  %v816_v26 = vmul.f32 %v4650_v41, %v4817_v21  ;;  %v1116_v5 = vmul.f32 %v4658_v44, %v4817_v21 }
 0x25b   :  { %543 = vmatpush.msrb.mxu3 %v32_v46 }
 0x25d   :  { %v4079_v34 = vpop.eup %4078  ;;  %544 = vmatpush.msrb.mxu3 %v31_v51 }
 0x25e   :  { %v290_v36 = vmul.f32 %v4079_v34, %v4071_v23  ;;  %v4081_v37 = vpop.eup %4080 }
 0x25f   :  { %v492_v38 = vmul.f32 %v4081_v37, %v4073_v22  ;;  %545 = vmatpush.msrb.mxu3 %v30_v52  ;;  %v576_v3 = vpop.f32.mrf.mxu1 }
 0x260   :  { %3761 = vmatmul.msk.f32.vlgmr.msra.gmra.mxu0 %vm279_vm13, %v290_v36  ;;  %3771 = vmatmul.msk.f32.vlgmr.msra.gmra.mxu3 %vm279_vm13, %v424_v35  ;;  %v4830_v28 = vadd.f32 %v4064_v10, %v576_v3 }
 0x261   :  { %634 = vmatpush.msra.mxu0 %v41_v62 }
 0x262   :  { %v643_v29 = vmul.f32 %v4653_v42, %v4830_v28  ;;  %v817_v30 = vmul.f32 %v4650_v41, %v4830_v28 }
 0x263   :  { %635 = vmatpush.msra.mxu0 %v40_v0 }
 0x265   :  { %636 = vmatpush.msra.mxu0 %v39_v6  ;;  %v1117_v6 = vmul.f32 %v4658_v44, %v4830_v28 }
 0x267   :  { %637 = vmatpush.msra.mxu0 %v38_v8  ;;  %v579_v24 = vpop.f32.mrf.mxu1 }
 0x268   :  { %3781 = vmatmul.msk.f32.vlgmr.msrb.gmra.mxu0 %vm279_vm13, %v492_v38  ;;  %v4838_v33 = vadd.f32 %v4064_v10, %v579_v24 }
 0x26a   :  { %v644_v34 = vmul.f32 %v4653_v42, %v4838_v33  ;;  %v818_v35 = vmul.f32 %v4650_v41, %v4838_v33  ;;  %v1118_v7 = vmul.f32 %v4658_v44, %v4838_v33 }
 0x26f   :  { %v582_v31 = vpop.f32.mrf.mxu1 }
 0x270   :  { %v4846_v37 = vadd.f32 %v4064_v10, %v582_v31 }
 0x272   :  { %v645_v38 = vmul.f32 %v4653_v42, %v4846_v37  ;;  %v819_v43 = vmul.f32 %v4650_v41, %v4846_v37  ;;  %v1119_v8 = vmul.f32 %v4658_v44, %v4846_v37 }
 0x277   :  { %v585_v36 = vpop.f32.mrf.mxu1 }
 0x278   :  { %v4854_v46 = vadd.f32 %v4064_v10, %v585_v36 }
 0x27a   :  { %v646_v52 = vmul.f32 %v4653_v42, %v4854_v46  ;;  %v1120_v9 = vmul.f32 %v4658_v44, %v4854_v46 }
 0x27f   :  { %v588_v51 = vpop.f32.mrf.mxu1 }
 0x2db   :  { %v363_v53 = vpop.f32.mrf.mxu3 }
 0x2dd   :  { %v386_v54 = vpop.f32.mrf.mxu0 }
 0x2de   :  { %v387_v55 = vadd.f32 %v386_v54, %v363_v53  ;;  %v820_v53 = vmul.f32 %v4650_v41, %v4854_v46  ;;  %v4862_v54 = vadd.f32 %v4064_v10, %v588_v51 }
 0x2e3   :  { %v453_v56 = vpop.f32.mrf.mxu3 }
 0x2e4   :  { %v456_v57 = vadd.f32 %v453_v56, %v387_v55  ;;  %v591_v55 = vpop.f32.mrf.mxu1  ;;  %v647_v56 = vmul.f32 %v4653_v42, %v4862_v54 }
 0x2e5   :  { %v521_v58 = vpop.f32.mrf.mxu0 }
 0x2e6   :  { %v524_v59 = vadd.f32 %v521_v58, %v456_v57  ;;  %v821_v57 = vmul.f32 %v4650_v41, %v4862_v54  ;;  %v4870_v58 = vadd.f32 %v4064_v10, %v591_v55 }
 0x2e8   :  { %v525_v60 = vadd.f32 %v524_v59, %v4645_v39  ;;  %v648_v59 = vmul.f32 %v4653_v42, %v4870_v58 }
 0x2ea   :  { %3782 = vmatmul.msk.f32.vlgmr.msrb.gmra.mxu3 %vm90_vm2, %v525_v60 }
 0x2ec   :  { %v594_v61 = vpop.f32.mrf.mxu1 }
 0x2ed   :  { %v4878_v62 = vadd.f32 %v4064_v10, %v594_v61 }
 0x2ef   :  { %v649_v63 = vmul.f32 %v4653_v42, %v4878_v62  ;;  %v823_v0 = vmul.f32 %v4650_v41, %v4878_v62 }
 0x36d   :  { %v547_v15 = vpop.f32.mrf.mxu3 }
 0x36e   :  { %v548_v16 = vadd.f32 %v4061_v11, %v547_v15  ;;  %v1121_v11 = vmul.f32 %v4658_v44, %v4862_v54  ;;  %v1122_v15 = vmul.f32 %v4658_v44, %v4870_v58 }
 0x370   :  { %v550_v17 = vmax.f32 %v548_v16, 0.0  ;;  %v1123_v16 = vmul.f32 %v4658_v44, %v4878_v62 }
 0x372   :  { %v551_v18 = vadd.f32 %v550_v17, %v525_v60  ;;  %v822_v60 = vmul.f32 %v4650_v41, %v4870_v58 }
 0x374   :  { %3792 = vmatmul.msk.f32.vlgmr.msra.gmra.mxu2 %vm90_vm2, %v551_v18  ;;  %3793 = vmatmul.msk.f32.vlgmr.msra.gmra.mxu0 %vm90_vm2, %v551_v18 }
 0x3f1   :  { %v639_v4 = vpop.f32.mrf.mxu0 }
 0x3f2   :  { %v640_v19 = vadd.f32 %v4062_v2, %v639_v4 }
 0x3f4   :  { %v985_v12 = vmul.f32 %v4650_v41, %v640_v19  ;;  %v815_v20 = vmul.f32 %v4653_v42, %v640_v19  ;;  %v1528_v14 = vmul.f32 %v4661_v45, %v640_v19  ;;  %v1285_v27 = vmul.f32 %v4658_v44, %v640_v19 }
 0x3f6   :  { %1025 = vmatpush.msrb.mxu0 %v985_v12  ;;  %1090 = vmatpush.msrb.mxu1 %v815_v20 }
 0x3f7   :  { %v618_v23 = vpop.f32.mrf.mxu2 }
 0x3f8   :  { %1568 = vmatpush.msra.mxu1 %v1528_v14  ;;  %v619_v22 = vadd.f32 %v4063_v13, %v618_v23 }
 0x3fa   :  { %3794 = vmatpush.xpose.msk.msra.mxu3 %vm90_vm2, %v619_v22  ;;  %3803 = vmatpush.xpose.msk.msrb.mxu2 %vm90_vm2, %v619_v22 }
 0x3fb   :  { %3845 = vmatpush.xpose.msk.msra.mxu0 %vm90_vm2, %v619_v22 }
 0x3fd   :  { %3795 = vmatmul.msk.f32.vlgmr.msra.gmra.mxu3 %vm90_vm2, %v642_v25  ;;  %3804 = vmatmul.msk.f32.vlgmr.msrb.gmra.mxu2 %vm90_vm2, %v816_v26 }
 0x3fe   :  { %3828 = vmatpush.xpose.msk.msrb.mxu3 %vm90_vm2, %v619_v22  ;;  %1325 = vmatpush.msra.mxu2 %v1285_v27 }
 0x405   :  { %3796 = vmatmul.msk.f32.gmra.mxu3 %vm90_vm2, %v643_v29  ;;  %3805 = vmatmul.msk.f32.gmra.mxu2 %vm90_vm2, %v817_v30 }
 0x40d   :  { %3797 = vmatmul.msk.f32.gmra.mxu3 %vm90_vm2, %v644_v34  ;;  %3806 = vmatmul.msk.f32.gmra.mxu2 %vm90_vm2, %v818_v35 }
 0x415   :  { %3798 = vmatmul.msk.f32.gmra.mxu3 %vm90_vm2, %v645_v38  ;;  %3807 = vmatmul.msk.f32.gmra.mxu2 %vm90_vm2, %v819_v43 }
 0x41d   :  { %3799 = vmatmul.msk.f32.gmra.mxu3 %vm90_vm2, %v646_v52  ;;  %3808 = vmatmul.msk.f32.gmra.mxu2 %vm90_vm2, %v820_v53 }
 0x425   :  { %3800 = vmatmul.msk.f32.gmra.mxu3 %vm90_vm2, %v647_v56  ;;  %3809 = vmatmul.msk.f32.gmra.mxu2 %vm90_vm2, %v821_v57 }
 0x42d   :  { %3801 = vmatmul.msk.f32.gmra.mxu3 %vm90_vm2, %v648_v59  ;;  %3810 = vmatmul.msk.f32.gmra.mxu2 %vm90_vm2, %v822_v60 }
 0x435   :  { %3802 = vmatmul.msk.f32.gmra.mxu3 %vm90_vm2, %v649_v63  ;;  %3811 = vmatmul.msk.f32.gmra.mxu2 %vm90_vm2, %v823_v0 }
 0x43d   :  { %3829 = vmatmul.msk.f32.vlgmr.msrb.gmra.mxu3 %vm90_vm2, %v1116_v5 }
 0x445   :  { %3830 = vmatmul.msk.f32.gmra.mxu3 %vm90_vm2, %v1117_v6 }
 0x44d   :  { %3831 = vmatmul.msk.f32.gmra.mxu3 %vm90_vm2, %v1118_v7 }
 0x455   :  { %3832 = vmatmul.msk.f32.gmra.mxu3 %vm90_vm2, %v1119_v8 }
 0x45d   :  { %3833 = vmatmul.msk.f32.gmra.mxu3 %vm90_vm2, %v1120_v9 }
 0x465   :  { %3834 = vmatmul.msk.f32.gmra.mxu3 %vm90_vm2, %v1121_v11 }
 0x46d   :  { %3835 = vmatmul.msk.f32.gmra.mxu3 %vm90_vm2, %v1122_v15 }
 0x475   :  { %3836 = vmatmul.msk.f32.gmra.mxu3 %vm90_vm2, %v1123_v16 }
 0x480   :  { %v865_v17 = vpop.f32.mrf.mxu2  ;;  %v694_v38 = vpop.f32.mrf.mxu3 }
 0x481   :  { %v889_v18 = vmul.f32 0.17677669, %v865_v17 }
 0x483   :  { %v897_v1 = vsel %vm726_vm14, %v889_v18, -inf }
 0x484   :  { %898 = vmax.xlane.f32.xlu2 %v897_v1 }
 0x488   :  { %v868_v2 = vpop.f32.mrf.mxu2  ;;  %v697_v52 = vpop.f32.mrf.mxu3 }
 0x489   :  { %v890_v3 = vmul.f32 0.17677669, %v868_v2 }
 0x48b   :  { %v900_v4 = vsel %vm726_vm14, %v890_v3, -inf }
 0x48c   :  { %901 = vmax.xlane.f32.xlu0 %v900_v4 }
 0x490   :  { %v871_v10 = vpop.f32.mrf.mxu2  ;;  %v700_v61 = vpop.f32.mrf.mxu3 }
 0x491   :  { %v891_v19 = vmul.f32 0.17677669, %v871_v10 }
 0x493   :  { %v903_v12 = vsel %vm726_vm14, %v891_v19, -inf }
 0x494   :  { %904 = vmax.xlane.f32.xlu1 %v903_v12 }
 0x498   :  { %v874_v20 = vpop.f32.mrf.mxu2  ;;  %v703_v8 = vpop.f32.mrf.mxu3 }
 0x499   :  { %v892_v13 = vmul.f32 0.17677669, %v874_v20 }
 0x49b   :  { %v906_v14 = vsel %vm726_vm14, %v892_v13, -inf }
 0x49c   :  { %907 = vmax.xlane.f32.xlu2 %v906_v14 }
 0x4a0   :  { %v877_v23 = vpop.f32.mrf.mxu2  ;;  %v706_v1 = vpop.f32.mrf.mxu3 }
 0x4a1   :  { %v893_v22 = vmul.f32 0.17677669, %v877_v23 }
 0x4a3   :  { %v909_v24 = vsel %vm726_vm14, %v893_v22, -inf }
 0x4a4   :  { %910 = vmax.xlane.f32.xlu0 %v909_v24 }
 0x4a8   :  { %v880_v25 = vpop.f32.mrf.mxu2 }
 0x4a9   :  { %v894_v26 = vmul.f32 0.17677669, %v880_v25 }
 0x4ab   :  { %v912_v27 = vsel %vm726_vm14, %v894_v26, -inf }
 0x4ac   :  { %913 = vmax.xlane.f32.xlu1 %v912_v27 }
 0x4b0   :  { %v883_v29 = vpop.f32.mrf.mxu2 }
 0x4b1   :  { %v895_v30 = vmul.f32 0.17677669, %v883_v29 }
 0x4b3   :  { %v915_v31 = vsel %vm726_vm14, %v895_v30, -inf }
 0x4b4   :  { %916 = vmax.xlane.f32.xlu2 %v915_v31 }
 0x4b8   :  { %v886_v34 = vpop.f32.mrf.mxu2 }
 0x4b9   :  { %v896_v35 = vmul.f32 0.17677669, %v886_v34 }
 0x4bb   :  { %v918_v36 = vsel %vm726_vm14, %v896_v35, -inf }
 0x4bc   :  { %919 = vmax.xlane.f32.xlu1 %v918_v36 }
 0x4f7   :  { %v899_v43 = vpop.xlane.xlu2 %898 }
 0x4f8   :  { %v921_v51 = vsub.f32 %v889_v18, %v899_v43 }
 0x4fa   :  { %v929_v53 = vmul.f32 1.442695, %v921_v51 }
 0x4fc   :  { %4082 = vpow2.f32 %v929_v53 }
 0x4ff   :  { %v902_v55 = vpop.xlane.xlu0 %901 }
 0x500   :  { %v922_v56 = vsub.f32 %v890_v3, %v902_v55 }
 0x502   :  { %v4918_v57 = vpop.eup %4082  ;;  %v931_v59 = vmul.f32 1.442695, %v922_v56  ;;  %v4950_v56 = vmul.f32 0.17677669, %v697_v52  ;;  %v4964_v52 = vmul.f32 0.17677669, %v706_v1 }
 0x503   :  { %v945_v60 = vsel %vm726_vm14, %v4918_v57, 0.0 }
 0x504   :  { %4084 = vpow2.f32 %v931_v59  ;;  %946 = vadd.xlane.f32.xlu0 %v945_v60  ;;  %v4952_v59 = vmul.f32 0.17677669, %v703_v8  ;;  %v730_v60 = vsel %vm726_vm14, %v4950_v56, -inf }
 0x507   :  { %v905_v63 = vpop.xlane.xlu1 %904 }
 0x508   :  { %v923_v0 = vsub.f32 %v891_v19, %v905_v63  ;;  %v736_v63 = vsel %vm726_vm14, %v4952_v59, -inf }
 0x50a   :  { %v4922_v5 = vpop.eup %4084  ;;  %v933_v6 = vmul.f32 1.442695, %v923_v0  ;;  %v4962_v0 = vmul.f32 0.17677669, %v700_v61 }
 0x50b   :  { %v948_v7 = vsel %vm726_vm14, %v4922_v5, 0.0 }
 0x50c   :  { %4086 = vpow2.f32 %v933_v6  ;;  %949 = vadd.xlane.f32.xlu2 %v948_v7  ;;  %v733_v8 = vsel %vm726_vm14, %v4962_v0, -inf }
 0x50f   :  { %v908_v9 = vpop.xlane.xlu2 %907 }
 0x510   :  { %v924_v11 = vsub.f32 %v892_v13, %v908_v9  ;;  %v709_v13 = vpop.f32.mrf.mxu3  ;;  %v739_v9 = vsel %vm726_vm14, %v4964_v52, -inf }
 0x512   :  { %v4926_v15 = vpop.eup %4086  ;;  %v935_v16 = vmul.f32 1.442695, %v924_v11 }
 0x513   :  { %v951_v17 = vsel %vm726_vm14, %v4926_v15, 0.0 }
 0x514   :  { %4088 = vpow2.f32 %v935_v16  ;;  %952 = vadd.xlane.f32.xlu0 %v951_v17  ;;  %v4974_v16 = vmul.f32 0.17677669, %v709_v13 }
 0x517   :  { %v911_v18 = vpop.xlane.xlu0 %910 }
 0x518   :  { %v925_v2 = vsub.f32 %v893_v22, %v911_v18  ;;  %v712_v31 = vpop.f32.mrf.mxu3  ;;  %v742_v18 = vsel %vm726_vm14, %v4974_v16, -inf }
 0x519   :  { %v4966_v6 = vmul.f32 0.17677669, %v712_v31 }
 0x51a   :  { %v4930_v3 = vpop.eup %4088  ;;  %v937_v4 = vmul.f32 1.442695, %v925_v2 }
 0x51b   :  { %v954_v10 = vsel %vm726_vm14, %v4930_v3, 0.0  ;;  %v745_v11 = vsel %vm726_vm14, %v4966_v6, -inf }
 0x51c   :  { %4090 = vpow2.f32 %v937_v4  ;;  %955 = vadd.xlane.f32.xlu1 %v954_v10 }
 0x51f   :  { %v914_v19 = vpop.xlane.xlu1 %913 }
 0x520   :  { %v926_v12 = vsub.f32 %v894_v26, %v914_v19  ;;  %v4942_v26 = vmul.f32 0.17677669, %v694_v38  ;;  %v715_v55 = vpop.f32.mrf.mxu3 }
 0x521   :  { %v4982_v2 = vmul.f32 0.17677669, %v715_v55 }
 0x522   :  { %v4934_v20 = vpop.eup %4090  ;;  %v939_v14 = vmul.f32 1.442695, %v926_v12 }
 0x523   :  { %v957_v23 = vsel %vm726_vm14, %v4934_v20, 0.0  ;;  %v748_v4 = vsel %vm726_vm14, %v4982_v2, -inf }
 0x524   :  { %4092 = vpow2.f32 %v939_v14  ;;  %958 = vadd.xlane.f32.xlu2 %v957_v23 }
 0x527   :  { %v917_v22 = vpop.xlane.xlu2 %916 }
 0x528   :  { %v927_v24 = vsub.f32 %v895_v30, %v917_v22  ;;  %v727_v30 = vsel %vm726_vm14, %v4942_v26, -inf  ;;  %v1165_v7 = vpop.f32.mrf.mxu3 }
 0x529   :  { %v4976_v61 = vmul.f32 0.17677669, %v1165_v7  ;;  %v4356_v7 = vld [vmem:[%s6450_s1 + $0x8] sm:$0x7] }
 0x52a   :  { %v4938_v25 = vpop.eup %4092  ;;  %v941_v27 = vmul.f32 1.442695, %v927_v24 }
 0x52b   :  { %v960_v29 = vsel %vm726_vm14, %v4938_v25, 0.0  ;;  %v1197_v1 = vsel %vm726_vm14, %v4976_v61, -inf }
 0x52c   :  { %4094 = vpow2.f32 %v941_v27  ;;  %961 = vadd.xlane.f32.xlu0 %v960_v29 }
 0x52f   :  { %v920_v34 = vpop.xlane.xlu1 %919 }
 0x530   :  { %v928_v36 = vsub.f32 %v896_v35, %v920_v34  ;;  %v1168_v17 = vpop.f32.mrf.mxu3 }
 0x531   :  { %v4986_v19 = vmul.f32 0.17677669, %v1168_v17 }
 0x532   :  { %v4944_v43 = vpop.eup %4094  ;;  %v943_v51 = vmul.f32 1.442695, %v928_v36 }
 0x533   :  { %v963_v53 = vsel %vm726_vm14, %v4944_v43, 0.0  ;;  %v1200_v12 = vsel %vm726_vm14, %v4986_v19, -inf }
 0x534   :  { %4096 = vpow2.f32 %v943_v51  ;;  %964 = vadd.xlane.f32.xlu1 %v963_v53  ;;  %728 = vmax.xlane.f32.xlu0 %v727_v30 }
 0x538   :  { %v1171_v10 = vpop.f32.mrf.mxu3 }
 0x539   :  { %v4990_v14 = vmul.f32 0.17677669, %v1171_v10 }
 0x53a   :  { %v4954_v38 = vpop.eup %4096 }
 0x53b   :  { %v966_v35 = vsel %vm726_vm14, %v4954_v38, 0.0  ;;  %v1203_v23 = vsel %vm726_vm14, %v4990_v14, -inf }
 0x53c   :  { %967 = vadd.xlane.f32.xlu2 %v966_v35  ;;  %731 = vmax.xlane.f32.xlu1 %v730_v60 }
 0x53d   :  { %737 = vmax.xlane.f32.xlu0 %v736_v63 }
 0x540   :  { %v1174_v13 = vpop.f32.mrf.mxu3 }
 0x541   :  { %v4994_v22 = vmul.f32 0.17677669, %v1174_v13 }
 0x543   :  { %v1206_v27 = vsel %vm726_vm14, %v4994_v22, -inf }
 0x544   :  { %734 = vmax.xlane.f32.xlu2 %v733_v8  ;;  %740 = vmax.xlane.f32.xlu1 %v739_v9 }
 0x545   :  { %746 = vmax.xlane.f32.xlu0 %v745_v11 }
 0x548   :  { %v1177_v24 = vpop.f32.mrf.mxu3 }
 0x549   :  { %v4998_v29 = vmul.f32 0.17677669, %v1177_v24 }
 0x54b   :  { %v1209_v34 = vsel %vm726_vm14, %v4998_v29, -inf }
 0x54c   :  { %743 = vmax.xlane.f32.xlu2 %v742_v18 }
 0x54d   :  { %1198 = vmax.xlane.f32.xlu0 %v1197_v1 }
 0x550   :  { %v1180_v31 = vpop.f32.mrf.mxu3 }
 0x551   :  { %v5002_v36 = vmul.f32 0.17677669, %v1180_v31 }
 0x553   :  { %v1212_v53 = vsel %vm726_vm14, %v5002_v36, -inf }
 0x554   :  { %749 = vmax.xlane.f32.xlu2 %v748_v4 }
 0x558   :  { %v1183_v30 = vpop.f32.mrf.mxu3 }
 0x559   :  { %v5006_v35 = vmul.f32 0.17677669, %v1183_v30 }
 0x55b   :  { %v1215_v8 = vsel %vm726_vm14, %v5006_v35, -inf }
 0x55c   :  { %1201 = vmax.xlane.f32.xlu2 %v1200_v12 }
 0x564   :  { %1204 = vmax.xlane.f32.xlu2 %v1203_v23 }
 0x56c   :  { %1207 = vmax.xlane.f32.xlu2 %v1206_v27 }
 0x574   :  { %1210 = vmax.xlane.f32.xlu2 %v1209_v34 }
 0x577   :  { %v947_v51 = vpop.xlane.xlu0 %946 }
 0x578   :  { %4098 = vrcp.f32 %v947_v51 }
 0x57c   :  { %1213 = vmax.xlane.f32.xlu2 %v1212_v53 }
 0x57e   :  { %v4099_v55 = vpop.eup %4098 }
 0x57f   :  { %v977_v60 = vmul.f32 %v4099_v55, %v4918_v57  ;;  %v950_v63 = vpop.xlane.xlu2 %949 }
 0x580   :  { %4100 = vrcp.f32 %v950_v63 }
 0x581   :  { %3812 = vmatmul.msk.f32.vlgmr.msrb.gmra.mxu0 %vm726_vm14, %v977_v60 }
 0x582   :  { %3879 = vmatpush.msk.msrb.mxu0 %vm140_vm0, %v4356_v7 }
 0x584   :  { %1216 = vmax.xlane.f32.xlu2 %v1215_v8 }
 0x586   :  { %v4101_v9 = vpop.eup %4100 }
 0x587   :  { %v953_v11 = vpop.xlane.xlu0 %952  ;;  %v978_v17 = vmul.f32 %v4101_v9, %v4922_v5 }
 0x588   :  { %4102 = vrcp.f32 %v953_v11 }
 0x589   :  { %3813 = vmatmul.msk.f32.gmra.mxu0 %vm726_vm14, %v978_v17 }
 0x58e   :  { %v4103_v57 = vpop.eup %4102 }
 0x58f   :  { %v956_v18 = vpop.xlane.xlu1 %955  ;;  %v979_v1 = vmul.f32 %v4103_v57, %v4926_v15 }
 0x590   :  { %4104 = vrcp.f32 %v956_v18 }
 0x591   :  { %3814 = vmatmul.msk.f32.gmra.mxu0 %vm726_vm14, %v979_v1 }
 0x596   :  { %v4105_v4 = vpop.eup %4104 }
 0x597   :  { %v959_v10 = vpop.xlane.xlu2 %958  ;;  %v980_v12 = vmul.f32 %v4105_v4, %v4930_v3 }
 0x598   :  { %4106 = vrcp.f32 %v959_v10 }
 0x599   :  { %3815 = vmatmul.msk.f32.gmra.mxu0 %vm726_vm14, %v980_v12 }
 0x59e   :  { %v4107_v13 = vpop.eup %4106 }
 0x59f   :  { %v962_v23 = vpop.xlane.xlu0 %961  ;;  %v981_v5 = vmul.f32 %v4107_v13, %v4934_v20 }
 0x5a0   :  { %4108 = vrcp.f32 %v962_v23 }
 0x5a1   :  { %3816 = vmatmul.msk.f32.gmra.mxu0 %vm726_vm14, %v981_v5 }
 0x5a6   :  { %v4109_v24 = vpop.eup %4108 }
 0x5a7   :  { %v965_v27 = vpop.xlane.xlu1 %964  ;;  %v729_v15 = vpop.xlane.xlu0 %728  ;;  %v982_v31 = vmul.f32 %v4109_v24, %v4938_v25 }
 0x5a8   :  { %4110 = vrcp.f32 %v965_v27  ;;  %v751_v34 = vsub.f32 %v4942_v26, %v729_v15  ;;  %v1360_v15 = vmul.f32 %v4661_v45, %v4830_v28 }
 0x5a9   :  { %3817 = vmatmul.msk.f32.gmra.mxu0 %vm726_vm14, %v982_v31 }
 0x5aa   :  { %v759_v3 = vmul.f32 1.442695, %v751_v34 }
 0x5ac   :  { %4112 = vpow2.f32 %v759_v3 }
 0x5ae   :  { %v4111_v51 = vpop.eup %4110 }
 0x5af   :  { %v968_v53 = vpop.xlane.xlu2 %967  ;;  %v732_v30 = vpop.xlane.xlu1 %731  ;;  %v983_v20 = vmul.f32 %v4111_v51, %v4944_v43 }
 0x5b0   :  { %4114 = vrcp.f32 %v968_v53  ;;  %v752_v55 = vsub.f32 %v4950_v56, %v732_v30  ;;  %v738_v60 = vpop.xlane.xlu0 %737  ;;  %v1361_v30 = vmul.f32 %v4661_v45, %v4838_v33 }
 0x5b1   :  { %3818 = vmatmul.msk.f32.gmra.mxu0 %vm726_vm14, %v983_v20  ;;  %v754_v17 = vsub.f32 %v4952_v59, %v738_v60 }
 0x5b2   :  { %v5030_v63 = vpop.eup %4112  ;;  %v761_v25 = vmul.f32 1.442695, %v752_v55 }
 0x5b3   :  { %v775_v26 = vsel %vm726_vm14, %v5030_v63, 0.0  ;;  %v765_v1 = vmul.f32 1.442695, %v754_v17 }
 0x5b4   :  { %4116 = vpow2.f32 %v761_v25  ;;  %776 = vadd.xlane.f32.xlu1 %v775_v26 }
 0x5b6   :  { %v4115_v7 = vpop.eup %4114 }
 0x5b7   :  { %v735_v8 = vpop.xlane.xlu2 %734  ;;  %v984_v9 = vmul.f32 %v4115_v7, %v4954_v38  ;;  %v741_v4 = vpop.xlane.xlu1 %740  ;;  %v1359_v38 = vmul.f32 %v4661_v45, %v4817_v21 }
 0x5b8   :  { %v753_v43 = vsub.f32 %v4962_v0, %v735_v8  ;;  %v747_v11 = vpop.xlane.xlu0 %746  ;;  %v755_v59 = vsub.f32 %v4964_v52, %v741_v4  ;;  %v1362_v8 = vmul.f32 %v4661_v45, %v4846_v37 }
 0x5b9   :  { %3819 = vmatmul.msk.f32.gmra.mxu0 %vm726_vm14, %v984_v9 }
 0x5ba   :  { %v5037_v56 = vpop.eup %4116  ;;  %v763_v57 = vmul.f32 1.442695, %v753_v43  ;;  %v767_v24 = vmul.f32 1.442695, %v755_v59  ;;  %v1365_v59 = vmul.f32 %v4661_v45, %v4870_v58 }
 0x5bb   :  { %v778_v18 = vsel %vm726_vm14, %v5037_v56, 0.0 }
 0x5bc   :  { %4118 = vpow2.f32 %v763_v57  ;;  %779 = vadd.xlane.f32.xlu1 %v778_v18 }
 0x5bd   :  { %4120 = vpow2.f32 %v765_v1 }
 0x5bf   :  { %v744_v10 = vpop.xlane.xlu2 %743 }
 0x5c0   :  { %v1199_v0 = vpop.xlane.xlu0 %1198 }
 0x5c1   :  { %v1221_v12 = vsub.f32 %v4976_v61, %v1199_v0  ;;  %3846 = vmatmul.msk.f32.vlgmr.msra.gmra.mxu0 %vm90_vm2, %v1359_v38  ;;  %v756_v61 = vsub.f32 %v4974_v16, %v744_v10  ;;  %v757_v16 = vsub.f32 %v4966_v6, %v747_v11  ;;  %v1364_v38 = vmul.f32 %v4661_v45, %v4862_v54 }
 0x5c2   :  { %v5046_v13 = vpop.eup %4118 }
 0x5c3   :  { %v1229_v23 = vmul.f32 1.442695, %v1221_v12  ;;  %v781_v5 = vsel %vm726_vm14, %v5046_v13, 0.0  ;;  %v5053_v31 = vpop.eup %4120  ;;  %v769_v51 = vmul.f32 1.442695, %v756_v61 }
 0x5c4   :  { %782 = vadd.xlane.f32.xlu1 %v781_v5  ;;  %v784_v52 = vsel %vm726_vm14, %v5053_v31, 0.0  ;;  %v771_v26 = vmul.f32 1.442695, %v757_v16 }
 0x5c5   :  { %4122 = vpow2.f32 %v1229_v23  ;;  %v1366_v23 = vmul.f32 %v4661_v45, %v4878_v62 }
 0x5c6   :  { %4124 = vpow2.f32 %v767_v24 }
 0x5c7   :  { %v750_v27 = vpop.xlane.xlu2 %749  ;;  %4126 = vpow2.f32 %v769_v51 }
 0x5c8   :  { %v758_v6 = vsub.f32 %v4982_v2, %v750_v27 }
 0x5c9   :  { %3847 = vmatmul.msk.f32.gmra.mxu0 %vm90_vm2, %v1360_v15 }
 0x5ca   :  { %v773_v18 = vmul.f32 1.442695, %v758_v6 }
 0x5cb   :  { %v5057_v34 = vpop.eup %4122 }
 0x5cc   :  { %785 = vadd.xlane.f32.xlu1 %v784_v52  ;;  %v1245_v3 = vsel %vm726_vm14, %v5057_v34, 0.0  ;;  %v5065_v20 = vpop.eup %4124 }
 0x5cd   :  { %1246 = vadd.xlane.f32.xlu2 %v1245_v3  ;;  %v787_v25 = vsel %vm726_vm14, %v5065_v20, 0.0  ;;  %v5074_v9 = vpop.eup %4126 }
 0x5ce   :  { %v790_v17 = vsel %vm726_vm14, %v5074_v9, 0.0 }
 0x5cf   :  { %v1202_v53 = vpop.xlane.xlu2 %1201 }
 0x5d0   :  { %v1222_v55 = vsub.f32 %v4986_v19, %v1202_v53 }
 0x5d1   :  { %3848 = vmatmul.msk.f32.gmra.mxu0 %vm90_vm2, %v1361_v30 }
 0x5d2   :  { %v1231_v60 = vmul.f32 1.442695, %v1222_v55 }
 0x5d4   :  { %4128 = vpow2.f32 %v1231_v60  ;;  %788 = vadd.xlane.f32.xlu1 %v787_v25 }
 0x5d5   :  { %4130 = vpow2.f32 %v771_v26 }
 0x5d7   :  { %v1205_v7 = vpop.xlane.xlu2 %1204 }
 0x5d8   :  { %v1223_v19 = vsub.f32 %v4990_v14, %v1205_v7  ;;  %v1363_v14 = vmul.f32 %v4661_v45, %v4854_v46 }
 0x5d9   :  { %3849 = vmatmul.msk.f32.gmra.mxu0 %vm90_vm2, %v1362_v8 }
 0x5da   :  { %v5078_v43 = vpop.eup %4128  ;;  %v1233_v11 = vmul.f32 1.442695, %v1223_v19 }
 0x5db   :  { %v1248_v57 = vsel %vm726_vm14, %v5078_v43, 0.0  ;;  %v5087_v1 = vpop.eup %4130 }
 0x5dc   :  { %4132 = vpow2.f32 %v1233_v11  ;;  %791 = vadd.xlane.f32.xlu1 %v790_v17  ;;  %1249 = vadd.xlane.f32.xlu2 %v1248_v57  ;;  %v793_v2 = vsel %vm726_vm14, %v5087_v1, 0.0 }
 0x5dd   :  { %4134 = vpow2.f32 %v773_v18 }
 0x5df   :  { %v5117_v61 = vpop.xlane.xlu2 %1207 }
 0x5e1   :  { %3850 = vmatmul.msk.f32.gmra.mxu0 %vm90_vm2, %v1363_v14 }
 0x5e2   :  { %v5090_v4 = vpop.eup %4132 }
 0x5e3   :  { %v1251_v10 = vsel %vm726_vm14, %v5090_v4, 0.0  ;;  %v5098_v0 = vpop.eup %4134 }
 0x5e4   :  { %794 = vadd.xlane.f32.xlu1 %v793_v2  ;;  %1252 = vadd.xlane.f32.xlu2 %v1251_v10  ;;  %v796_v12 = vsel %vm726_vm14, %v5098_v0, 0.0 }
 0x5e7   :  { %v5121_v3 = vpop.xlane.xlu2 %1210 }
 0x5e9   :  { %3851 = vmatmul.msk.f32.gmra.mxu0 %vm90_vm2, %v1364_v38 }
 0x5ec   :  { %797 = vadd.xlane.f32.xlu1 %v796_v12 }
 0x5ef   :  { %v5125_v55 = vpop.xlane.xlu2 %1213 }
 0x5f1   :  { %3852 = vmatmul.msk.f32.gmra.mxu0 %vm90_vm2, %v1365_v59 }
 0x5f7   :  { %v5134_v6 = vpop.xlane.xlu2 %1216 }
 0x5f9   :  { %3853 = vmatmul.msk.f32.gmra.mxu0 %vm90_vm2, %v1366_v23 }
 0x5fe   :  { %v5109_v5 = vpop.f32.mrf.mxu0 }
 0x606   :  { %v5111_v24 = vpop.f32.mrf.mxu0 }
 0x60e   :  { %v5113_v27 = vpop.f32.mrf.mxu0 }
 0x616   :  { %v5115_v15 = vpop.f32.mrf.mxu0 }
 0x61e   :  { %v5119_v52 = vpop.f32.mrf.mxu0 }
 0x626   :  { %v5123_v51 = vpop.f32.mrf.mxu0 }
 0x627   :  { %v777_v53 = vpop.xlane.xlu1 %776 }
 0x628   :  { %4136 = vrcp.f32 %v777_v53 }
 0x62e   :  { %v4137_v30 = vpop.eup %4136  ;;  %v5127_v16 = vpop.f32.mrf.mxu0 }
 0x62f   :  { %v807_v60 = vmul.f32 %v4137_v30, %v5030_v63  ;;  %v780_v25 = vpop.xlane.xlu1 %779 }
 0x630   :  { %4138 = vrcp.f32 %v780_v25 }
 0x631   :  { %3820 = vmatmul.msk.f32.vlgmr.msrb.gmra.mxu1 %vm726_vm14, %v807_v60 }
 0x636   :  { %v4139_v26 = vpop.eup %4138  ;;  %v5131_v7 = vpop.f32.mrf.mxu0 }
 0x637   :  { %v783_v8 = vpop.xlane.xlu1 %782  ;;  %v808_v19 = vmul.f32 %v4139_v26, %v5037_v56 }
 0x638   :  { %4140 = vrcp.f32 %v783_v8 }
 0x639   :  { %3821 = vmatmul.msk.f32.gmra.mxu1 %vm726_vm14, %v808_v19 }
 0x63e   :  { %v4141_v11 = vpop.eup %4140  ;;  %v1408_v17 = vpop.f32.mrf.mxu0 }
 0x63f   :  { %v5137_v57 = vmul.f32 0.17677669, %v1408_v17  ;;  %v786_v63 = vpop.xlane.xlu1 %785  ;;  %v809_v18 = vmul.f32 %v4141_v11, %v5046_v13 }
 0x640   :  { %4142 = vrcp.f32 %v786_v63  ;;  %v1247_v14 = vpop.xlane.xlu2 %1246 }
 0x641   :  { %4144 = vrcp.f32 %v1247_v14  ;;  %3822 = vmatmul.msk.f32.gmra.mxu1 %vm726_vm14, %v809_v18  ;;  %v1440_v56 = vsel %vm726_vm14, %v5137_v57, -inf }
 0x642   :  { %1441 = vmax.xlane.f32.xlu0 %v1440_v56 }
 0x646   :  { %v4143_v2 = vpop.eup %4142  ;;  %v1411_v10 = vpop.f32.mrf.mxu0 }
 0x647   :  { %v4145_v38 = vpop.eup %4144  ;;  %v5143_v12 = vmul.f32 0.17677669, %v1411_v10  ;;  %v789_v59 = vpop.xlane.xlu1 %788  ;;  %v810_v23 = vmul.f32 %v4143_v2, %v5053_v31 }
 0x648   :  { %v1277_v53 = vmul.f32 %v4145_v38, %v5057_v34  ;;  %4146 = vrcp.f32 %v789_v59 }
 0x649   :  { %3823 = vmatmul.msk.f32.gmra.mxu1 %vm726_vm14, %v810_v23  ;;  %v1443_v13 = vsel %vm726_vm14, %v5143_v12, -inf }
 0x64a   :  { %3837 = vmatmul.msk.f32.vlgmr.msra.gmra.mxu2 %vm726_vm14, %v1277_v53  ;;  %1444 = vmax.xlane.f32.xlu0 %v1443_v13 }
 0x64e   :  { %v4147_v30 = vpop.eup %4146  ;;  %v1414_v60 = vpop.f32.mrf.mxu0 }
 0x64f   :  { %v5151_v25 = vmul.f32 0.17677669, %v1414_v60  ;;  %v792_v26 = vpop.xlane.xlu1 %791  ;;  %v1250_v8 = vpop.xlane.xlu2 %1249  ;;  %v811_v19 = vmul.f32 %v4147_v30, %v5065_v20  ;;  %v5176_v30 = vld [vmem:[%s6449_s0 + $0x40] sm:$0xff] }
 0x650   :  { %4148 = vrcp.f32 %v792_v26  ;;  %3880 = vmatmul.msk.f32.vlgmr.msrb.gmra.mxu0 %vm115_vm1, %v5176_v30 }
 0x651   :  { %4150 = vrcp.f32 %v1250_v8  ;;  %3824 = vmatmul.msk.f32.gmra.mxu1 %vm726_vm14, %v811_v19  ;;  %v1446_v31 = vsel %vm726_vm14, %v5151_v25, -inf  ;;  %v1186_v19 = vpop.f32.mrf.mxu3 }
 0x652   :  { %1447 = vmax.xlane.f32.xlu0 %v1446_v31  ;;  %v5186_v31 = vmul.f32 0.17677669, %v1186_v19 }
 0x656   :  { %v4149_v34 = vpop.eup %4148  ;;  %v1417_v11 = vpop.f32.mrf.mxu0 }
 0x657   :  { %v4151_v17 = vpop.eup %4150  ;;  %v5157_v63 = vmul.f32 0.17677669, %v1417_v11  ;;  %v795_v18 = vpop.xlane.xlu1 %794  ;;  %v812_v56 = vmul.f32 %v4149_v34, %v5074_v9 }
 0x658   :  { %v1253_v14 = vpop.xlane.xlu2 %1252  ;;  %4152 = vrcp.f32 %v795_v18  ;;  %v1278_v20 = vmul.f32 %v4151_v17, %v5078_v43  ;;  %v1224_v17 = vsub.f32 %v4994_v22, %v5117_v61  ;;  %v1218_v18 = vsel %vm726_vm14, %v5186_v31, -inf  ;;  %v5207_v61 = vld [vmem:[%s6449_s0 + $0x48] sm:$0xff] }
 0x659   :  { %4154 = vrcp.f32 %v1253_v14  ;;  %3825 = vmatmul.msk.f32.gmra.mxu1 %vm726_vm14, %v812_v56  ;;  %v1449_v2 = vsel %vm726_vm14, %v5157_v63, -inf  ;;  %3881 = vmatmul.msk.f32.gmra.mxu0 %vm115_vm1, %v5207_v61 }
 0x65a   :  { %3838 = vmatmul.msk.f32.gmra.mxu2 %vm726_vm14, %v1278_v20  ;;  %1450 = vmax.xlane.f32.xlu0 %v1449_v2  ;;  %v1235_v14 = vmul.f32 1.442695, %v1224_v17 }
 0x65e   :  { %v4153_v10 = vpop.eup %4152  ;;  %v1420_v38 = vpop.f32.mrf.mxu0 }
 0x65f   :  { %v4155_v59 = vpop.eup %4154  ;;  %v5165_v23 = vmul.f32 0.17677669, %v1420_v38  ;;  %v798_v53 = vpop.xlane.xlu1 %797  ;;  %v813_v9 = vmul.f32 %v4153_v10, %v5087_v1  ;;  %v5214_v38 = vld [vmem:[%s6449_s0 + $0x50] sm:$0xff] }
 0x660   :  { %4156 = vrcp.f32 %v798_v53  ;;  %v1279_v43 = vmul.f32 %v4155_v59, %v5090_v4  ;;  %v5221_v59 = vld [vmem:[%s6449_s0 + $0x58] sm:$0xff]  ;;  %v5228_v53 = vld [vmem:[%s6449_s0 + $0x60] sm:$0xff] }
 0x661   :  { %3826 = vmatmul.msk.f32.gmra.mxu1 %vm726_vm14, %v813_v9  ;;  %v1452_v13 = vsel %vm726_vm14, %v5165_v23, -inf  ;;  %4158 = vpow2.f32 %v1235_v14  ;;  %3882 = vmatmul.msk.f32.gmra.mxu0 %vm115_vm1, %v5214_v38  ;;  %v5235_v9 = vld [vmem:[%s6449_s0 + $0x68] sm:$0xff] }
 0x662   :  { %3839 = vmatmul.msk.f32.gmra.mxu2 %vm726_vm14, %v1279_v43  ;;  %1453 = vmax.xlane.f32.xlu0 %v1452_v13 }
 0x666   :  { %v4157_v1 = vpop.eup %4156  ;;  %v1423_v60 = vpop.f32.mrf.mxu0 }
 0x667   :  { %v5180_v26 = vmul.f32 0.17677669, %v1423_v60  ;;  %v814_v4 = vmul.f32 %v4157_v1, %v5098_v0  ;;  %v5200_v10 = vpop.eup %4158  ;;  %v5243_v60 = vld [vmem:[%s6449_s0 + $0x70] sm:$0xff] }
 0x668   :  { %v1254_v22 = vsel %vm726_vm14, %v5200_v10, 0.0 }
 0x669   :  { %3827 = vmatmul.msk.f32.gmra.mxu1 %vm726_vm14, %v814_v4  ;;  %v1455_v8 = vsel %vm726_vm14, %v5180_v26, -inf  ;;  %3883 = vmatmul.msk.f32.gmra.mxu0 %vm115_vm1, %v5221_v59 }
 0x66a   :  { %1456 = vmax.xlane.f32.xlu0 %v1455_v8 }
 0x66e   :  { %v1426_v34 = vpop.f32.mrf.mxu0 }
 0x66f   :  { %v5188_v11 = vmul.f32 0.17677669, %v1426_v34  ;;  %v1225_v34 = vsub.f32 %v4998_v29, %v5121_v3  ;;  %v1226_v29 = vsub.f32 %v5002_v36, %v5125_v55 }
 0x671   :  { %v1458_v0 = vsel %vm726_vm14, %v5188_v11, -inf  ;;  %3884 = vmatmul.msk.f32.gmra.mxu0 %vm115_vm1, %v5228_v53 }
 0x672   :  { %1219 = vmax.xlane.f32.xlu0 %v1218_v18  ;;  %1459 = vmax.xlane.f32.xlu1 %v1458_v0  ;;  %v5257_v18 = vld [vmem:[%s6449_s0 + $0x78] sm:$0xff] }
 0x676   :  { %v1429_v56 = vpop.f32.mrf.mxu0 }
 0x677   :  { %v5196_v20 = vmul.f32 0.17677669, %v1429_v56 }
 0x679   :  { %v1461_v2 = vsel %vm726_vm14, %v5196_v20, -inf  ;;  %3885 = vmatmul.msk.f32.gmra.mxu0 %vm115_vm1, %v5235_v9 }
 0x67a   :  { %1462 = vmax.xlane.f32.xlu1 %v1461_v2 }
 0x681   :  { %3886 = vmatmul.msk.f32.gmra.mxu0 %vm115_vm1, %v5243_v60 }
 0x682   :  { %1255 = vadd.xlane.f32.xlu1 %v1254_v22  ;;  %v1239_v22 = vmul.f32 1.442695, %v1226_v29 }
 0x689   :  { %3887 = vmatmul.msk.f32.gmra.mxu0 %vm115_vm1, %v5257_v18 }
 0x6b5   :  { %v1442_v43 = vpop.xlane.xlu0 %1441 }
 0x6b6   :  { %v1464_v13 = vsub.f32 %v5137_v57, %v1442_v43 }
 0x6b8   :  { %v1472_v1 = vmul.f32 1.442695, %v1464_v13 }
 0x6ba   :  { %4160 = vpow2.f32 %v1472_v1 }
 0x6bd   :  { %v1445_v4 = vpop.xlane.xlu0 %1444 }
 0x6be   :  { %v1465_v8 = vsub.f32 %v5143_v12, %v1445_v4  ;;  %v1237_v12 = vmul.f32 1.442695, %v1225_v34 }
 0x6c0   :  { %v5248_v19 = vpop.eup %4160  ;;  %v1474_v17 = vmul.f32 1.442695, %v1465_v8 }
 0x6c1   :  { %v1488_v57 = vsel %vm726_vm14, %v5248_v19, 0.0 }
 0x6c2   :  { %4162 = vpow2.f32 %v1474_v17  ;;  %1489 = vadd.xlane.f32.xlu0 %v1488_v57 }
 0x6c3   :  { %4164 = vpow2.f32 %v1237_v12 }
 0x6c5   :  { %v1448_v0 = vpop.xlane.xlu0 %1447 }
 0x6c6   :  { %v1466_v14 = vsub.f32 %v5151_v25, %v1448_v0  ;;  %v1227_v25 = vsub.f32 %v5006_v35, %v5134_v6 }
 0x6c8   :  { %v5262_v56 = vpop.eup %4162  ;;  %v1476_v3 = vmul.f32 1.442695, %v1466_v14  ;;  %v1241_v34 = vmul.f32 1.442695, %v1227_v25 }
 0x6c9   :  { %v1491_v2 = vsel %vm726_vm14, %v5262_v56, 0.0  ;;  %v5268_v13 = vpop.eup %4164 }
 0x6ca   :  { %4166 = vpow2.f32 %v1476_v3  ;;  %1492 = vadd.xlane.f32.xlu0 %v1491_v2  ;;  %v1257_v55 = vsel %vm726_vm14, %v5268_v13, 0.0 }
 0x6cb   :  { %4168 = vpow2.f32 %v1239_v22 }
 0x6cd   :  { %v1451_v43 = vpop.xlane.xlu0 %1450 }
 0x6ce   :  { %v1467_v1 = vsub.f32 %v5157_v63, %v1451_v43 }
 0x6d0   :  { %v5271_v4 = vpop.eup %4166  ;;  %v1478_v8 = vmul.f32 1.442695, %v1467_v1 }
 0x6d1   :  { %v1494_v36 = vsel %vm726_vm14, %v5271_v4, 0.0  ;;  %v5279_v57 = vpop.eup %4168 }
 0x6d2   :  { %4170 = vpow2.f32 %v1478_v8  ;;  %1495 = vadd.xlane.f32.xlu2 %v1494_v36  ;;  %1258 = vadd.xlane.f32.xlu0 %v1257_v55  ;;  %v1260_v0 = vsel %vm726_vm14, %v5279_v57, 0.0 }
 0x6d3   :  { %4172 = vpow2.f32 %v1241_v34 }
 0x6d5   :  { %v1454_v17 = vpop.xlane.xlu0 %1453 }
 0x6d6   :  { %v1468_v63 = vsub.f32 %v5165_v23, %v1454_v17 }
 0x6d8   :  { %v5282_v12 = vpop.eup %4170  ;;  %v1480_v35 = vmul.f32 1.442695, %v1468_v63 }
 0x6d9   :  { %v1497_v6 = vsel %vm726_vm14, %v5282_v12, 0.0  ;;  %v5288_v29 = vpop.eup %4172 }
 0x6da   :  { %4174 = vpow2.f32 %v1480_v35  ;;  %1498 = vadd.xlane.f32.xlu1 %v1497_v6  ;;  %1261 = vadd.xlane.f32.xlu2 %v1260_v0  ;;  %v1263_v43 = vsel %vm726_vm14, %v5288_v29, 0.0 }
 0x6dd   :  { %v1457_v14 = vpop.xlane.xlu0 %1456 }
 0x6de   :  { %v1469_v3 = vsub.f32 %v5180_v26, %v1457_v14 }
 0x6e0   :  { %v5291_v2 = vpop.eup %4174  ;;  %v1482_v23 = vmul.f32 1.442695, %v1469_v3 }
 0x6e1   :  { %v1500_v22 = vsel %vm726_vm14, %v5291_v2, 0.0 }
 0x6e2   :  { %4176 = vpow2.f32 %v1482_v23  ;;  %1501 = vadd.xlane.f32.xlu0 %v1500_v22  ;;  %1264 = vadd.xlane.f32.xlu1 %v1263_v43 }
 0x6e5   :  { %v1220_v1 = vpop.xlane.xlu0 %1219  ;;  %v1460_v8 = vpop.xlane.xlu1 %1459 }
 0x6e6   :  { %v1228_v25 = vsub.f32 %v5186_v31, %v1220_v1  ;;  %v1470_v36 = vsub.f32 %v5188_v11, %v1460_v8  ;;  %v1794_v1 = vpop.f32.mrf.mxu0 }
 0x6e8   :  { %v5299_v55 = vpop.eup %4176  ;;  %v1243_v26 = vmul.f32 1.442695, %v1228_v25  ;;  %v1484_v34 = vmul.f32 1.442695, %v1470_v36 }
 0x6e9   :  { %v1503_v17 = vsel %vm726_vm14, %v5299_v55, 0.0 }
 0x6ea   :  { %4178 = vpow2.f32 %v1243_v26  ;;  %1504 = vadd.xlane.f32.xlu2 %v1503_v17 }
 0x6eb   :  { %4180 = vpow2.f32 %v1484_v34 }
 0x6ed   :  { %v1463_v63 = vpop.xlane.xlu1 %1462 }
 0x6ee   :  { %v1471_v35 = vsub.f32 %v5196_v20, %v1463_v63  ;;  %v1797_v25 = vpop.f32.mrf.mxu0 }
 0x6f0   :  { %v5304_v6 = vpop.eup %4178  ;;  %v1486_v31 = vmul.f32 1.442695, %v1471_v35 }
 0x6f1   :  { %v5306_v0 = vpop.eup %4180  ;;  %v1266_v11 = vsel %vm726_vm14, %v5304_v6, 0.0 }
 0x6f2   :  { %1267 = vadd.xlane.f32.xlu0 %v1266_v11  ;;  %v1506_v14 = vsel %vm726_vm14, %v5306_v0, 0.0  ;;  %4182 = vpow2.f32 %v1486_v31 }
 0x6f3   :  { %1507 = vadd.xlane.f32.xlu1 %v1506_v14 }
 0x6f5   :  { %v1256_v3 = vpop.xlane.xlu1 %1255 }
 0x6f6   :  { %4184 = vrcp.f32 %v1256_v3  ;;  %v1800_v8 = vpop.f32.mrf.mxu0 }
 0x6f8   :  { %v5312_v23 = vpop.eup %4182 }
 0x6f9   :  { %v1509_v20 = vsel %vm726_vm14, %v5312_v23, 0.0 }
 0x6fa   :  { %1510 = vadd.xlane.f32.xlu2 %v1509_v20 }
 0x6fc   :  { %v4185_v22 = vpop.eup %4184 }
 0x6fd   :  { %v1280_v43 = vmul.f32 %v4185_v22, %v5200_v10  ;;  %v4357_v10 = vld [vmem:[%s6450_s1 + $0xe8] ss:$0 sm:$0xff] }
 0x6fe   :  { %v1803_v36 = vpop.f32.mrf.mxu0 }
 0x6ff   :  { %3840 = vmatmul.msk.f32.gmra.mxu2 %vm726_vm14, %v1280_v43 }
 0x706   :  { %v1806_v26 = vpop.f32.mrf.mxu0 }
 0x70e   :  { %v1809_v34 = vpop.f32.mrf.mxu0 }
 0x716   :  { %v1812_v63 = vpop.f32.mrf.mxu0 }
 0x717   :  { %v5325_v20 = vadd.f32 %v4357_v10, %v1812_v63 }
 0x71e   :  { %v1815_v14 = vpop.f32.mrf.mxu0 }
 0x71f   :  { %v5323_v3 = vadd.f32 %v4357_v10, %v1815_v14 }
 0x721   :  { %3897 = vmatpush.xpose.msk.msrb.mxu1 %vm90_vm2, %v5323_v3 }
 0x725   :  { %3898 = vmatpush.xpose.msk.msrb.mxu1 %vm90_vm2, %v5325_v20 }
 0x735   :  { %v1490_v17 = vpop.xlane.xlu0 %1489 }
 0x736   :  { %4186 = vrcp.f32 %v1490_v17 }
 0x73c   :  { %v4187_v35 = vpop.eup %4186 }
 0x73d   :  { %v1520_v31 = vmul.f32 %v4187_v35, %v5248_v19  ;;  %v1493_v11 = vpop.xlane.xlu0 %1492  ;;  %v5330_v35 = vadd.f32 %v4357_v10, %v1809_v34 }
 0x73e   :  { %4188 = vrcp.f32 %v1493_v11 }
 0x73f   :  { %3854 = vmatmul.msk.f32.vlgmr.msra.gmra.mxu1 %vm726_vm14, %v1520_v31  ;;  %v5335_v31 = vadd.f32 %v4357_v10, %v1806_v26  ;;  %v5347_v26 = vadd.f32 %v4357_v10, %v1800_v8  ;;  %v5362_v8 = vld [vmem:[%s6450_s1 + $0xb8] sm:$0xff] }
 0x740   :  { %3899 = vmatpush.xpose.msk.msrb.mxu1 %vm90_vm2, %v5330_v35  ;;  %1647 = vmatpush.msra.mxu3 %v5362_v8 }
 0x744   :  { %v4189_v22 = vpop.eup %4188  ;;  %3900 = vmatpush.xpose.msk.msrb.mxu1 %vm90_vm2, %v5335_v31 }
 0x745   :  { %v1259_v43 = vpop.xlane.xlu0 %1258  ;;  %v1496_v17 = vpop.xlane.xlu2 %1495  ;;  %v1521_v19 = vmul.f32 %v4189_v22, %v5262_v56  ;;  %v5340_v22 = vadd.f32 %v4357_v10, %v1803_v36 }
 0x746   :  { %4190 = vrcp.f32 %v1259_v43 }
 0x747   :  { %4192 = vrcp.f32 %v1496_v17  ;;  %3855 = vmatmul.msk.f32.gmra.mxu1 %vm726_vm14, %v1521_v19 }
 0x748   :  { %3901 = vmatpush.xpose.msk.msrb.mxu1 %vm90_vm2, %v5340_v22 }
 0x74c   :  { %v4191_v63 = vpop.eup %4190  ;;  %3902 = vmatpush.xpose.msk.msrb.mxu1 %vm90_vm2, %v5347_v26 }
 0x74d   :  { %v4193_v11 = vpop.eup %4192  ;;  %v1499_v14 = vpop.xlane.xlu1 %1498  ;;  %v1281_v56 = vmul.f32 %v4191_v63, %v5268_v13 }
 0x74e   :  { %v1262_v40 = vpop.xlane.xlu2 %1261  ;;  %4194 = vrcp.f32 %v1499_v14  ;;  %v1522_v34 = vmul.f32 %v4193_v11, %v5271_v4  ;;  %v5352_v4 = vadd.f32 %v4357_v10, %v1797_v25 }
 0x74f   :  { %4196 = vrcp.f32 %v1262_v40  ;;  %3841 = vmatmul.msk.f32.gmra.mxu2 %vm726_vm14, %v1281_v56 }
 0x750   :  { %3856 = vmatmul.msk.f32.gmra.mxu1 %vm726_vm14, %v1522_v34 }
 0x751   :  { %3903 = vmatpush.xpose.msk.msrb.mxu1 %vm90_vm2, %v5352_v4 }
 0x754   :  { %v4195_v43 = vpop.eup %4194 }
 0x755   :  { %v4197_v13 = vpop.eup %4196  ;;  %v1502_v36 = vpop.xlane.xlu0 %1501  ;;  %v1523_v19 = vmul.f32 %v4195_v43, %v5282_v12  ;;  %v5365_v12 = vadd.f32 %v4357_v10, %v1794_v1  ;;  %v5378_v1 = vld [vmem:[%s6450_s1 + $0xb0] sm:$0xff] }
 0x756   :  { %v1265_v17 = vpop.xlane.xlu1 %1264  ;;  %4198 = vrcp.f32 %v1502_v36  ;;  %v1282_v40 = vmul.f32 %v4197_v13, %v5279_v57  ;;  %1648 = vmatpush.msra.mxu3 %v5378_v1 }
 0x757   :  { %4200 = vrcp.f32 %v1265_v17  ;;  %3904 = vmatpush.xpose.msk.msrb.mxu1 %vm90_vm2, %v5365_v12 }
 0x758   :  { %3842 = vmatmul.msk.f32.gmra.mxu2 %vm726_vm14, %v1282_v40  ;;  %3857 = vmatmul.msk.f32.gmra.mxu1 %vm726_vm14, %v1523_v19 }
 0x75c   :  { %v4199_v57 = vpop.eup %4198 }
 0x75d   :  { %v4201_v25 = vpop.eup %4200  ;;  %v1505_v63 = vpop.xlane.xlu2 %1504  ;;  %v1524_v11 = vmul.f32 %v4199_v57, %v5291_v2  ;;  %v5384_v2 = vld [vmem:[%s6450_s1 + $0xa8] sm:$0xff] }
 0x75e   :  { %4202 = vrcp.f32 %v1505_v63  ;;  %v1283_v14 = vmul.f32 %v4201_v25, %v5288_v29  ;;  %v5389_v29 = vld [vmem:[%s6450_s1 + $0xa0] sm:$0xff]  ;;  %1649 = vmatpush.msra.mxu3 %v5384_v2 }
 0x75f   :  { %6461 = vst [vmem:[#allocation10_spill] sm:$0xff] %v5389_v29 }
 0x760   :  { %3843 = vmatmul.msk.f32.gmra.mxu2 %vm726_vm14, %v1283_v14  ;;  %3858 = vmatmul.msk.f32.gmra.mxu1 %vm726_vm14, %v1524_v11 }
 0x761   :  { %1650 = vmatpush.msra.mxu3 %v5389_v29 }
 0x763   :  { %3906 = vmatpush.xpose.msk.msrb.mxu3 %vm90_vm2, %v5323_v3 }
 0x764   :  { %v4203_v10 = vpop.eup %4202 }
 0x765   :  { %v1268_v56 = vpop.xlane.xlu0 %1267  ;;  %v1525_v34 = vmul.f32 %v4203_v10, %v5299_v55  ;;  %v1092_v55 = vpop.f32.mrf.mxu1 }
 0x766   :  { %4204 = vrcp.f32 %v1268_v56  ;;  %v1508_v43 = vpop.xlane.xlu1 %1507  ;;  %v1327_v10 = vpop.f32.mrf.mxu2 }
 0x767   :  { %4206 = vrcp.f32 %v1508_v43  ;;  %3907 = vmatpush.xpose.msk.msrb.mxu3 %vm90_vm2, %v5325_v20 }
 0x768   :  { %3859 = vmatmul.msk.f32.gmra.mxu1 %vm726_vm14, %v1525_v34  ;;  %v1093_v34 = vadd.f32 %v1092_v55, %v5109_v5 }
 0x76a   :  { %v1351_v43 = vadd.f32 %v1327_v10, %v1093_v34 }
 0x76b   :  { %3908 = vmatpush.xpose.msk.msrb.mxu3 %vm90_vm2, %v5330_v35 }
 0x76c   :  { %v4205_v13 = vpop.eup %4204 }
 0x76d   :  { %v4207_v36 = vpop.eup %4206  ;;  %v1284_v17 = vmul.f32 %v4205_v13, %v5304_v6  ;;  %v1511_v19 = vpop.xlane.xlu2 %1510 }
 0x76e   :  { %v1526_v40 = vmul.f32 %v4207_v36, %v5306_v0  ;;  %4208 = vrcp.f32 %v1511_v19  ;;  %v1095_v63 = vpop.f32.mrf.mxu1  ;;  %v1330_v13 = vpop.f32.mrf.mxu2 }
 0x76f   :  { %3844 = vmatmul.msk.f32.gmra.mxu2 %vm726_vm14, %v1284_v17  ;;  %3909 = vmatpush.xpose.msk.msrb.mxu3 %vm90_vm2, %v5335_v31  ;;  %v1096_v19 = vadd.f32 %v1095_v63, %v5111_v24 }
 0x770   :  { %3860 = vmatmul.msk.f32.gmra.mxu1 %vm726_vm14, %v1526_v40 }
 0x771   :  { %v1352_v40 = vadd.f32 %v1330_v13, %v1096_v19 }
 0x773   :  { %3910 = vmatpush.xpose.msk.msrb.mxu3 %vm90_vm2, %v5340_v22 }
 0x774   :  { %v4209_v57 = vpop.eup %4208 }
 0x775   :  { %v1527_v25 = vmul.f32 %v4209_v57, %v5312_v23 }
 0x776   :  { %v1098_v6 = vpop.f32.mrf.mxu1 }
 0x777   :  { %3911 = vmatpush.xpose.msk.msrb.mxu3 %vm90_vm2, %v5347_v26  ;;  %v1099_v5 = vadd.f32 %v1098_v6, %v5113_v27 }
 0x778   :  { %3861 = vmatmul.msk.f32.gmra.mxu1 %vm726_vm14, %v1527_v25  ;;  %v1333_v25 = vpop.f32.mrf.mxu2 }
 0x779   :  { %v1353_v55 = vadd.f32 %v1333_v25, %v1099_v5 }
 0x77b   :  { %3912 = vmatpush.xpose.msk.msrb.mxu3 %vm90_vm2, %v5352_v4 }
 0x77e   :  { %v1101_v0 = vpop.f32.mrf.mxu1 }
 0x77f   :  { %3913 = vmatpush.xpose.msk.msrb.mxu3 %vm90_vm2, %v5365_v12  ;;  %v1102_v63 = vadd.f32 %v1101_v0, %v5115_v15 }
 0x780   :  { %3905 = vmatmul.msk.f32.vlgmr.msrb.gmra.mxu1 %vm90_vm2, %v4670_v48 }
 0x786   :  { %v1104_v23 = vpop.f32.mrf.mxu1 }
 0x787   :  { %v1105_v27 = vadd.f32 %v1104_v23, %v5119_v52 }
 0x78e   :  { %v1107_v11 = vpop.f32.mrf.mxu1 }
 0x78f   :  { %v1108_v0 = vadd.f32 %v1107_v11, %v5123_v51 }
 0x796   :  { %v1110_v14 = vpop.f32.mrf.mxu1 }
 0x797   :  { %v1111_v25 = vadd.f32 %v1110_v14, %v5127_v16 }
 0x79e   :  { %v1113_v56 = vpop.f32.mrf.mxu1 }
 0x79f   :  { %v1114_v11 = vadd.f32 %v1113_v56, %v5131_v7 }
 0x7bc   :  { %v1570_v36 = vpop.f32.mrf.mxu1 }
 0x7bd   :  { %v1594_v17 = vadd.f32 %v1570_v36, %v1351_v43 }
 0x7bf   :  { %v5421_v48 = vadd.f32 %v1594_v17, %v4817_v21  ;;  %v1336_v21 = vpop.f32.mrf.mxu2 }
 0x7c0   :  { %v1354_v43 = vadd.f32 %v1336_v21, %v1102_v63 }
 0x7c1   :  { %3862 = vmatmul.msk.f32.vlgmr.msra.gmra.mxu3 %vm90_vm2, %v5421_v48 }
 0x7c4   :  { %v1573_v57 = vpop.f32.mrf.mxu1 }
 0x7c5   :  { %v1595_v32 = vadd.f32 %v1573_v57, %v1352_v40 }
 0x7c7   :  { %v5427_v29 = vadd.f32 %v1595_v32, %v4830_v28 }
 0x7c9   :  { %3863 = vmatmul.msk.f32.gmra.mxu3 %vm90_vm2, %v5427_v29 }
 0x7cd   :  { %v1576_v10 = vpop.f32.mrf.mxu1 }
 0x7ce   :  { %v1596_v34 = vadd.f32 %v1576_v10, %v1353_v55 }
 0x7d0   :  { %v5433_v24 = vadd.f32 %v1596_v34, %v4838_v33 }
 0x7d2   :  { %3864 = vmatmul.msk.f32.gmra.mxu3 %vm90_vm2, %v5433_v24  ;;  %v1339_v32 = vpop.f32.mrf.mxu2 }
 0x7d3   :  { %v1355_v6 = vadd.f32 %v1339_v32, %v1105_v27 }
 0x7d5   :  { %v1579_v28 = vpop.f32.mrf.mxu1 }
 0x7d6   :  { %v1597_v13 = vadd.f32 %v1579_v28, %v1354_v43 }
 0x7d8   :  { %v5439_v36 = vadd.f32 %v1597_v13, %v4846_v37 }
 0x7da   :  { %3865 = vmatmul.msk.f32.gmra.mxu3 %vm90_vm2, %v5439_v36 }
 0x7db   :  { %v1342_v19 = vpop.f32.mrf.mxu2 }
 0x7dc   :  { %v1356_v40 = vadd.f32 %v1342_v19, %v1108_v0  ;;  %v5482_v0 = vld [vmem:[%s6450_s1 + $0xd0] sm:$0xff] }
 0x7dd   :  { %v1582_v33 = vpop.f32.mrf.mxu1 }
 0x7de   :  { %v1598_v17 = vadd.f32 %v1582_v33, %v1355_v6 }
 0x7e0   :  { %v5445_v15 = vadd.f32 %v1598_v17, %v4854_v46  ;;  %v5476_v17 = vld [vmem:[%s6450_s1 + $0xd8] sm:$0xff] }
 0x7e1   :  { %1736 = vmatpush.msrb.mxu2 %v5476_v17 }
 0x7e2   :  { %3866 = vmatmul.msk.f32.gmra.mxu3 %vm90_vm2, %v5445_v15 }
 0x7e3   :  { %v1345_v23 = vpop.f32.mrf.mxu2  ;;  %1737 = vmatpush.msrb.mxu2 %v5482_v0 }
 0x7e4   :  { %v1357_v5 = vadd.f32 %v1345_v23, %v1111_v25  ;;  %v5488_v23 = vld [vmem:[%s6450_s1 + $0xc8] sm:$0xff] }
 0x7e5   :  { %v1585_v37 = vpop.f32.mrf.mxu1  ;;  %1738 = vmatpush.msrb.mxu2 %v5488_v23 }
 0x7e6   :  { %v1599_v57 = vadd.f32 %v1585_v37, %v1356_v40 }
 0x7e8   :  { %v5451_v52 = vadd.f32 %v1599_v57, %v4862_v54 }
 0x7ea   :  { %3867 = vmatmul.msk.f32.gmra.mxu3 %vm90_vm2, %v5451_v52 }
 0x7ed   :  { %v1588_v46 = vpop.f32.mrf.mxu1 }
 0x7ee   :  { %v1600_v55 = vadd.f32 %v1588_v46, %v1357_v5 }
 0x7f0   :  { %v5457_v51 = vadd.f32 %v1600_v55, %v4870_v58  ;;  %v5495_v55 = vld [vmem:[%s6450_s1 + $0xc0] sm:$0xff] }
 0x7f1   :  { %1739 = vmatpush.msrb.mxu2 %v5495_v55 }
 0x7f2   :  { %3868 = vmatmul.msk.f32.gmra.mxu3 %vm90_vm2, %v5457_v51  ;;  %v1348_v21 = vpop.f32.mrf.mxu2 }
 0x7f3   :  { %v1358_v54 = vadd.f32 %v1348_v21, %v1114_v11 }
 0x7f5   :  { %v1591_v10 = vpop.f32.mrf.mxu1 }
 0x7f6   :  { %v1601_v34 = vadd.f32 %v1591_v10, %v1358_v54 }
 0x7f8   :  { %v5463_v16 = vadd.f32 %v1601_v34, %v4878_v62  ;;  %v4065_v62 = vld [vmem:[%s6450_s1 + $0x118] ss:$0 sm:$0xff] }
 0x7fa   :  { %3869 = vmatmul.msk.f32.gmra.mxu3 %vm90_vm2, %v5463_v16 }
 0x7fd   :  { %v1900_v14 = vpop.f32.mrf.mxu1 }
 0x7fe   :  { %v1903_v63 = vmul.f32 0.17677669, %v1900_v14 }
 0x800   :  { %v1904_v58 = vsel %vm279_vm13, %v1903_v63, -inf }
 0x801   :  { %1905 = vmax.xlane.f32.xlu2 %v1904_v58 }
 0x802   :  { %3914 = vmatmul.msk.f32.vlgmr.msrb.gmra.mxu3 %vm90_vm2, %v4666_v47 }
 0x844   :  { %v1652_v7 = vpop.f32.mrf.mxu3 }
 0x845   :  { %v1653_v27 = vadd.f32 %v4065_v62, %v1652_v7 }
 0x847   :  { %v1676_v40 = vmax.f32 %v1653_v27, 0.0 }
 0x849   :  { %v1684_v11 = vadd.f32 %v1676_v40, %v5421_v48 }
 0x84c   :  { %v1655_v56 = vpop.f32.mrf.mxu3 }
 0x84d   :  { %v1656_v13 = vadd.f32 %v4065_v62, %v1655_v56 }
 0x84f   :  { %v1677_v19 = vmax.f32 %v1656_v13, 0.0 }
 0x851   :  { %v1685_v25 = vadd.f32 %v1677_v19, %v5427_v29  ;;  %v4358_v29 = vld [vmem:[%s6450_s1 + $0x10] sm:$0x7] }
 0x852   :  { %3888 = vmatpush.msk.msra.mxu2 %vm140_vm0, %v4358_v29 }
 0x853   :  { %v1693_v58 = vsel %vm90_vm2, %v1685_v25, 0.0 }
 0x855   :  { %v1658_v43 = vpop.f32.mrf.mxu3 }
 0x856   :  { %v1659_v6 = vadd.f32 %v4065_v62, %v1658_v43 }
 0x858   :  { %v1678_v37 = vmax.f32 %v1659_v6, 0.0 }
 0x85a   :  { %v1686_v21 = vadd.f32 %v1678_v37, %v5433_v24  ;;  %v4462_v24 = vmov 64.0  }
 0x85b   :  { %4210 = vrcp.f32 %v4462_v24 }
 0x85d   :  { %v1661_v32 = vpop.f32.mrf.mxu3 }
 0x85e   :  { %v1662_v47 = vadd.f32 %v4065_v62, %v1661_v32  ;;  %v1692_v32 = vsel %vm90_vm2, %v1684_v11, 0.0 }
 0x85f   :  { %v1694_v27 = vadd.f32 %v1693_v58, %v1692_v32 }
 0x860   :  { %v1679_v5 = vmax.f32 %v1662_v47, 0.0 }
 0x861   :  { %v4211_v40 = vpop.eup %4210 }
 0x862   :  { %v1687_v7 = vadd.f32 %v1679_v5, %v5439_v36  ;;  %vm1718_vm15 = vweird.f32 %v4211_v40 }
 0x864   :  { %v1697_v6 = vsel %vm90_vm2, %v1687_v7, 0.0 }
 0x865   :  { %v1664_v28 = vpop.f32.mrf.mxu3 }
 0x866   :  { %v1665_v57 = vadd.f32 %v4065_v62, %v1664_v28 }
 0x868   :  { %v1680_v54 = vmax.f32 %v1665_v57, 0.0 }
 0x86a   :  { %v1688_v28 = vadd.f32 %v1680_v54, %v5445_v15  ;;  %v1714_v54 = vmul.f32 64.0, %v4211_v40 }
 0x86c   :  { %v1699_v36 = vsel %vm90_vm2, %v1688_v28, 0.0  ;;  %v1715_v29 = vsub.f32 1.0, %v1714_v54 }
 0x86d   :  { %v1667_v33 = vpop.f32.mrf.mxu3 }
 0x86e   :  { %v1668_v46 = vadd.f32 %v4065_v62, %v1667_v33 }
 0x870   :  { %v1681_v56 = vmax.f32 %v1668_v46, 0.0 }
 0x872   :  { %v1689_v33 = vadd.f32 %v1681_v56, %v5451_v52 }
 0x874   :  { %v1906_v10 = vpop.xlane.xlu2 %1905  ;;  %v1701_v25 = vsel %vm90_vm2, %v1689_v33, 0.0  ;;  %v4362_v33 = vld [vmem:[%s6450_s1 + $0x40] sm:$0xff] }
 0x875   :  { %v1907_v34 = vsub.f32 %v1903_v63, %v1906_v10  ;;  %v1670_v14 = vpop.f32.mrf.mxu3  ;;  %v1695_v63 = vsel %vm90_vm2, %v1686_v21, 0.0 }
 0x876   :  { %v1671_v48 = vadd.f32 %v4065_v62, %v1670_v14  ;;  %v1696_v19 = vadd.f32 %v1695_v63, %v1694_v27 }
 0x877   :  { %v1908_v43 = vmul.f32 1.442695, %v1907_v34 }
 0x878   :  { %v1682_v13 = vmax.f32 %v1671_v48, 0.0  ;;  %v1698_v37 = vadd.f32 %v1697_v6, %v1696_v19  ;;  %v1716_v48 = vmul.f32 %v4211_v40, %v1715_v29 }
 0x879   :  { %4212 = vpow2.f32 %v1908_v43 }
 0x87a   :  { %v1690_v47 = vadd.f32 %v1682_v13, %v5457_v51  ;;  %v1700_v15 = vadd.f32 %v1699_v36, %v1698_v37  ;;  %v1717_v63 = vadd.f32 %v4211_v40, %v1716_v48 }
 0x87c   :  { %v1703_v11 = vsel %vm90_vm2, %v1690_v47, 0.0  ;;  %v1702_v10 = vadd.f32 %v1701_v25, %v1700_v15  ;;  %v5522_v27 = vsel %vm1718_vm15, %v4211_v40, %v1717_v63 }
 0x87d   :  { %v1673_v57 = vpop.f32.mrf.mxu3 }
 0x87e   :  { %v1674_v5 = vadd.f32 %v4065_v62, %v1673_v57  ;;  %v1704_v34 = vadd.f32 %v1703_v11, %v1702_v10  ;;  %v4367_v10 = vld [vmem:[%s6450_s1 + $0xf0] ss:$0 sm:$0xff] }
 0x87f   :  { %v5514_v46 = vpop.eup %4212 }
 0x880   :  { %v1683_v21 = vmax.f32 %v1674_v5, 0.0  ;;  %v1910_v52 = vsel %vm279_vm13, %v5514_v46, 0.0 }
 0x881   :  { %1911 = vadd.xlane.f32.xlu2 %v1910_v52 }
 0x882   :  { %v1691_v51 = vadd.f32 %v1683_v21, %v5463_v16 }
 0x884   :  { %v1705_v14 = vsel %vm90_vm2, %v1691_v51, 0.0 }
 0x885   :  { %v1706_v58 = vadd.f32 %v1705_v14, %v1704_v34  ;;  %v1940_v62 = vpop.f32.mrf.mxu3 }
 0x886   :  { %v1943_v7 = vmul.f32 0.17677669, %v1940_v62 }
 0x887   :  { %v1707_v56 = vrot.slane %v1706_v58, 4 }
 0x888   :  { %v1944_v43 = vsel %vm279_vm13, %v1943_v7, -inf }
 0x889   :  { %v1708_v24 = vadd.f32 %v1707_v56, %v1706_v58  ;;  %1945 = vmax.xlane.f32.xlu0 %v1944_v43 }
 0x88b   :  { %v1709_v32 = vrot.slane %v1708_v24, 2 }
 0x88d   :  { %v1710_v28 = vadd.f32 %v1709_v32, %v1708_v24 }
 0x88f   :  { %v1711_v13 = vrot.slane %v1710_v28, 1 }
 0x891   :  { %v1712_v16 = vadd.f32 %v1711_v13, %v1710_v28 }
 0x893   :  { %v1720_v6 = vmul.f32 %v5522_v27, %v1712_v16 }
 0x895   :  { %3870 = vmatmul.msk.f32.vlgmr.msrb.gmra.mxu2 %vm90_vm2, %v1720_v6 }
 0x896   :  { %3917 = vmatpush.xpose.msk.msrb.mxu2 %vm90_vm2, %v5323_v3 }
 0x89a   :  { %3918 = vmatpush.xpose.msk.msrb.mxu2 %vm90_vm2, %v5325_v20 }
 0x89d   :  { %3889 = vmatmul.msk.f32.vlgmr.msra.gmra.mxu2 %vm115_vm1, %v5176_v30  ;;  %v4359_v30 = vld [vmem:[%s6450_s1 + $0x58] sm:$0xff] }
 0x89e   :  { %3919 = vmatpush.xpose.msk.msrb.mxu2 %vm90_vm2, %v5330_v35 }
 0x8a2   :  { %3920 = vmatpush.xpose.msk.msrb.mxu2 %vm90_vm2, %v5335_v31 }
 0x8a5   :  { %3890 = vmatmul.msk.f32.gmra.mxu2 %vm115_vm1, %v5207_v61  ;;  %v4360_v61 = vld [vmem:[%s6450_s1 + $0x50] sm:$0xff] }
 0x8a6   :  { %3921 = vmatpush.xpose.msk.msrb.mxu2 %vm90_vm2, %v5340_v22 }
 0x8aa   :  { %3922 = vmatpush.xpose.msk.msrb.mxu2 %vm90_vm2, %v5347_v26 }
 0x8ad   :  { %3891 = vmatmul.msk.f32.gmra.mxu2 %vm115_vm1, %v5214_v38  ;;  %v4361_v38 = vld [vmem:[%s6450_s1 + $0x48] sm:$0xff] }
 0x8ae   :  { %3923 = vmatpush.xpose.msk.msrb.mxu2 %vm90_vm2, %v5352_v4 }
 0x8b2   :  { %3924 = vmatpush.xpose.msk.msrb.mxu2 %vm90_vm2, %v5365_v12 }
 0x8b5   :  { %3892 = vmatmul.msk.f32.gmra.mxu2 %vm115_vm1, %v5221_v59  ;;  %v4363_v59 = vld [vmem:[%s6450_s1 + $0x78] sm:$0xff] }
 0x8b6   :  { %2153 = vmatpush.msra.mxu2 %v4359_v30 }
 0x8b8   :  { %2154 = vmatpush.msra.mxu2 %v4360_v61 }
 0x8ba   :  { %2155 = vmatpush.msra.mxu2 %v4361_v38 }
 0x8bc   :  { %2156 = vmatpush.msra.mxu2 %v4362_v33 }
 0x8bd   :  { %3893 = vmatmul.msk.f32.gmra.mxu2 %vm115_vm1, %v5228_v53  ;;  %v4364_v53 = vld [vmem:[%s6450_s1 + $0x70] sm:$0xff] }
 0x8c5   :  { %3894 = vmatmul.msk.f32.gmra.mxu2 %vm115_vm1, %v5235_v9  ;;  %v4365_v9 = vld [vmem:[%s6450_s1 + $0x68] sm:$0xff] }
 0x8cd   :  { %3895 = vmatmul.msk.f32.gmra.mxu2 %vm115_vm1, %v5243_v60  ;;  %v4366_v60 = vld [vmem:[%s6450_s1 + $0x60] sm:$0xff] }
 0x8d5   :  { %3896 = vmatmul.msk.f32.gmra.mxu2 %vm115_vm1, %v5257_v18 }
 0x8dd   :  { %3925 = vmatmul.msk.f32.vlgmr.msrb.gmra.mxu2 %vm90_vm2, %v4676_v49 }
 0x8de   :  { %2219 = vmatpush.msrb.mxu2 %v4363_v59 }
 0x8e0   :  { %2220 = vmatpush.msrb.mxu2 %v4364_v53 }
 0x8e2   :  { %2221 = vmatpush.msrb.mxu2 %v4365_v9 }
 0x8e4   :  { %2222 = vmatpush.msrb.mxu2 %v4366_v60 }
 0x8fc   :  { %v1946_v49 = vpop.xlane.xlu0 %1945 }
 0x8fd   :  { %v1947_v19 = vsub.f32 %v1943_v7, %v1946_v49  ;;  %v1912_v7 = vpop.xlane.xlu2 %1911 }
 0x8ff   :  { %v1948_v36 = vmul.f32 1.442695, %v1947_v19 }
 0x901   :  { %4214 = vpow2.f32 %v1948_v36 }
 0x902   :  { %4216 = vrcp.f32 %v1912_v7 }
 0x907   :  { %v5584_v47 = vpop.eup %4214 }
 0x908   :  { %v1950_v40 = vsel %vm279_vm13, %v5584_v47, 0.0 }
 0x909   :  { %1951 = vadd.xlane.f32.xlu1 %v1950_v40 }
 0x918   :  { %v5588_v37 = vpop.f32.mrf.mxu2 }
 0x920   :  { %v1835_v57 = vpop.f32.mrf.mxu2 }
 0x921   :  { %v1836_v19 = vadd.f32 %v4367_v10, %v1835_v57 }
 0x923   :  { %v1955_v57 = vmul.f32 %v4650_v41, %v1836_v19 }
 0x928   :  { %v1838_v25 = vpop.f32.mrf.mxu2 }
 0x929   :  { %v1839_v59 = vadd.f32 %v4367_v10, %v1838_v25  ;;  %v4217_v25 = vpop.eup %4216 }
 0x930   :  { %v1841_v5 = vpop.f32.mrf.mxu2 }
 0x931   :  { %v1842_v6 = vadd.f32 %v4367_v10, %v1841_v5 }
 0x933   :  { %v1957_v36 = vmul.f32 %v4650_v41, %v1842_v6  ;;  %v1917_v40 = vmul.f32 %v4653_v42, %v1842_v6  ;;  %v2043_v5 = vmul.f32 %v4658_v44, %v1842_v6 }
 0x938   :  { %v1844_v15 = vpop.f32.mrf.mxu2 }
 0x939   :  { %v5608_v32 = vadd.f32 %v4367_v10, %v1844_v15  ;;  %v1956_v15 = vmul.f32 %v4650_v41, %v1839_v59 }
 0x93b   :  { %v1958_v9 = vmul.f32 %v4650_v41, %v5608_v32  ;;  %v1918_v60 = vmul.f32 %v4653_v42, %v5608_v32  ;;  %v2044_v49 = vmul.f32 %v4658_v44, %v5608_v32 }
 0x940   :  { %v1847_v11 = vpop.f32.mrf.mxu2 }
 0x941   :  { %v5600_v56 = vadd.f32 %v4367_v10, %v1847_v11  ;;  %v1916_v11 = vmul.f32 %v4653_v42, %v1839_v59 }
 0x943   :  { %v1959_v61 = vmul.f32 %v4650_v41, %v5600_v56  ;;  %v1919_v38 = vmul.f32 %v4653_v42, %v5600_v56  ;;  %v2045_v33 = vmul.f32 %v4658_v44, %v5600_v56 }
 0x948   :  { %v1850_v21 = vpop.f32.mrf.mxu2 }
 0x949   :  { %v5595_v14 = vadd.f32 %v4367_v10, %v1850_v21  ;;  %v2042_v21 = vmul.f32 %v4658_v44, %v1839_v59 }
 0x94b   :  { %v1960_v63 = vmul.f32 %v4650_v41, %v5595_v14  ;;  %v1920_v28 = vmul.f32 %v4653_v42, %v5595_v14  ;;  %v2046_v16 = vmul.f32 %v4658_v44, %v5595_v14 }
 0x950   :  { %v1853_v54 = vpop.f32.mrf.mxu2 }
 0x951   :  { %v5593_v51 = vadd.f32 %v4367_v10, %v1853_v54  ;;  %v1915_v54 = vmul.f32 %v4653_v42, %v1836_v19 }
 0x953   :  { %v1961_v48 = vmul.f32 %v4650_v41, %v5593_v51  ;;  %v1921_v43 = vmul.f32 %v4653_v42, %v5593_v51  ;;  %v2047_v24 = vmul.f32 %v4658_v44, %v5593_v51 }
 0x958   :  { %v1856_v52 = vpop.f32.mrf.mxu2 }
 0x959   :  { %v1857_v34 = vadd.f32 %v4367_v10, %v1856_v52  ;;  %v1914_v52 = vmul.f32 %v4217_v25, %v5514_v46  ;;  %v2041_v10 = vmul.f32 %v4658_v44, %v1836_v19  ;;  %v4368_v46 = vld [vmem:[%s6450_s1 + $0x18] sm:$0x7] }
 0x95b   :  { %v1962_v29 = vmul.f32 %v4650_v41, %v1857_v34  ;;  %v1922_v58 = vmul.f32 %v4653_v42, %v1857_v34  ;;  %v2048_v62 = vmul.f32 %v4658_v44, %v1857_v34 }
 0x95d   :  { %1974 = vmatpush.msra.mxu0 %v1962_v29  ;;  %1997 = vmatpush.msra.mxu1 %v1922_v58  ;;  %v2112_v29 = vmul.f32 %v4661_v45, %v1857_v34  ;;  %v2111_v58 = vmul.f32 %v4661_v45, %v5593_v51  ;;  %v2110_v34 = vmul.f32 %v4661_v45, %v5595_v14 }
 0x95e   :  { %2060 = vmatpush.msra.mxu3 %v2048_v62  ;;  %v2108_v51 = vmul.f32 %v4661_v45, %v5608_v32  ;;  %v2107_v62 = vmul.f32 %v4661_v45, %v1842_v6  ;;  %v2106_v14 = vmul.f32 %v4661_v45, %v1839_v59 }
 0x95f   :  { %1975 = vmatpush.msra.mxu0 %v1961_v48  ;;  %1998 = vmatpush.msra.mxu1 %v1921_v43  ;;  %v4372_v48 = vld [vmem:[%s6450_s1 + $0x80] sm:$0xff] }
 0x960   :  { %2061 = vmatpush.msra.mxu3 %v2047_v24  ;;  %v2026_v13 = vpop.f32.mrf.mxu2 }
 0x961   :  { %v5616_v30 = vmul.f32 0.17677669, %v2026_v13  ;;  %1976 = vmatpush.msra.mxu0 %v1960_v63  ;;  %1999 = vmatpush.msra.mxu1 %v1920_v28 }
 0x962   :  { %2062 = vmatpush.msra.mxu3 %v2046_v16 }
 0x963   :  { %1977 = vmatpush.msra.mxu0 %v1959_v61  ;;  %2000 = vmatpush.msra.mxu1 %v1919_v38  ;;  %v2030_v53 = vsel %vm279_vm13, %v5616_v30, -inf  ;;  %v4375_v38 = vld [vmem:[%s6449_s0 + $0x50] sm:$0xff] }
 0x964   :  { %2063 = vmatpush.msra.mxu3 %v2045_v33  ;;  %2031 = vmax.xlane.f32.xlu0 %v2030_v53  ;;  %v4376_v33 = vld [vmem:[%s6449_s0 + $0x58] sm:$0xff] }
 0x965   :  { %1978 = vmatpush.msra.mxu0 %v1958_v9  ;;  %2001 = vmatpush.msra.mxu1 %v1918_v60  ;;  %v4377_v60 = vld [vmem:[%s6449_s0 + $0x60] sm:$0xff] }
 0x966   :  { %2064 = vmatpush.msra.mxu3 %v2044_v49 }
 0x967   :  { %1979 = vmatpush.msra.mxu0 %v1957_v36  ;;  %2002 = vmatpush.msra.mxu1 %v1917_v40  ;;  %v4378_v36 = vld [vmem:[%s6449_s0 + $0x68] sm:$0xff]  ;;  %v4379_v40 = vld [vmem:[%s6449_s0 + $0x70] sm:$0xff] }
 0x968   :  { %2065 = vmatpush.msra.mxu3 %v2043_v5 }
 0x969   :  { %1980 = vmatpush.msra.mxu0 %v1956_v15  ;;  %2003 = vmatpush.msra.mxu1 %v1916_v11 }
 0x96a   :  { %2066 = vmatpush.msra.mxu3 %v2042_v21 }
 0x96b   :  { %1981 = vmatpush.msra.mxu0 %v1955_v57  ;;  %2004 = vmatpush.msra.mxu1 %v1915_v54 }
 0x96c   :  { %2067 = vmatpush.msra.mxu3 %v2041_v10  ;;  %3916 = vmatmul.msk.f32.vlgmr.msra.gmra.mxu1 %vm279_vm13, %v1914_v52 }
 0x96d   :  { %3927 = vmatpush.xpose.msk.msrb.mxu0 %vm90_vm2, %v5323_v3  ;;  %2124 = vmatpush.msrb.mxu1 %v2112_v29  ;;  %v2109_v3 = vmul.f32 %v4661_v45, %v5600_v56  ;;  %v4369_v56 = vld [vmem:[%s6450_s1 + $0x98] sm:$0xff] }
 0x96e   :  { %3938 = vmatpush.msk.msrb.mxu3 %vm140_vm0, %v4368_v46  ;;  %vm3343_vm0 = vcmask 1040384  }
 0x96f   :  { %2125 = vmatpush.msrb.mxu1 %v2111_v58 }
 0x971   :  { %3928 = vmatpush.xpose.msk.msrb.mxu0 %vm90_vm2, %v5325_v20  ;;  %2126 = vmatpush.msrb.mxu1 %v2110_v34  ;;  %v2105_v20 = vmul.f32 %v4661_v45, %v1836_v19 }
 0x973   :  { %2127 = vmatpush.msrb.mxu1 %v2109_v3 }
 0x975   :  { %3929 = vmatpush.xpose.msk.msrb.mxu0 %vm90_vm2, %v5330_v35  ;;  %2128 = vmatpush.msrb.mxu1 %v2108_v51  ;;  %v4370_v35 = vld [vmem:[%s6450_s1 + $0x90] sm:$0xff] }
 0x977   :  { %2129 = vmatpush.msrb.mxu1 %v2107_v62 }
 0x979   :  { %3930 = vmatpush.xpose.msk.msrb.mxu0 %vm90_vm2, %v5335_v31  ;;  %2130 = vmatpush.msrb.mxu1 %v2106_v14  ;;  %v4371_v31 = vld [vmem:[%s6450_s1 + $0x88] sm:$0xff] }
 0x97b   :  { %2131 = vmatpush.msrb.mxu1 %v2105_v20 }
 0x97c   :  { %v1952_v7 = vpop.xlane.xlu1 %1951 }
 0x97d   :  { %2239 = vmatpush.msra.mxu1 %v4369_v56  ;;  %4218 = vrcp.f32 %v1952_v7  ;;  %3931 = vmatpush.xpose.msk.msrb.mxu0 %vm90_vm2, %v5340_v22 }
 0x97f   :  { %2240 = vmatpush.msra.mxu1 %v4370_v35 }
 0x981   :  { %2241 = vmatpush.msra.mxu1 %v4371_v31  ;;  %3932 = vmatpush.xpose.msk.msrb.mxu0 %vm90_vm2, %v5347_v26  ;;  %v4382_v31 = vld [vmem:[%s6450_s1 + $0x100] ss:$0 sm:$0xff] }
 0x983   :  { %2242 = vmatpush.msra.mxu1 %v4372_v48  ;;  %v4219_v43 = vpop.eup %4218 }
 0x984   :  { %v1954_v22 = vmul.f32 %v4219_v43, %v5584_v47 }
 0x985   :  { %3933 = vmatpush.xpose.msk.msrb.mxu0 %vm90_vm2, %v5352_v4 }
 0x986   :  { %3915 = vmatmul.msk.f32.vlgmr.msra.gmra.mxu0 %vm279_vm13, %v1954_v22  ;;  %v4383_v22 = vld [vmem:[%s6450_s1 + $0x108] ss:$0 sm:$0xff] }
 0x989   :  { %3934 = vmatpush.xpose.msk.msrb.mxu0 %vm90_vm2, %v5365_v12 }
 0x98e   :  { %3935 = vmatmul.msk.f32.vlgmr.msrb.gmra.mxu0 %vm90_vm2, %v4680_v50  ;;  %v4373_v50 = vld [vmem:[%s6449_s0 + $0x40] sm:$0xff] }
 0x9d7   :  { %v2032_v26 = vpop.xlane.xlu0 %2031 }
 0x9d8   :  { %v2033_v24 = vsub.f32 %v5616_v30, %v2032_v26  ;;  %v4374_v30 = vld [vmem:[%s6449_s0 + $0x48] sm:$0xff] }
 0x9da   :  { %v2034_v32 = vmul.f32 1.442695, %v2033_v24 }
 0x9dc   :  { %4220 = vpow2.f32 %v2034_v32 }
 0x9e2   :  { %v4221_v63 = vpop.eup %4220 }
 0x9e3   :  { %v2036_v28 = vsel %vm279_vm13, %v4221_v63, 0.0 }
 0x9e4   :  { %2037 = vadd.xlane.f32.xlu0 %v2036_v28 }
 0x9e9   :  { %v2006_v11 = vpop.f32.mrf.mxu1 }
 0xa03   :  { %v1983_v47 = vpop.f32.mrf.mxu0 }
 0xa04   :  { %v2007_v57 = vadd.f32 %v2006_v11, %v1983_v47 }
 0xa0b   :  { %v2090_v13 = vpop.f32.mrf.mxu0 }
 0xa0c   :  { %v2093_v4 = vmul.f32 0.17677669, %v2090_v13 }
 0xa0e   :  { %v2094_v16 = vsel %vm279_vm13, %v2093_v4, -inf }
 0xa0f   :  { %2095 = vmax.xlane.f32.xlu1 %v2094_v16 }
 0xa57   :  { %v2038_v6 = vpop.xlane.xlu0 %2037 }
 0xa58   :  { %4222 = vrcp.f32 %v2038_v6  ;;  %v6462_v6 = vld [vmem:[#allocation10_spill] sm:$0xff] }
 0xa5e   :  { %v4223_v12 = vpop.eup %4222 }
 0xa5f   :  { %v2040_v61 = vmul.f32 %v4223_v12, %v4221_v63 }
 0xa61   :  { %3926 = vmatmul.msk.f32.vlgmr.msra.gmra.mxu3 %vm279_vm13, %v2040_v61 }
 0xa69   :  { %3939 = vmatmul.msk.f32.vlgmr.msrb.gmra.mxu3 %vm115_vm1, %v4373_v50 }
 0xa71   :  { %3940 = vmatmul.msk.f32.gmra.mxu3 %vm115_vm1, %v4374_v30 }
 0xa79   :  { %3941 = vmatmul.msk.f32.gmra.mxu3 %vm115_vm1, %v4375_v38 }
 0xa81   :  { %3942 = vmatmul.msk.f32.gmra.mxu3 %vm115_vm1, %v4376_v33 }
 0xa82   :  { %v2096_v59 = vpop.xlane.xlu1 %2095 }
 0xa83   :  { %v2097_v53 = vsub.f32 %v2093_v4, %v2096_v59 }
 0xa85   :  { %v2098_v9 = vmul.f32 1.442695, %v2097_v53 }
 0xa87   :  { %4224 = vpow2.f32 %v2098_v9 }
 0xa89   :  { %3943 = vmatmul.msk.f32.gmra.mxu3 %vm115_vm1, %v4377_v60 }
 0xa8d   :  { %v4225_v49 = vpop.eup %4224 }
 0xa8e   :  { %v2100_v19 = vsel %vm279_vm13, %v4225_v49, 0.0 }
 0xa8f   :  { %2101 = vadd.xlane.f32.xlu1 %v2100_v19 }
 0xa91   :  { %3944 = vmatmul.msk.f32.gmra.mxu3 %vm115_vm1, %v4378_v36 }
 0xa99   :  { %3945 = vmatmul.msk.f32.gmra.mxu3 %vm115_vm1, %v4379_v40 }
 0xaa1   :  { %3946 = vmatmul.msk.f32.gmra.mxu3 %vm115_vm1, %v5257_v18  ;;  %v4380_v18 = vld [vmem:[%s6450_s1 + $0xf8] ss:$0 sm:$0xff]  ;;  %vm3345_vm1 = vcmask 254976  }
 0xae4   :  { %v2069_v21 = vpop.f32.mrf.mxu3 }
 0xae5   :  { %v2072_v54 = vadd.f32 %v2069_v21, %v2007_v57 }
 0xaec   :  { %v2180_v51 = vpop.f32.mrf.mxu3 }
 0xaed   :  { %v5743_v48 = vadd.f32 %v4382_v31, %v2180_v51 }
 0xaef   :  { %v2247_v32 = vmul.f32 %v4653_v42, %v5743_v48  ;;  %v2420_v63 = vmul.f32 %v4650_v41, %v5743_v48 }
 0xaf4   :  { %v2183_v62 = vpop.f32.mrf.mxu3 }
 0xaf5   :  { %v5759_v47 = vadd.f32 %v4382_v31, %v2183_v62 }
 0xaf7   :  { %v2248_v13 = vmul.f32 %v4653_v42, %v5759_v47  ;;  %v2421_v4 = vmul.f32 %v4650_v41, %v5759_v47 }
 0xafc   :  { %v2186_v24 = vpop.f32.mrf.mxu3 }
 0xb02   :  { %v2102_v25 = vpop.xlane.xlu1 %2101 }
 0xb03   :  { %4226 = vrcp.f32 %v2102_v25 }
 0xb04   :  { %v2189_v16 = vpop.f32.mrf.mxu3 }
 0xb09   :  { %v4227_v5 = vpop.eup %4226 }
 0xb0a   :  { %v2104_v15 = vmul.f32 %v4227_v5, %v4225_v49  ;;  %v2720_v5 = vmul.f32 %v4658_v44, %v5743_v48 }
 0xb0c   :  { %3936 = vmatmul.msk.f32.vlgmr.msrb.gmra.mxu1 %vm279_vm13, %v2104_v15  ;;  %v2721_v15 = vmul.f32 %v4658_v44, %v5759_v47 }
 0xb89   :  { %v2133_v52 = vpop.f32.mrf.mxu1 }
 0xb8a   :  { %v2136_v10 = vadd.f32 %v2133_v52, %v2072_v54 }
 0xb8c   :  { %v2137_v29 = vadd.f32 %v2136_v10, %v4645_v39  ;;  %v4381_v39 = vld [vmem:[%s6450_s1 + $0x110] ss:$0 sm:$0xff] }
 0xb8e   :  { %3937 = vmatmul.msk.f32.vlgmr.msra.gmra.mxu2 %vm90_vm2, %v2137_v29 }
 0xc11   :  { %v2158_v58 = vpop.f32.mrf.mxu2 }
 0xc12   :  { %v2159_v46 = vadd.f32 %v4380_v18, %v2158_v58 }
 0xc14   :  { %v2161_v34 = vmax.f32 %v2159_v46, 0.0 }
 0xc16   :  { %v2162_v3 = vadd.f32 %v2161_v34, %v2137_v29 }
 0xc18   :  { %3947 = vmatmul.msk.f32.vlgmr.msrb.gmra.mxu2 %vm90_vm2, %v2162_v3  ;;  %3948 = vmatmul.msk.f32.vlgmr.msra.gmra.mxu1 %vm90_vm2, %v2162_v3 }
 0xc95   :  { %v2244_v14 = vpop.f32.mrf.mxu1 }
 0xc96   :  { %v2245_v20 = vadd.f32 %v4381_v39, %v2244_v14 }
 0xc98   :  { %v2589_v7 = vmul.f32 %v4650_v41, %v2245_v20  ;;  %v2419_v56 = vmul.f32 %v4653_v42, %v2245_v20  ;;  %v3132_v35 = vmul.f32 %v4661_v45, %v2245_v20  ;;  %v2889_v28 = vmul.f32 %v4658_v44, %v2245_v20 }
 0xc9a   :  { %2629 = vmatpush.msra.mxu0 %v2589_v7  ;;  %2694 = vmatpush.msra.mxu3 %v2419_v56 }
 0xc9b   :  { %v2224_v43 = vpop.f32.mrf.mxu2 }
 0xc9c   :  { %3172 = vmatpush.msrb.mxu3 %v3132_v35  ;;  %v2225_v26 = vadd.f32 %v4383_v22, %v2224_v43 }
 0xc9e   :  { %3949 = vmatpush.xpose.msk.msra.mxu2 %vm90_vm2, %v2225_v26  ;;  %3958 = vmatpush.xpose.msk.msrb.mxu1 %vm90_vm2, %v2225_v26 }
 0xc9f   :  { %4000 = vmatpush.xpose.msk.msrb.mxu0 %vm90_vm2, %v2225_v26 }
 0xca1   :  { %3950 = vmatmul.msk.f32.vlgmr.msra.gmra.mxu2 %vm90_vm2, %v2247_v32  ;;  %3959 = vmatmul.msk.f32.vlgmr.msrb.gmra.mxu1 %vm90_vm2, %v2420_v63 }
 0xca2   :  { %3983 = vmatpush.xpose.msk.msrb.mxu2 %vm90_vm2, %v2225_v26  ;;  %2929 = vmatpush.msra.mxu1 %v2889_v28 }
 0xca4   :  { %3332 = vmatpush.msrb.mxu1 %v5476_v17 }
 0xca6   :  { %3250 = vmatpush.msra.mxu2 %v5362_v8  ;;  %3333 = vmatpush.msrb.mxu1 %v5482_v0  ;;  %v5775_v8 = vadd.f32 %v4382_v31, %v2186_v24  ;;  %v2192_v0 = vpop.f32.mrf.mxu3 }
 0xca7   :  { %v5791_v12 = vadd.f32 %v4382_v31, %v2192_v0 }
 0xca8   :  { %3251 = vmatpush.msra.mxu2 %v5378_v1  ;;  %3334 = vmatpush.msrb.mxu1 %v5488_v23  ;;  %v2249_v1 = vmul.f32 %v4653_v42, %v5775_v8  ;;  %v2422_v17 = vmul.f32 %v4650_v41, %v5775_v8 }
 0xca9   :  { %3951 = vmatmul.msk.f32.gmra.mxu2 %vm90_vm2, %v2248_v13  ;;  %3960 = vmatmul.msk.f32.gmra.mxu1 %vm90_vm2, %v2421_v4  ;;  %v2251_v50 = vmul.f32 %v4653_v42, %v5791_v12  ;;  %v2424_v30 = vmul.f32 %v4650_v41, %v5791_v12  ;;  %v2724_v11 = vmul.f32 %v4658_v44, %v5791_v12 }
 0xcaa   :  { %3252 = vmatpush.msra.mxu2 %v5384_v2  ;;  %3335 = vmatpush.msrb.mxu1 %v5495_v55  ;;  %v5783_v2 = vadd.f32 %v4382_v31, %v2189_v16 }
 0xcac   :  { %3253 = vmatpush.msra.mxu2 %v6462_v6  ;;  %v2250_v23 = vmul.f32 %v4653_v42, %v5783_v2  ;;  %v2423_v55 = vmul.f32 %v4650_v41, %v5783_v2 }
 0xcae   :  { %v2195_v61 = vpop.f32.mrf.mxu3 }
 0xcaf   :  { %v5799_v38 = vadd.f32 %v4382_v31, %v2195_v61 }
 0xcb1   :  { %3952 = vmatmul.msk.f32.gmra.mxu2 %vm90_vm2, %v2249_v1  ;;  %3961 = vmatmul.msk.f32.gmra.mxu1 %vm90_vm2, %v2422_v17  ;;  %v2252_v59 = vmul.f32 %v4653_v42, %v5799_v38  ;;  %v2425_v53 = vmul.f32 %v4650_v41, %v5799_v38  ;;  %v2725_v21 = vmul.f32 %v4658_v44, %v5799_v38 }
 0xcb6   :  { %v2198_v33 = vpop.f32.mrf.mxu3 }
 0xcb7   :  { %v5807_v9 = vadd.f32 %v4382_v31, %v2198_v33 }
 0xcb9   :  { %3953 = vmatmul.msk.f32.gmra.mxu2 %vm90_vm2, %v2250_v23  ;;  %3962 = vmatmul.msk.f32.gmra.mxu1 %vm90_vm2, %v2423_v55  ;;  %v2253_v60 = vmul.f32 %v4653_v42, %v5807_v9  ;;  %v2426_v49 = vmul.f32 %v4650_v41, %v5807_v9  ;;  %v2726_v57 = vmul.f32 %v4658_v44, %v5807_v9 }
 0xcbe   :  { %v2201_v19 = vpop.f32.mrf.mxu3 }
 0xcbf   :  { %v5815_v36 = vadd.f32 %v4382_v31, %v2201_v19 }
 0xcc1   :  { %3954 = vmatmul.msk.f32.gmra.mxu2 %vm90_vm2, %v2251_v50  ;;  %3963 = vmatmul.msk.f32.gmra.mxu1 %vm90_vm2, %v2424_v30  ;;  %v2254_v40 = vmul.f32 %v4653_v42, %v5815_v36  ;;  %v2427_v25 = vmul.f32 %v4650_v41, %v5815_v36  ;;  %v2722_v42 = vmul.f32 %v4658_v44, %v5775_v8 }
 0xcc2   :  { %v2723_v41 = vmul.f32 %v4658_v44, %v5783_v2  ;;  %v2727_v54 = vmul.f32 %v4658_v44, %v5815_v36 }
 0xcc9   :  { %3955 = vmatmul.msk.f32.gmra.mxu2 %vm90_vm2, %v2252_v59  ;;  %3964 = vmatmul.msk.f32.gmra.mxu1 %vm90_vm2, %v2425_v53 }
 0xcd1   :  { %3956 = vmatmul.msk.f32.gmra.mxu2 %vm90_vm2, %v2253_v60  ;;  %3965 = vmatmul.msk.f32.gmra.mxu1 %vm90_vm2, %v2426_v49 }
 0xcd9   :  { %3957 = vmatmul.msk.f32.gmra.mxu2 %vm90_vm2, %v2254_v40  ;;  %3966 = vmatmul.msk.f32.gmra.mxu1 %vm90_vm2, %v2427_v25 }
 0xce1   :  { %3984 = vmatmul.msk.f32.vlgmr.msrb.gmra.mxu2 %vm90_vm2, %v2720_v5 }
 0xce9   :  { %3985 = vmatmul.msk.f32.gmra.mxu2 %vm90_vm2, %v2721_v15 }
 0xcf1   :  { %3986 = vmatmul.msk.f32.gmra.mxu2 %vm90_vm2, %v2722_v42 }
 0xcf9   :  { %3987 = vmatmul.msk.f32.gmra.mxu2 %vm90_vm2, %v2723_v41 }
 0xd01   :  { %3988 = vmatmul.msk.f32.gmra.mxu2 %vm90_vm2, %v2724_v11 }
 0xd09   :  { %3989 = vmatmul.msk.f32.gmra.mxu2 %vm90_vm2, %v2725_v21 }
 0xd11   :  { %3990 = vmatmul.msk.f32.gmra.mxu2 %vm90_vm2, %v2726_v57 }
 0xd19   :  { %3991 = vmatmul.msk.f32.gmra.mxu2 %vm90_vm2, %v2727_v54 }
 0xd1e   :  { %v2469_v52 = vpop.f32.mrf.mxu1 }
 0xd1f   :  { %v2493_v10 = vmul.f32 0.17677669, %v2469_v52 }
 0xd21   :  { %v2501_v29 = vsel %vm726_vm14, %v2493_v10, -inf }
 0xd22   :  { %2502 = vmax.xlane.f32.xlu2 %v2501_v29 }
 0xd24   :  { %v2299_v1 = vpop.f32.mrf.mxu2 }
 0xd26   :  { %v2472_v58 = vpop.f32.mrf.mxu1 }
 0xd27   :  { %v2494_v18 = vmul.f32 0.17677669, %v2472_v58 }
 0xd29   :  { %v2504_v46 = vsel %vm726_vm14, %v2494_v18, -inf }
 0xd2a   :  { %2505 = vmax.xlane.f32.xlu0 %v2504_v46 }
 0xd2c   :  { %v2302_v33 = vpop.f32.mrf.mxu2 }
 0xd2e   :  { %v2475_v34 = vpop.f32.mrf.mxu1 }
 0xd2f   :  { %v2495_v3 = vmul.f32 0.17677669, %v2475_v34 }
 0xd31   :  { %v2507_v51 = vsel %vm726_vm14, %v2495_v3, -inf }
 0xd32   :  { %2508 = vmax.xlane.f32.xlu1 %v2507_v51 }
 0xd34   :  { %v2305_v25 = vpop.f32.mrf.mxu2 }
 0xd36   :  { %v2478_v62 = vpop.f32.mrf.mxu1 }
 0xd37   :  { %v2496_v14 = vmul.f32 0.17677669, %v2478_v62  ;;  %v5879_v62 = vmul.f32 0.17677669, %v2299_v1 }
 0xd39   :  { %v2510_v44 = vsel %vm726_vm14, %v2496_v14, -inf }
 0xd3a   :  { %2511 = vmax.xlane.f32.xlu2 %v2510_v44 }
 0xd3c   :  { %v2308_v21 = vpop.f32.mrf.mxu2 }
 0xd3e   :  { %v2481_v39 = vpop.f32.mrf.mxu1 }
 0xd3f   :  { %v2497_v20 = vmul.f32 0.17677669, %v2481_v39 }
 0xd41   :  { %v2513_v7 = vsel %vm726_vm14, %v2497_v20, -inf }
 0xd42   :  { %2514 = vmax.xlane.f32.xlu0 %v2513_v7 }
 0xd44   :  { %v2311_v46 = vpop.f32.mrf.mxu2 }
 0xd46   :  { %v2484_v56 = vpop.f32.mrf.mxu1 }
 0xd47   :  { %v2498_v35 = vmul.f32 0.17677669, %v2484_v56 }
 0xd49   :  { %v2516_v31 = vsel %vm726_vm14, %v2498_v35, -inf }
 0xd4a   :  { %2517 = vmax.xlane.f32.xlu1 %v2516_v31  ;;  %v5887_v31 = vmul.f32 0.17677669, %v2302_v33 }
 0xd4c   :  { %v2314_v7 = vpop.f32.mrf.mxu2 }
 0xd4e   :  { %v2487_v43 = vpop.f32.mrf.mxu1 }
 0xd4f   :  { %v2499_v22 = vmul.f32 0.17677669, %v2487_v43  ;;  %v5889_v43 = vmul.f32 0.17677669, %v2308_v21 }
 0xd51   :  { %v2519_v26 = vsel %vm726_vm14, %v2499_v22, -inf }
 0xd52   :  { %2520 = vmax.xlane.f32.xlu2 %v2519_v26 }
 0xd56   :  { %v2490_v24 = vpop.f32.mrf.mxu1 }
 0xd57   :  { %v2500_v32 = vmul.f32 0.17677669, %v2490_v24  ;;  %v2334_v24 = vsel %vm726_vm14, %v5887_v31, -inf }
 0xd59   :  { %v2522_v63 = vsel %vm726_vm14, %v2500_v32, -inf }
 0xd5a   :  { %2523 = vmax.xlane.f32.xlu1 %v2522_v63  ;;  %v2317_v63 = vpop.f32.mrf.mxu2 }
 0xd95   :  { %v2503_v28 = vpop.xlane.xlu2 %2502 }
 0xd96   :  { %v2525_v13 = vsub.f32 %v2493_v10, %v2503_v28  ;;  %v5899_v28 = vmul.f32 0.17677669, %v2305_v25 }
 0xd98   :  { %v2533_v4 = vmul.f32 1.442695, %v2525_v13  ;;  %v5901_v13 = vmul.f32 0.17677669, %v2311_v46 }
 0xd9a   :  { %4228 = vpow2.f32 %v2533_v4  ;;  %v5903_v4 = vmul.f32 0.17677669, %v2317_v63 }
 0xd9c   :  { %v2349_v1 = vsel %vm726_vm14, %v5903_v4, -inf }
 0xd9d   :  { %v2506_v16 = vpop.xlane.xlu0 %2505 }
 0xd9e   :  { %v2526_v6 = vsub.f32 %v2494_v18, %v2506_v16  ;;  %v2337_v16 = vsel %vm726_vm14, %v5899_v28, -inf }
 0xda0   :  { %v5855_v17 = vpop.eup %4228  ;;  %v2535_v0 = vmul.f32 1.442695, %v2526_v6  ;;  %v2343_v6 = vsel %vm726_vm14, %v5901_v13, -inf }
 0xda1   :  { %v2549_v23 = vsel %vm726_vm14, %v5855_v17, 0.0 }
 0xda2   :  { %4230 = vpow2.f32 %v2535_v0  ;;  %2550 = vadd.xlane.f32.xlu0 %v2549_v23  ;;  %v5911_v0 = vmul.f32 0.17677669, %v2314_v7 }
 0xda4   :  { %v2346_v23 = vsel %vm726_vm14, %v5911_v0, -inf }
 0xda5   :  { %v2509_v55 = vpop.xlane.xlu1 %2508 }
 0xda6   :  { %v2527_v61 = vsub.f32 %v2495_v3, %v2509_v55  ;;  %v2320_v55 = vpop.f32.mrf.mxu2 }
 0xda8   :  { %v5859_v50 = vpop.eup %4230  ;;  %v2537_v30 = vmul.f32 1.442695, %v2527_v61  ;;  %v5915_v61 = vmul.f32 0.17677669, %v2320_v55 }
 0xda9   :  { %v2552_v59 = vsel %vm726_vm14, %v5859_v50, 0.0 }
 0xdaa   :  { %4232 = vpow2.f32 %v2537_v30  ;;  %2553 = vadd.xlane.f32.xlu2 %v2552_v59  ;;  %v2352_v30 = vsel %vm726_vm14, %v5915_v61, -inf }
 0xdad   :  { %v2512_v53 = vpop.xlane.xlu2 %2511 }
 0xdae   :  { %v2528_v60 = vsub.f32 %v2496_v14, %v2512_v53 }
 0xdb0   :  { %v5863_v49 = vpop.eup %4232  ;;  %v2539_v19 = vmul.f32 1.442695, %v2528_v60 }
 0xdb1   :  { %v2555_v40 = vsel %vm726_vm14, %v5863_v49, 0.0 }
 0xdb2   :  { %4234 = vpow2.f32 %v2539_v19  ;;  %2556 = vadd.xlane.f32.xlu0 %v2555_v40 }
 0xdb5   :  { %v2515_v5 = vpop.xlane.xlu0 %2514 }
 0xdb6   :  { %v2529_v15 = vsub.f32 %v2497_v20, %v2515_v5 }
 0xdb8   :  { %v5867_v42 = vpop.eup %4234  ;;  %v2541_v41 = vmul.f32 1.442695, %v2529_v15 }
 0xdb9   :  { %v2558_v11 = vsel %vm726_vm14, %v5867_v42, 0.0 }
 0xdba   :  { %4236 = vpow2.f32 %v2541_v41  ;;  %2559 = vadd.xlane.f32.xlu1 %v2558_v11 }
 0xdbd   :  { %v2518_v57 = vpop.xlane.xlu1 %2517 }
 0xdbe   :  { %v2530_v54 = vsub.f32 %v2498_v35, %v2518_v57  ;;  %v2331_v35 = vsel %vm726_vm14, %v5879_v62, -inf }
 0xdc0   :  { %v5871_v52 = vpop.eup %4236  ;;  %v2543_v10 = vmul.f32 1.442695, %v2530_v54 }
 0xdc1   :  { %v2561_v29 = vsel %vm726_vm14, %v5871_v52, 0.0 }
 0xdc2   :  { %4238 = vpow2.f32 %v2543_v10  ;;  %2562 = vadd.xlane.f32.xlu2 %v2561_v29 }
 0xdc5   :  { %v2521_v58 = vpop.xlane.xlu2 %2520 }
 0xdc6   :  { %v2531_v18 = vsub.f32 %v2499_v22, %v2521_v58 }
 0xdc8   :  { %v5875_v34 = vpop.eup %4238  ;;  %v2545_v3 = vmul.f32 1.442695, %v2531_v18 }
 0xdc9   :  { %v2564_v51 = vsel %vm726_vm14, %v5875_v34, 0.0 }
 0xdca   :  { %4240 = vpow2.f32 %v2545_v3  ;;  %2565 = vadd.xlane.f32.xlu0 %v2564_v51 }
 0xdcd   :  { %v2524_v14 = vpop.xlane.xlu1 %2523 }
 0xdce   :  { %v2532_v44 = vsub.f32 %v2500_v32, %v2524_v14  ;;  %v2340_v32 = vsel %vm726_vm14, %v5889_v43, -inf  ;;  %v2769_v14 = vpop.f32.mrf.mxu2 }
 0xdd0   :  { %v5881_v39 = vpop.eup %4240  ;;  %v2547_v20 = vmul.f32 1.442695, %v2532_v44 }
 0xdd1   :  { %v2567_v56 = vsel %vm726_vm14, %v5881_v39, 0.0 }
 0xdd2   :  { %4242 = vpow2.f32 %v2547_v20  ;;  %2568 = vadd.xlane.f32.xlu1 %v2567_v56  ;;  %2332 = vmax.xlane.f32.xlu0 %v2331_v35 }
 0xdd8   :  { %v5891_v22 = vpop.eup %4242 }
 0xdd9   :  { %v2570_v26 = vsel %vm726_vm14, %v5891_v22, 0.0 }
 0xdda   :  { %2571 = vadd.xlane.f32.xlu2 %v2570_v26  ;;  %2335 = vmax.xlane.f32.xlu1 %v2334_v24  ;;  %v2772_v24 = vpop.f32.mrf.mxu2 }
 0xddb   :  { %2341 = vmax.xlane.f32.xlu0 %v2340_v32 }
 0xde2   :  { %2338 = vmax.xlane.f32.xlu2 %v2337_v16  ;;  %2344 = vmax.xlane.f32.xlu1 %v2343_v6 }
 0xde3   :  { %2350 = vmax.xlane.f32.xlu0 %v2349_v1  ;;  %v2963_v1 = vmul.f32 %v4661_v45, %v5743_v48 }
 0xdea   :  { %2347 = vmax.xlane.f32.xlu2 %v2346_v23 }
 0xdf2   :  { %2353 = vmax.xlane.f32.xlu2 %v2352_v30 }
 0xe15   :  { %v2551_v33 = vpop.xlane.xlu0 %2550 }
 0xe16   :  { %4244 = vrcp.f32 %v2551_v33  ;;  %v2775_v33 = vpop.f32.mrf.mxu2 }
 0xe1c   :  { %v4245_v59 = vpop.eup %4244 }
 0xe1d   :  { %v2581_v53 = vmul.f32 %v4245_v59, %v5855_v17  ;;  %v2554_v60 = vpop.xlane.xlu2 %2553 }
 0xe1e   :  { %4246 = vrcp.f32 %v2554_v60 }
 0xe1f   :  { %3967 = vmatmul.msk.f32.vlgmr.msra.gmra.mxu0 %vm726_vm14, %v2581_v53  ;;  %v5959_v53 = vmul.f32 0.17677669, %v2772_v24 }
 0xe24   :  { %v4247_v19 = vpop.eup %4246 }
 0xe25   :  { %v2557_v40 = vpop.xlane.xlu0 %2556  ;;  %v2582_v25 = vmul.f32 %v4247_v19, %v5859_v50  ;;  %v2964_v19 = vmul.f32 %v4661_v45, %v5759_v47 }
 0xe26   :  { %4248 = vrcp.f32 %v2557_v40 }
 0xe27   :  { %3968 = vmatmul.msk.f32.gmra.mxu0 %vm726_vm14, %v2582_v25  ;;  %v2804_v25 = vsel %vm726_vm14, %v5959_v53, -inf }
 0xe2c   :  { %v4249_v5 = vpop.eup %4248 }
 0xe2d   :  { %v2560_v15 = vpop.xlane.xlu1 %2559  ;;  %v2583_v41 = vmul.f32 %v4249_v5, %v5863_v49 }
 0xe2e   :  { %4250 = vrcp.f32 %v2560_v15  ;;  %v2778_v15 = vpop.f32.mrf.mxu2 }
 0xe2f   :  { %3969 = vmatmul.msk.f32.gmra.mxu0 %vm726_vm14, %v2583_v41 }
 0xe34   :  { %v4251_v11 = vpop.eup %4250 }
 0xe35   :  { %v2563_v17 = vpop.xlane.xlu2 %2562  ;;  %v2584_v21 = vmul.f32 %v4251_v11, %v5867_v42  ;;  %v5971_v11 = vmul.f32 0.17677669, %v2775_v33 }
 0xe36   :  { %4252 = vrcp.f32 %v2563_v17 }
 0xe37   :  { %3970 = vmatmul.msk.f32.gmra.mxu0 %vm726_vm14, %v2584_v21  ;;  %v2965_v21 = vmul.f32 %v4661_v45, %v5775_v8 }
 0xe3c   :  { %v4253_v57 = vpop.eup %4252 }
 0xe3d   :  { %v2566_v54 = vpop.xlane.xlu0 %2565  ;;  %v2585_v50 = vmul.f32 %v4253_v57, %v5871_v52 }
 0xe3e   :  { %4254 = vrcp.f32 %v2566_v54  ;;  %v2807_v54 = vsel %vm726_vm14, %v5971_v11, -inf }
 0xe3f   :  { %3971 = vmatmul.msk.f32.gmra.mxu0 %vm726_vm14, %v2585_v50 }
 0xe44   :  { %v4255_v10 = vpop.eup %4254 }
 0xe45   :  { %v2569_v29 = vpop.xlane.xlu1 %2568  ;;  %v2333_v49 = vpop.xlane.xlu0 %2332  ;;  %v2586_v58 = vmul.f32 %v4255_v10, %v5875_v34 }
 0xe46   :  { %4256 = vrcp.f32 %v2569_v29  ;;  %v2355_v18 = vsub.f32 %v5879_v62, %v2333_v49  ;;  %v5983_v29 = vmul.f32 0.17677669, %v2778_v15 }
 0xe47   :  { %3972 = vmatmul.msk.f32.gmra.mxu0 %vm726_vm14, %v2586_v58  ;;  %v2966_v58 = vmul.f32 %v4661_v45, %v5783_v2 }
 0xe48   :  { %v2363_v42 = vmul.f32 1.442695, %v2355_v18 }
 0xe4a   :  { %4258 = vpow2.f32 %v2363_v42  ;;  %v2781_v42 = vpop.f32.mrf.mxu2 }
 0xe4c   :  { %v4257_v46 = vpop.eup %4256 }
 0xe4d   :  { %v2572_v3 = vpop.xlane.xlu2 %2571  ;;  %v2336_v51 = vpop.xlane.xlu1 %2335  ;;  %v2587_v52 = vmul.f32 %v4257_v46, %v5881_v39  ;;  %v2810_v46 = vsel %vm726_vm14, %v5983_v29, -inf }
 0xe4e   :  { %4260 = vrcp.f32 %v2572_v3  ;;  %v2356_v44 = vsub.f32 %v5887_v31, %v2336_v51  ;;  %v2342_v56 = vpop.xlane.xlu0 %2341 }
 0xe4f   :  { %3973 = vmatmul.msk.f32.gmra.mxu0 %vm726_vm14, %v2587_v52  ;;  %v2358_v32 = vsub.f32 %v5889_v43, %v2342_v56  ;;  %v5995_v52 = vmul.f32 0.17677669, %v2781_v42  ;;  %v2968_v56 = vmul.f32 %v4661_v45, %v5799_v38 }
 0xe50   :  { %v5935_v20 = vpop.eup %4258  ;;  %v2365_v34 = vmul.f32 1.442695, %v2356_v44 }
 0xe51   :  { %v2379_v62 = vsel %vm726_vm14, %v5935_v20, 0.0  ;;  %v2369_v6 = vmul.f32 1.442695, %v2358_v32 }
 0xe52   :  { %4262 = vpow2.f32 %v2365_v34  ;;  %2380 = vadd.xlane.f32.xlu1 %v2379_v62  ;;  %v2784_v34 = vpop.f32.mrf.mxu2 }
 0xe54   :  { %v4261_v7 = vpop.eup %4260 }
 0xe55   :  { %v2339_v35 = vpop.xlane.xlu2 %2338  ;;  %v2588_v26 = vmul.f32 %v4261_v7, %v5891_v22  ;;  %v5949_v22 = vmul.f32 0.17677669, %v2769_v14  ;;  %v2967_v14 = vmul.f32 %v4661_v45, %v5791_v12  ;;  %v6006_v7 = vmul.f32 0.17677669, %v2784_v34 }
 0xe56   :  { %v2357_v39 = vsub.f32 %v5899_v28, %v2339_v35  ;;  %v2345_v28 = vpop.xlane.xlu1 %2344  ;;  %v2351_v17 = vpop.xlane.xlu0 %2350 }
 0xe57   :  { %3974 = vmatmul.msk.f32.gmra.mxu0 %vm726_vm14, %v2588_v26  ;;  %v2359_v43 = vsub.f32 %v5901_v13, %v2345_v28  ;;  %v2801_v55 = vsel %vm726_vm14, %v5949_v22, -inf  ;;  %v2816_v26 = vsel %vm726_vm14, %v6006_v7, -inf }
 0xe58   :  { %v5942_v31 = vpop.eup %4262  ;;  %v2367_v63 = vmul.f32 1.442695, %v2357_v39 }
 0xe59   :  { %v2382_v16 = vsel %vm726_vm14, %v5942_v31, 0.0  ;;  %v2371_v59 = vmul.f32 1.442695, %v2359_v43 }
 0xe5a   :  { %4264 = vpow2.f32 %v2367_v63  ;;  %2383 = vadd.xlane.f32.xlu0 %v2382_v16  ;;  %v2787_v24 = vpop.f32.mrf.mxu2  ;;  %v2969_v63 = vmul.f32 %v4661_v45, %v5807_v9 }
 0xe5b   :  { %4266 = vpow2.f32 %v2369_v6  ;;  %v6017_v32 = vmul.f32 0.17677669, %v2787_v24  ;;  %v2970_v6 = vmul.f32 %v4661_v45, %v5815_v36 }
 0xe5c   :  { %4268 = vpow2.f32 %v2371_v59 }
 0xe5d   :  { %v2348_v60 = vpop.xlane.xlu2 %2347  ;;  %v2819_v16 = vsel %vm726_vm14, %v6017_v32, -inf }
 0xe5e   :  { %v2360_v13 = vsub.f32 %v5911_v0, %v2348_v60  ;;  %v2361_v0 = vsub.f32 %v5903_v4, %v2351_v17 }
 0xe5f   :  { %4001 = vmatmul.msk.f32.vlgmr.msrb.gmra.mxu0 %vm90_vm2, %v2963_v1 }
 0xe60   :  { %v5952_v23 = vpop.eup %4264  ;;  %v2373_v41 = vmul.f32 1.442695, %v2360_v13  ;;  %v2375_v10 = vmul.f32 1.442695, %v2361_v0 }
 0xe61   :  { %v2385_v30 = vsel %vm726_vm14, %v5952_v23, 0.0  ;;  %v5963_v40 = vpop.eup %4266 }
 0xe62   :  { %2802 = vmax.xlane.f32.xlu0 %v2801_v55  ;;  %2386 = vadd.xlane.f32.xlu2 %v2385_v30  ;;  %v2388_v5 = vsel %vm726_vm14, %v5963_v40, 0.0  ;;  %v5975_v57 = vpop.eup %4268  ;;  %4270 = vpow2.f32 %v2373_v41 }
 0xe63   :  { %v2391_v50 = vsel %vm726_vm14, %v5975_v57, 0.0  ;;  %4272 = vpow2.f32 %v2375_v10 }
 0xe65   :  { %v2354_v49 = vpop.xlane.xlu2 %2353 }
 0xe66   :  { %v2362_v4 = vsub.f32 %v5915_v61, %v2354_v49  ;;  %v2813_v61 = vsel %vm726_vm14, %v5995_v52, -inf }
 0xe67   :  { %4002 = vmatmul.msk.f32.gmra.mxu0 %vm90_vm2, %v2964_v19 }
 0xe68   :  { %v5987_v18 = vpop.eup %4270  ;;  %v2377_v51 = vmul.f32 1.442695, %v2362_v4 }
 0xe69   :  { %v2394_v3 = vsel %vm726_vm14, %v5987_v18, 0.0  ;;  %v5999_v44 = vpop.eup %4272 }
 0xe6a   :  { %2805 = vmax.xlane.f32.xlu0 %v2804_v25  ;;  %2389 = vadd.xlane.f32.xlu2 %v2388_v5  ;;  %4274 = vpow2.f32 %v2377_v51  ;;  %v2397_v62 = vsel %vm726_vm14, %v5999_v44, 0.0 }
 0xe6f   :  { %4003 = vmatmul.msk.f32.gmra.mxu0 %vm90_vm2, %v2965_v21 }
 0xe70   :  { %v6010_v35 = vpop.eup %4274 }
 0xe71   :  { %v2400_v39 = vsel %vm726_vm14, %v6010_v35, 0.0 }
 0xe72   :  { %2808 = vmax.xlane.f32.xlu0 %v2807_v54  ;;  %2392 = vadd.xlane.f32.xlu2 %v2391_v50 }
 0xe77   :  { %4004 = vmatmul.msk.f32.gmra.mxu0 %vm90_vm2, %v2966_v58 }
 0xe7a   :  { %2811 = vmax.xlane.f32.xlu0 %v2810_v46  ;;  %2395 = vadd.xlane.f32.xlu2 %v2394_v3 }
 0xe7f   :  { %4005 = vmatmul.msk.f32.gmra.mxu0 %vm90_vm2, %v2967_v14 }
 0xe82   :  { %2814 = vmax.xlane.f32.xlu0 %v2813_v61  ;;  %2398 = vadd.xlane.f32.xlu2 %v2397_v62 }
 0xe87   :  { %4006 = vmatmul.msk.f32.gmra.mxu0 %vm90_vm2, %v2968_v56 }
 0xe8a   :  { %2817 = vmax.xlane.f32.xlu0 %v2816_v26  ;;  %2401 = vadd.xlane.f32.xlu2 %v2400_v39 }
 0xe8f   :  { %4007 = vmatmul.msk.f32.gmra.mxu0 %vm90_vm2, %v2969_v63 }
 0xe92   :  { %2820 = vmax.xlane.f32.xlu2 %v2819_v16 }
 0xe97   :  { %4008 = vmatmul.msk.f32.gmra.mxu0 %vm90_vm2, %v2970_v6 }
 0xe9c   :  { %v6027_v1 = vpop.f32.mrf.mxu0 }
 0xea4   :  { %v6029_v28 = vpop.f32.mrf.mxu0 }
 0xeac   :  { %v6031_v43 = vpop.f32.mrf.mxu0 }
 0xeb4   :  { %v6033_v55 = vpop.f32.mrf.mxu0 }
 0xebc   :  { %v6035_v30 = vpop.f32.mrf.mxu0 }
 0xec4   :  { %v6037_v33 = vpop.f32.mrf.mxu0 }
 0xec5   :  { %v2381_v59 = vpop.xlane.xlu1 %2380 }
 0xec6   :  { %4276 = vrcp.f32 %v2381_v59 }
 0xecc   :  { %v4277_v60 = vpop.eup %4276  ;;  %v6039_v19 = vpop.f32.mrf.mxu0 }
 0xecd   :  { %v2411_v45 = vmul.f32 %v4277_v60, %v5935_v20  ;;  %v2384_v13 = vpop.xlane.xlu0 %2383 }
 0xece   :  { %4278 = vrcp.f32 %v2384_v13 }
 0xecf   :  { %3975 = vmatmul.msk.f32.vlgmr.msra.gmra.mxu3 %vm726_vm14, %v2411_v45 }
 0xed4   :  { %v4279_v25 = vpop.eup %4278  ;;  %v6043_v5 = vpop.f32.mrf.mxu0 }
 0xed5   :  { %v2387_v15 = vpop.xlane.xlu2 %2386  ;;  %v2412_v41 = vmul.f32 %v4279_v25, %v5942_v31  ;;  %v2803_v59 = vpop.xlane.xlu0 %2802 }
 0xed6   :  { %4280 = vrcp.f32 %v2387_v15  ;;  %v2825_v15 = vsub.f32 %v5949_v22, %v2803_v59 }
 0xed7   :  { %3976 = vmatmul.msk.f32.gmra.mxu3 %vm726_vm14, %v2412_v41 }
 0xed8   :  { %v2833_v41 = vmul.f32 1.442695, %v2825_v15 }
 0xedc   :  { %v4281_v17 = vpop.eup %4280  ;;  %v3012_v21 = vpop.f32.mrf.mxu0 }
 0xedd   :  { %v6047_v0 = vmul.f32 0.17677669, %v3012_v21  ;;  %v2390_v54 = vpop.xlane.xlu2 %2389  ;;  %v2413_v20 = vmul.f32 %v4281_v17, %v5952_v23  ;;  %v2806_v17 = vpop.xlane.xlu0 %2805 }
 0xede   :  { %4282 = vrcp.f32 %v2390_v54 }
 0xedf   :  { %3977 = vmatmul.msk.f32.gmra.mxu3 %vm726_vm14, %v2413_v20  ;;  %v3044_v50 = vsel %vm726_vm14, %v6047_v0, -inf  ;;  %v2826_v20 = vsub.f32 %v5959_v53, %v2806_v17 }
 0xee0   :  { %3045 = vmax.xlane.f32.xlu1 %v3044_v50 }
 0xee4   :  { %v4283_v10 = vpop.eup %4282  ;;  %v3015_v49 = vpop.f32.mrf.mxu0 }
 0xee5   :  { %v6053_v31 = vmul.f32 0.17677669, %v3015_v49  ;;  %v2393_v58 = vpop.xlane.xlu2 %2392  ;;  %v2414_v42 = vmul.f32 %v4283_v10, %v5963_v40 }
 0xee6   :  { %4284 = vrcp.f32 %v2393_v58 }
 0xee7   :  { %3978 = vmatmul.msk.f32.gmra.mxu3 %vm726_vm14, %v2414_v42  ;;  %v3047_v23 = vsel %vm726_vm14, %v6053_v31, -inf }
 0xee8   :  { %3048 = vmax.xlane.f32.xlu1 %v3047_v23 }
 0xeec   :  { %v4285_v4 = vpop.eup %4284  ;;  %v3018_v46 = vpop.f32.mrf.mxu0 }
 0xeed   :  { %v6059_v3 = vmul.f32 0.17677669, %v3018_v46  ;;  %v2396_v51 = vpop.xlane.xlu2 %2395  ;;  %v2415_v14 = vmul.f32 %v4285_v4, %v5975_v57 }
 0xeee   :  { %4286 = vrcp.f32 %v2396_v51  ;;  %v2809_v51 = vpop.xlane.xlu0 %2808 }
 0xeef   :  { %3979 = vmatmul.msk.f32.gmra.mxu3 %vm726_vm14, %v2415_v14  ;;  %v3050_v40 = vsel %vm726_vm14, %v6059_v3, -inf }
 0xef0   :  { %3051 = vmax.xlane.f32.xlu1 %v3050_v40 }
 0xef4   :  { %v4287_v34 = vpop.eup %4286  ;;  %v3021_v61 = vpop.f32.mrf.mxu0 }
 0xef5   :  { %v6065_v62 = vmul.f32 0.17677669, %v3021_v61  ;;  %v2399_v56 = vpop.xlane.xlu2 %2398  ;;  %v2416_v26 = vmul.f32 %v4287_v34, %v5987_v18 }
 0xef6   :  { %4288 = vrcp.f32 %v2399_v56  ;;  %v2827_v56 = vsub.f32 %v5971_v11, %v2809_v51 }
 0xef7   :  { %3980 = vmatmul.msk.f32.gmra.mxu3 %vm726_vm14, %v2416_v26  ;;  %v3053_v57 = vsel %vm726_vm14, %v6065_v62, -inf }
 0xef8   :  { %3054 = vmax.xlane.f32.xlu1 %v3053_v57  ;;  %v2812_v57 = vpop.xlane.xlu0 %2811 }
 0xefc   :  { %v4289_v39 = vpop.eup %4288  ;;  %v3024_v24 = vpop.f32.mrf.mxu0 }
 0xefd   :  { %v6071_v63 = vmul.f32 0.17677669, %v3024_v24  ;;  %v2402_v16 = vpop.xlane.xlu2 %2401  ;;  %v2417_v6 = vmul.f32 %v4289_v39, %v5999_v44  ;;  %v2790_v24 = vpop.f32.mrf.mxu2 }
 0xefe   :  { %4290 = vrcp.f32 %v2402_v16  ;;  %v2837_v16 = vmul.f32 1.442695, %v2827_v56 }
 0xeff   :  { %3981 = vmatmul.msk.f32.gmra.mxu3 %vm726_vm14, %v2417_v6  ;;  %v3056_v18 = vsel %vm726_vm14, %v6071_v63, -inf  ;;  %4292 = vpow2.f32 %v2833_v41 }
 0xf00   :  { %3057 = vmax.xlane.f32.xlu1 %v3056_v18 }
 0xf04   :  { %v4291_v60 = vpop.eup %4290  ;;  %v3027_v45 = vpop.f32.mrf.mxu0 }
 0xf05   :  { %v6077_v13 = vmul.f32 0.17677669, %v3027_v45  ;;  %v2418_v25 = vmul.f32 %v4291_v60, %v6010_v35  ;;  %v2835_v35 = vmul.f32 1.442695, %v2826_v20  ;;  %v6089_v22 = vpop.eup %4292 }
 0xf06   :  { %v2849_v58 = vsel %vm726_vm14, %v6089_v22, 0.0 }
 0xf07   :  { %3982 = vmatmul.msk.f32.gmra.mxu3 %vm726_vm14, %v2418_v25  ;;  %v3059_v44 = vsel %vm726_vm14, %v6077_v13, -inf  ;;  %4294 = vpow2.f32 %v2835_v35  ;;  %v2815_v25 = vpop.xlane.xlu0 %2814 }
 0xf08   :  { %3060 = vmax.xlane.f32.xlu1 %v3059_v44 }
 0xf0c   :  { %v3030_v21 = vpop.f32.mrf.mxu0 }
 0xf0d   :  { %v6084_v54 = vmul.f32 0.17677669, %v3030_v21  ;;  %v6097_v53 = vpop.eup %4294 }
 0xf0e   :  { %v2852_v23 = vsel %vm726_vm14, %v6097_v53, 0.0 }
 0xf0f   :  { %v3062_v50 = vsel %vm726_vm14, %v6084_v54, -inf }
 0xf10   :  { %3063 = vmax.xlane.f32.xlu1 %v3062_v50 }
 0xf14   :  { %v3033_v10 = vpop.f32.mrf.mxu0 }
 0xf15   :  { %v6091_v49 = vmul.f32 0.17677669, %v3033_v10  ;;  %v2818_v10 = vpop.xlane.xlu0 %2817 }
 0xf17   :  { %v3065_v42 = vsel %vm726_vm14, %v6091_v49, -inf }
 0xf18   :  { %2850 = vadd.xlane.f32.xlu1 %v2849_v58  ;;  %3066 = vmax.xlane.f32.xlu2 %v3065_v42 }
 0xf20   :  { %2853 = vadd.xlane.f32.xlu2 %v2852_v23 }
 0xf53   :  { %v3046_v4 = vpop.xlane.xlu1 %3045 }
 0xf54   :  { %v3068_v46 = vsub.f32 %v6047_v0, %v3046_v4  ;;  %v6108_v0 = vmul.f32 0.17677669, %v2790_v24 }
 0xf56   :  { %v3076_v14 = vmul.f32 1.442695, %v3068_v46  ;;  %v2822_v45 = vsel %vm726_vm14, %v6108_v0, -inf }
 0xf58   :  { %4296 = vpow2.f32 %v3076_v14 }
 0xf5b   :  { %v3049_v40 = vpop.xlane.xlu1 %3048 }
 0xf5c   :  { %v3069_v34 = vsub.f32 %v6053_v31, %v3049_v40  ;;  %v2828_v31 = vsub.f32 %v5983_v29, %v2812_v57  ;;  %v2829_v29 = vsub.f32 %v5995_v52, %v2815_v25  ;;  %v2830_v52 = vsub.f32 %v6006_v7, %v2818_v10  ;;  %v2821_v40 = vpop.xlane.xlu2 %2820 }
 0xf5d   :  { %v2831_v7 = vsub.f32 %v6017_v32, %v2821_v40 }
 0xf5e   :  { %v6103_v61 = vpop.eup %4296  ;;  %v3078_v26 = vmul.f32 1.442695, %v3069_v34  ;;  %v2839_v15 = vmul.f32 1.442695, %v2828_v31  ;;  %v2841_v35 = vmul.f32 1.442695, %v2829_v29 }
 0xf5f   :  { %v3092_v39 = vsel %vm726_vm14, %v6103_v61, 0.0  ;;  %v2843_v14 = vmul.f32 1.442695, %v2830_v52 }
 0xf60   :  { %4298 = vpow2.f32 %v3078_v26  ;;  %3093 = vadd.xlane.f32.xlu0 %v3092_v39 }
 0xf61   :  { %4300 = vpow2.f32 %v2837_v16  ;;  %v2845_v16 = vmul.f32 1.442695, %v2831_v7 }
 0xf63   :  { %v3052_v6 = vpop.xlane.xlu1 %3051 }
 0xf64   :  { %v3070_v18 = vsub.f32 %v6059_v3, %v3052_v6 }
 0xf66   :  { %v6111_v59 = vpop.eup %4298  ;;  %v3080_v11 = vmul.f32 1.442695, %v3070_v18 }
 0xf67   :  { %v3095_v60 = vsel %vm726_vm14, %v6111_v59, 0.0  ;;  %v6118_v41 = vpop.eup %4300 }
 0xf68   :  { %4302 = vpow2.f32 %v3080_v11  ;;  %3096 = vadd.xlane.f32.xlu1 %v3095_v60  ;;  %2823 = vmax.xlane.f32.xlu0 %v2822_v45  ;;  %v2855_v20 = vsel %vm726_vm14, %v6118_v41, 0.0 }
 0xf69   :  { %4304 = vpow2.f32 %v2839_v15 }
 0xf6b   :  { %v3055_v44 = vpop.xlane.xlu1 %3054 }
 0xf6c   :  { %v3071_v3 = vsub.f32 %v6065_v62, %v3055_v44 }
 0xf6e   :  { %v6121_v17 = vpop.eup %4302  ;;  %v3082_v21 = vmul.f32 1.442695, %v3071_v3 }
 0xf6f   :  { %v3098_v50 = vsel %vm726_vm14, %v6121_v17, 0.0  ;;  %v6128_v42 = vpop.eup %4304 }
 0xf70   :  { %4306 = vpow2.f32 %v3082_v21  ;;  %2856 = vadd.xlane.f32.xlu1 %v2855_v20  ;;  %3099 = vadd.xlane.f32.xlu0 %v3098_v50  ;;  %v2858_v46 = vsel %vm726_vm14, %v6128_v42, 0.0 }
 0xf71   :  { %4308 = vpow2.f32 %v2841_v35 }
 0xf73   :  { %v3058_v58 = vpop.xlane.xlu1 %3057 }
 0xf74   :  { %v3072_v62 = vsub.f32 %v6071_v63, %v3058_v58 }
 0xf76   :  { %v6131_v23 = vpop.eup %4306  ;;  %v3084_v4 = vmul.f32 1.442695, %v3072_v62 }
 0xf77   :  { %v3101_v51 = vsel %vm726_vm14, %v6131_v23, 0.0  ;;  %v6138_v56 = vpop.eup %4308 }
 0xf78   :  { %4310 = vpow2.f32 %v3084_v4  ;;  %2859 = vadd.xlane.f32.xlu0 %v2858_v46  ;;  %3102 = vadd.xlane.f32.xlu2 %v3101_v51  ;;  %v2861_v24 = vsel %vm726_vm14, %v6138_v56, 0.0 }
 0xf79   :  { %4312 = vpow2.f32 %v2843_v14 }
 0xf7b   :  { %v3061_v34 = vpop.xlane.xlu1 %3060 }
 0xf7c   :  { %v3073_v63 = vsub.f32 %v6077_v13, %v3061_v34 }
 0xf7e   :  { %v6141_v26 = vpop.eup %4310  ;;  %v3086_v57 = vmul.f32 1.442695, %v3073_v63 }
 0xf7f   :  { %v3104_v39 = vsel %vm726_vm14, %v6141_v26, 0.0  ;;  %v6148_v18 = vpop.eup %4312 }
 0xf80   :  { %4314 = vpow2.f32 %v3086_v57  ;;  %3105 = vadd.xlane.f32.xlu1 %v3104_v39  ;;  %2862 = vadd.xlane.f32.xlu2 %v2861_v24  ;;  %v2864_v11 = vsel %vm726_vm14, %v6148_v18, 0.0 }
 0xf81   :  { %4316 = vpow2.f32 %v2845_v16 }
 0xf83   :  { %v3064_v6 = vpop.xlane.xlu1 %3063 }
 0xf84   :  { %v3074_v13 = vsub.f32 %v6084_v54, %v3064_v6 }
 0xf86   :  { %v6151_v31 = vpop.eup %4314  ;;  %v3088_v32 = vmul.f32 1.442695, %v3074_v13 }
 0xf87   :  { %v3107_v60 = vsel %vm726_vm14, %v6151_v31, 0.0  ;;  %v6157_v15 = vpop.eup %4316 }
 0xf88   :  { %4318 = vpow2.f32 %v3088_v32  ;;  %2865 = vadd.xlane.f32.xlu1 %v2864_v11  ;;  %3108 = vadd.xlane.f32.xlu0 %v3107_v60  ;;  %v2867_v21 = vsel %vm726_vm14, %v6157_v15, 0.0 }
 0xf8b   :  { %v2851_v45 = vpop.xlane.xlu1 %2850  ;;  %v3067_v25 = vpop.xlane.xlu2 %3066 }
 0xf8c   :  { %4320 = vrcp.f32 %v2851_v45  ;;  %v3075_v54 = vsub.f32 %v6091_v49, %v3067_v25 }
 0xf8e   :  { %v6160_v44 = vpop.eup %4318  ;;  %v3090_v3 = vmul.f32 1.442695, %v3075_v54 }
 0xf8f   :  { %v3110_v29 = vsel %vm726_vm14, %v6160_v44, 0.0 }
 0xf90   :  { %4322 = vpow2.f32 %v3090_v3  ;;  %3111 = vadd.xlane.f32.xlu2 %v3110_v29  ;;  %2868 = vadd.xlane.f32.xlu0 %v2867_v21 }
 0xf92   :  { %v4321_v20 = vpop.eup %4320 }
 0xf93   :  { %v2881_v50 = vmul.f32 %v4321_v20, %v6089_v22  ;;  %v2854_v35 = vpop.xlane.xlu2 %2853 }
 0xf94   :  { %4324 = vrcp.f32 %v2854_v35 }
 0xf95   :  { %3992 = vmatmul.msk.f32.vlgmr.msra.gmra.mxu1 %vm726_vm14, %v2881_v50 }
 0xf96   :  { %v6168_v49 = vpop.eup %4322 }
 0xf97   :  { %v3113_v10 = vsel %vm726_vm14, %v6168_v49, 0.0 }
 0xf98   :  { %3114 = vadd.xlane.f32.xlu1 %v3113_v10 }
 0xf9a   :  { %v4325_v58 = vpop.eup %4324 }
 0xf9b   :  { %v2882_v62 = vmul.f32 %v4325_v58, %v6097_v53 }
 0xf9d   :  { %3993 = vmatmul.msk.f32.gmra.mxu1 %vm726_vm14, %v2882_v62 }
 0xfd3   :  { %v3094_v52 = vpop.xlane.xlu0 %3093 }
 0xfd4   :  { %4326 = vrcp.f32 %v3094_v52 }
 0xfda   :  { %v4327_v4 = vpop.eup %4326 }
 0xfdb   :  { %v3124_v22 = vmul.f32 %v4327_v4, %v6103_v61  ;;  %v3097_v46 = vpop.xlane.xlu1 %3096  ;;  %v2824_v51 = vpop.xlane.xlu0 %2823 }
 0xfdc   :  { %4328 = vrcp.f32 %v3097_v46  ;;  %v2832_v14 = vsub.f32 %v6108_v0, %v2824_v51  ;;  %v2696_v4 = vpop.f32.mrf.mxu3 }
 0xfdd   :  { %4009 = vmatmul.msk.f32.vlgmr.msrb.gmra.mxu3 %vm726_vm14, %v3124_v22 }
 0xfde   :  { %v2847_v40 = vmul.f32 1.442695, %v2832_v14 }
 0xfe0   :  { %4330 = vpow2.f32 %v2847_v40 }
 0xfe2   :  { %v4329_v34 = vpop.eup %4328 }
 0xfe3   :  { %v2857_v63 = vpop.xlane.xlu1 %2856  ;;  %v3100_v7 = vpop.xlane.xlu0 %3099  ;;  %v3125_v53 = vmul.f32 %v4329_v34, %v6111_v59 }
 0xfe4   :  { %4332 = vrcp.f32 %v2857_v63  ;;  %v2699_v22 = vpop.f32.mrf.mxu3 }
 0xfe5   :  { %4334 = vrcp.f32 %v3100_v7  ;;  %4010 = vmatmul.msk.f32.gmra.mxu3 %vm726_vm14, %v3125_v53 }
 0xfe6   :  { %v6179_v57 = vpop.eup %4330 }
 0xfe7   :  { %v2870_v61 = vsel %vm726_vm14, %v6179_v57, 0.0 }
 0xfe8   :  { %2871 = vadd.xlane.f32.xlu2 %v2870_v61 }
 0xfea   :  { %v4333_v0 = vpop.eup %4332 }
 0xfeb   :  { %v4335_v39 = vpop.eup %4334  ;;  %v2860_v24 = vpop.xlane.xlu0 %2859  ;;  %v2883_v6 = vmul.f32 %v4333_v0, %v6118_v41 }
 0xfec   :  { %v3103_v16 = vpop.xlane.xlu2 %3102  ;;  %4336 = vrcp.f32 %v2860_v24  ;;  %v3126_v13 = vmul.f32 %v4335_v39, %v6121_v17  ;;  %v2702_v46 = vpop.f32.mrf.mxu3 }
 0xfed   :  { %4338 = vrcp.f32 %v3103_v16  ;;  %3994 = vmatmul.msk.f32.gmra.mxu1 %vm726_vm14, %v2883_v6  ;;  %v2700_v6 = vadd.f32 %v2699_v22, %v6029_v28 }
 0xfee   :  { %4011 = vmatmul.msk.f32.gmra.mxu3 %vm726_vm14, %v3126_v13 }
 0xff2   :  { %v4337_v59 = vpop.eup %4336 }
 0xff3   :  { %v4339_v32 = vpop.eup %4338  ;;  %v3106_v11 = vpop.xlane.xlu1 %3105  ;;  %v2884_v45 = vmul.f32 %v4337_v59, %v6128_v42 }
 0xff4   :  { %v2863_v60 = vpop.xlane.xlu2 %2862  ;;  %4340 = vrcp.f32 %v3106_v11  ;;  %v3127_v25 = vmul.f32 %v4339_v32, %v6131_v23  ;;  %v2705_v51 = vpop.f32.mrf.mxu3 }
 0xff5   :  { %4342 = vrcp.f32 %v2863_v60  ;;  %3995 = vmatmul.msk.f32.gmra.mxu1 %vm726_vm14, %v2884_v45 }
 0xff6   :  { %4012 = vmatmul.msk.f32.gmra.mxu3 %vm726_vm14, %v3127_v25 }
 0xffa   :  { %v4341_v41 = vpop.eup %4340 }
 0xffb   :  { %v4343_v17 = vpop.eup %4342  ;;  %v2866_v54 = vpop.xlane.xlu1 %2865  ;;  %v3128_v29 = vmul.f32 %v4341_v41, %v6141_v26  ;;  %v2706_v41 = vadd.f32 %v2705_v51, %v6033_v55 }
 0xffc   :  { %v3109_v3 = vpop.xlane.xlu0 %3108  ;;  %4344 = vrcp.f32 %v2866_v54  ;;  %v2885_v21 = vmul.f32 %v4343_v17, %v6138_v56  ;;  %v2708_v14 = vpop.f32.mrf.mxu3 }
 0xffd   :  { %4346 = vrcp.f32 %v3109_v3 }
 0xffe   :  { %3996 = vmatmul.msk.f32.gmra.mxu1 %vm726_vm14, %v2885_v21  ;;  %4013 = vmatmul.msk.f32.gmra.mxu3 %vm726_vm14, %v3128_v29  ;;  %v2709_v21 = vadd.f32 %v2708_v14, %v6035_v30 }
0x1002   :  { %v4345_v42 = vpop.eup %4344 }
0x1003   :  { %v4347_v23 = vpop.eup %4346  ;;  %v3112_v50 = vpop.xlane.xlu2 %3111  ;;  %v2886_v35 = vmul.f32 %v4345_v42, %v6148_v18 }
0x1004   :  { %v2869_v20 = vpop.xlane.xlu0 %2868  ;;  %v3129_v10 = vmul.f32 %v4347_v23, %v6151_v31  ;;  %v2711_v40 = vpop.f32.mrf.mxu3 }
0x1005   :  { %4348 = vrcp.f32 %v2869_v20  ;;  %v2712_v55 = vadd.f32 %v2711_v40, %v6037_v33 }
0x1006   :  { %4350 = vrcp.f32 %v3112_v50  ;;  %3997 = vmatmul.msk.f32.gmra.mxu1 %vm726_vm14, %v2886_v35  ;;  %4014 = vmatmul.msk.f32.gmra.mxu3 %vm726_vm14, %v3129_v10 }
0x100b   :  { %v4349_v56 = vpop.eup %4348  ;;  %v3115_v58 = vpop.xlane.xlu1 %3114 }
0x100c   :  { %v4351_v26 = vpop.eup %4350  ;;  %v2887_v62 = vmul.f32 %v4349_v56, %v6157_v15  ;;  %4352 = vrcp.f32 %v3115_v58  ;;  %v2714_v34 = vpop.f32.mrf.mxu3 }
0x100d   :  { %v3130_v52 = vmul.f32 %v4351_v26, %v6160_v44  ;;  %v2697_v44 = vadd.f32 %v2696_v4, %v6027_v1  ;;  %v2715_v30 = vadd.f32 %v2714_v34, %v6039_v19 }
0x100e   :  { %3998 = vmatmul.msk.f32.gmra.mxu1 %vm726_vm14, %v2887_v62 }
0x100f   :  { %4015 = vmatmul.msk.f32.gmra.mxu3 %vm726_vm14, %v3130_v52 }
0x1012   :  { %v4353_v18 = vpop.eup %4352  ;;  %v2931_v63 = vpop.f32.mrf.mxu1 }
0x1013   :  { %v3131_v31 = vmul.f32 %v4353_v18, %v6168_v49  ;;  %v2955_v53 = vadd.f32 %v2931_v63, %v2697_v44 }
0x1014   :  { %v2717_v15 = vpop.f32.mrf.mxu3 }
0x1017   :  { %4016 = vmatmul.msk.f32.gmra.mxu3 %vm726_vm14, %v3131_v31 }
0x101a   :  { %v2934_v24 = vpop.f32.mrf.mxu1 }
0x101b   :  { %v2956_v13 = vadd.f32 %v2934_v24, %v2700_v6 }
0x105b   :  { %v2872_v7 = vpop.xlane.xlu2 %2871 }
0x105c   :  { %4354 = vrcp.f32 %v2872_v7 }
0x1060   :  { %v3174_v61 = vpop.f32.mrf.mxu3 }
0x1061   :  { %v3198_v0 = vadd.f32 %v3174_v61, %v2955_v53 }
0x1062   :  { %v4355_v39 = vpop.eup %4354 }
0x1063   :  { %v6207_v49 = vadd.f32 %v3198_v0, %v5743_v48  ;;  %v2888_v16 = vmul.f32 %v4355_v39, %v6179_v57  ;;  %v2703_v48 = vadd.f32 %v2702_v46, %v6031_v43 }
0x1065   :  { %3999 = vmatmul.msk.f32.gmra.mxu1 %vm726_vm14, %v2888_v16  ;;  %4017 = vmatmul.msk.f32.vlgmr.msra.gmra.mxu2 %vm90_vm2, %v6207_v49 }
0x1068   :  { %v3177_v59 = vpop.f32.mrf.mxu3 }
0x1069   :  { %v3199_v1 = vadd.f32 %v3177_v59, %v2956_v13 }
0x106a   :  { %v2937_v32 = vpop.f32.mrf.mxu1 }
0x106b   :  { %v3207_v11 = vadd.f32 %v3199_v1, %v5759_v47  ;;  %v2957_v60 = vadd.f32 %v2937_v32, %v2703_v48  ;;  %v6241_v1 = vld [vmem:[%s6451_s2 + $0x38] sm:$0xff]  ;;  %v6246_v32 = vld [vmem:[%s6451_s2 + $0x30] sm:$0xff] }
0x106c   :  { %4035 = vmatpush.xpose.msk.msra.mxu1 %vm90_vm2, %v6241_v1 }
0x106d   :  { %4018 = vmatmul.msk.f32.gmra.mxu2 %vm90_vm2, %v3207_v11 }
0x1070   :  { %4036 = vmatpush.xpose.msk.msra.mxu1 %vm90_vm2, %v6246_v32 }
0x1071   :  { %v3180_v45 = vpop.f32.mrf.mxu3 }
0x1072   :  { %v3200_v57 = vadd.f32 %v3180_v45, %v2957_v60  ;;  %v2940_v25 = vpop.f32.mrf.mxu1 }
0x1073   :  { %v2958_v17 = vadd.f32 %v2940_v25, %v2706_v41  ;;  %v3365_v41 = vmul.f32 %v6246_v32, %v6246_v32 }
0x1074   :  { %v3208_v28 = vadd.f32 %v3200_v57, %v5775_v8 }
0x1076   :  { %4019 = vmatmul.msk.f32.gmra.mxu2 %vm90_vm2, %v3208_v28 }
0x1079   :  { %v3183_v54 = vpop.f32.mrf.mxu3 }
0x107a   :  { %v3201_v3 = vadd.f32 %v3183_v54, %v2958_v17  ;;  %v3352_v54 = vld [vmem:[%s6451_s2 + $0x28] sm:$0xff] }
0x107b   :  { %v2943_v29 = vpop.f32.mrf.mxu1  ;;  %4037 = vmatpush.xpose.msk.msra.mxu1 %vm90_vm2, %v3352_v54 }
0x107c   :  { %v3209_v47 = vadd.f32 %v3201_v3, %v5783_v2  ;;  %v2959_v43 = vadd.f32 %v2943_v29, %v2709_v21 }
0x107e   :  { %4020 = vmatmul.msk.f32.gmra.mxu2 %vm90_vm2, %v3209_v47 }
0x1081   :  { %v3186_v42 = vpop.f32.mrf.mxu3 }
0x1082   :  { %v3202_v23 = vadd.f32 %v3186_v42, %v2959_v43  ;;  %v3364_v42 = vmul.f32 %v3352_v54, %v3352_v54 }
0x1083   :  { %v2946_v20 = vpop.f32.mrf.mxu1 }
0x1084   :  { %v3210_v8 = vadd.f32 %v3202_v23, %v5791_v12  ;;  %v2960_v50 = vadd.f32 %v2946_v20, %v2712_v55  ;;  %v2718_v12 = vadd.f32 %v2717_v15, %v6043_v5 }
0x1086   :  { %4021 = vmatmul.msk.f32.gmra.mxu2 %vm90_vm2, %v3210_v8 }
0x1089   :  { %v3189_v35 = vpop.f32.mrf.mxu3 }
0x108a   :  { %v3203_v10 = vadd.f32 %v3189_v35, %v2960_v50 }
0x108b   :  { %v2949_v2 = vpop.f32.mrf.mxu1 }
0x108c   :  { %v3211_v56 = vadd.f32 %v3203_v10, %v5799_v38  ;;  %v2961_v26 = vadd.f32 %v2949_v2, %v2715_v30 }
0x108e   :  { %4022 = vmatmul.msk.f32.gmra.mxu2 %vm90_vm2, %v3211_v56 }
0x1092   :  { %v3192_v58 = vpop.f32.mrf.mxu3 }
0x1093   :  { %v3204_v62 = vadd.f32 %v3192_v58, %v2961_v26  ;;  %v3350_v26 = vld [vmem:[%s6451_s2 + $0x18] sm:$0xff] }
0x1095   :  { %v3212_v52 = vadd.f32 %v3204_v62, %v5807_v9  ;;  %v4384_v9 = vld [vmem:[%s6450_s1 + $0x118] ss:$0 sm:$0xff] }
0x1097   :  { %4023 = vmatmul.msk.f32.gmra.mxu2 %vm90_vm2, %v3212_v52 }
0x109a   :  { %v3195_v4 = vpop.f32.mrf.mxu3 }
0x10e2   :  { %v2952_v33 = vpop.f32.mrf.mxu1 }
0x10e3   :  { %v2962_v18 = vadd.f32 %v2952_v33, %v2718_v12  ;;  %v3362_v12 = vmul.f32 %v3350_v26, %v3350_v26 }
0x10e5   :  { %v3205_v31 = vadd.f32 %v3195_v4, %v2962_v18  ;;  %v3349_v18 = vld [vmem:[%s6451_s2 + $0x10] sm:$0xff] }
0x10e7   :  { %v3213_v38 = vadd.f32 %v3205_v31, %v5815_v36  ;;  %v3361_v31 = vmul.f32 %v3349_v18, %v3349_v18 }
0x10e8   :  { %v3255_v19 = vpop.f32.mrf.mxu2 }
0x10e9   :  { %4024 = vmatmul.msk.f32.gmra.mxu2 %vm90_vm2, %v3213_v38  ;;  %v3256_v5 = vadd.f32 %v4384_v9, %v3255_v19  ;;  %v3348_v19 = vld [vmem:[%s6451_s2 + $0x8] sm:$0xff] }
0x10eb   :  { %v3279_v44 = vmax.f32 %v3256_v5, 0.0 }
0x10ed   :  { %v3287_v16 = vadd.f32 %v3279_v44, %v6207_v49  ;;  %v3366_v49 = vmul.f32 %v6241_v1, %v6241_v1 }
0x10ef   :  { %v3295_v45 = vsel %vm90_vm2, %v3287_v16, 0.0  ;;  %4026 = vmatpush.xpose.msk.msra.mxu0 %vm90_vm2, %v3366_v49 }
0x10f0   :  { %v3258_v22 = vpop.f32.mrf.mxu2 }
0x10f1   :  { %v3259_v34 = vadd.f32 %v4384_v9, %v3258_v22 }
0x10f3   :  { %v3280_v63 = vmax.f32 %v3259_v34, 0.0  ;;  %4027 = vmatpush.xpose.msk.msra.mxu0 %vm90_vm2, %v3365_v41 }
0x10f5   :  { %v3288_v0 = vadd.f32 %v3280_v63, %v3207_v11 }
0x10f7   :  { %v3296_v48 = vsel %vm90_vm2, %v3288_v0, 0.0  ;;  %4028 = vmatpush.xpose.msk.msra.mxu0 %vm90_vm2, %v3364_v42 }
0x10f8   :  { %v3297_v17 = vadd.f32 %v3296_v48, %v3295_v45  ;;  %v6463_v48 = vld [vmem:[#allocation9_spill] sm:$0xff] }
0x10f9   :  { %v3261_v46 = vpop.f32.mrf.mxu2 }
0x10fa   :  { %v3262_v15 = vadd.f32 %v4384_v9, %v3261_v46  ;;  %v3360_v46 = vmul.f32 %v3348_v19, %v3348_v19 }
0x10fc   :  { %v3281_v53 = vmax.f32 %v3262_v15, 0.0  ;;  %v4463_v15 = vmov 1.0  }
0x10fe   :  { %v3289_v6 = vadd.f32 %v3281_v53, %v3208_v28 }
0x1100   :  { %v3298_v57 = vsel %vm90_vm2, %v3289_v6, 0.0 }
0x1101   :  { %v3264_v51 = vpop.f32.mrf.mxu2 }
0x1102   :  { %v3265_v7 = vadd.f32 %v4384_v9, %v3264_v51 }
0x1104   :  { %v3282_v39 = vmax.f32 %v3265_v7, 0.0 }
0x1106   :  { %v3290_v11 = vadd.f32 %v3282_v39, %v3209_v47  ;;  %v3299_v47 = vadd.f32 %v3298_v57, %v3297_v17  ;;  %v3531_v17 = vld [vmem:[%s6452_s3 + $0x30] sm:$0xff] }
0x1108   :  { %v3300_v3 = vsel %vm90_vm2, %v3290_v11, 0.0 }
0x1109   :  { %v3267_v14 = vpop.f32.mrf.mxu2  ;;  %v3301_v23 = vadd.f32 %v3300_v3, %v3299_v47  ;;  %v3529_v3 = vld [vmem:[%s6452_s3 + $0x10] sm:$0xff] }
0x110a   :  { %v3268_v36 = vadd.f32 %v4384_v9, %v3267_v14  ;;  %v3347_v14 = vld [vmem:[%s6451_s2] sm:$0xff] }
0x110c   :  { %v3283_v13 = vmax.f32 %v3268_v36, 0.0 }
0x110e   :  { %v3291_v25 = vadd.f32 %v3283_v13, %v3210_v8  ;;  %v3351_v8 = vld [vmem:[%s6451_s2 + $0x20] sm:$0xff]  ;;  %s3690_s2 = sshll.u32 %s6454_s5, 4  ;;  %s4466_s5 = smov [#allocation2]   ;;  %s3691_s2 = int_to_ptr.hbm [resolvable:$true] %s3690_s2 }
0x110f   :  { %v3363_v2 = vmul.f32 %v3351_v8, %v3351_v8  ;;  %4038 = vmatpush.xpose.msk.msra.mxu1 %vm90_vm2, %v3351_v8 }
0x1110   :  { %v3302_v21 = vsel %vm90_vm2, %v3291_v25, 0.0 }
0x1111   :  { %v3270_v40 = vpop.f32.mrf.mxu2  ;;  %v3303_v35 = vadd.f32 %v3302_v21, %v3301_v23  ;;  %4029 = vmatpush.xpose.msk.msra.mxu0 %vm90_vm2, %v3363_v2  ;;  %v6464_v23 = vmov 0.0   ;;  %v3543_v2 = vld [vmem:[%s6452_s3 + $0xf0] sm:$0xff] }
0x1112   :  { %v3271_v24 = vadd.f32 %v4384_v9, %v3270_v40 }
0x1113   :  { %4039 = vmatpush.xpose.msk.msra.mxu1 %vm90_vm2, %v3350_v26 }
0x1114   :  { %v3284_v60 = vmax.f32 %v3271_v24, 0.0 }
0x1115   :  { %4030 = vmatpush.xpose.msk.msra.mxu0 %vm90_vm2, %v3362_v12 }
0x1116   :  { %v3292_v29 = vadd.f32 %v3284_v60, %v3211_v56 }
0x1117   :  { %4040 = vmatpush.xpose.msk.msra.mxu1 %vm90_vm2, %v3349_v18 }
0x1118   :  { %v3304_v55 = vsel %vm90_vm2, %v3292_v29, 0.0 }
0x1119   :  { %v3305_v30 = vadd.f32 %v3304_v55, %v3303_v35  ;;  %4031 = vmatpush.xpose.msk.msra.mxu0 %vm90_vm2, %v3361_v31  ;;  %v3548_v55 = vld [vmem:[%s6452_s3 + $0x140] sm:$0xff]  ;;  %v3537_v31 = vld [vmem:[%s6452_s3 + $0x90] sm:$0xff] }
0x111a   :  { %v3273_v61 = vpop.f32.mrf.mxu2  ;;  %3594 = vmatpush.msra.mxu3 %v3548_v55  ;;  %v3546_v35 = vld [vmem:[%s6452_s3 + $0x120] sm:$0xff] }
0x111b   :  { %v3274_v59 = vadd.f32 %v4384_v9, %v3273_v61  ;;  %4041 = vmatpush.xpose.msk.msra.mxu1 %vm90_vm2, %v3348_v19 }
0x111d   :  { %v3285_v28 = vmax.f32 %v3274_v59, 0.0  ;;  %4032 = vmatpush.xpose.msk.msra.mxu0 %vm90_vm2, %v3360_v46  ;;  %v3533_v46 = vld [vmem:[%s6452_s3 + $0x50] sm:$0xff] }
0x111f   :  { %v3293_v43 = vadd.f32 %v3285_v28, %v3212_v52  ;;  %4042 = vmatpush.xpose.msk.msra.mxu1 %vm90_vm2, %v3347_v14 }
0x1121   :  { %v3306_v10 = vsel %vm90_vm2, %v3293_v43, 0.0 }
0x1122   :  { %v3307_v62 = vadd.f32 %v3306_v10, %v3305_v30  ;;  %v3545_v10 = vld [vmem:[%s6452_s3 + $0x110] sm:$0xff]  ;;  %v3542_v30 = vld [vmem:[%s6452_s3 + $0xe0] sm:$0xff] }
0x116c   :  { %v3276_v20 = vpop.f32.mrf.mxu2 }
0x116d   :  { %v3277_v50 = vadd.f32 %v4384_v9, %v3276_v20  ;;  %v3359_v9 = vmul.f32 %v3347_v14, %v3347_v14 }
0x116f   :  { %v3286_v56 = vmax.f32 %v3277_v50, 0.0  ;;  %4033 = vmatpush.xpose.msk.msra.mxu0 %vm90_vm2, %v3359_v9  ;;  %v3547_v50 = vld [vmem:[%s6452_s3 + $0x130] sm:$0xff]  ;;  %v3532_v9 = vld [vmem:[%s6452_s3 + $0x40] ss:$0 sm:$0xff] }
0x1170   :  { %3595 = vmatpush.msra.mxu3 %v3547_v50 }
0x1171   :  { %v3294_v58 = vadd.f32 %v3286_v56, %v3213_v38  ;;  %v3544_v56 = vld [vmem:[%s6452_s3 + $0x100] sm:$0xff] }
0x1172   :  { %4034 = vmatmul.msk.f32.vlgmr.msra.gmra.mxu0 %vm90_vm2, %v4463_v15  ;;  %3596 = vmatpush.msra.mxu3 %v3546_v35 }
0x1173   :  { %v3308_v52 = vsel %vm90_vm2, %v3294_v58, 0.0  ;;  %3500 = vmatpush.msrb.mxu0 %v6241_v1  ;;  %v3540_v58 = vld [vmem:[%s6452_s3 + $0xc0] sm:$0xff] }
0x1174   :  { %v3309_v33 = vadd.f32 %v3308_v52, %v3307_v62  ;;  %3597 = vmatpush.msra.mxu3 %v3545_v10  ;;  %v3539_v62 = vld [vmem:[%s6452_s3 + $0xb0] sm:$0xff]  ;;  %v3538_v52 = vld [vmem:[%s6452_s3 + $0xa0] sm:$0xff] }
0x1175   :  { %3501 = vmatpush.msrb.mxu0 %v6246_v32 }
0x1176   :  { %v3310_v4 = vrot.slane %v3309_v33, 4  ;;  %3598 = vmatpush.msra.mxu3 %v3544_v56 }
0x1177   :  { %3502 = vmatpush.msrb.mxu0 %v3352_v54  ;;  %v3530_v54 = vld [vmem:[%s6452_s3 + $0x20] sm:$0xff] }
0x1178   :  { %v3311_v38 = vadd.f32 %v3310_v4, %v3309_v33  ;;  %3599 = vmatpush.msra.mxu3 %v3543_v2 }
0x1179   :  { %3503 = vmatpush.msrb.mxu0 %v3351_v8  ;;  %v3528_v8 = vld [vmem:[%s6452_s3] sm:$0xff] }
0x117a   :  { %v3312_v22 = vrot.slane %v3311_v38, 2  ;;  %3600 = vmatpush.msra.mxu3 %v3542_v30 }
0x117b   :  { %3504 = vmatpush.msrb.mxu0 %v3350_v26  ;;  %v3541_v26 = vld [vmem:[%s6452_s3 + $0xd0] sm:$0xff] }
0x117c   :  { %v3313_v51 = vadd.f32 %v3312_v22, %v3311_v38  ;;  %3601 = vmatpush.msra.mxu3 %v3541_v26  ;;  %v3536_v38 = vld [vmem:[%s6452_s3 + $0x80] sm:$0xff] }
0x117d   :  { %3505 = vmatpush.msrb.mxu0 %v3349_v18  ;;  %v3534_v22 = vld [vmem:[%s6452_s3 + $0x60] sm:$0xff] }
0x117e   :  { %v3314_v40 = vrot.slane %v3313_v51, 1  ;;  %3602 = vmatpush.msra.mxu3 %v3540_v58 }
0x117f   :  { %3506 = vmatpush.msrb.mxu0 %v3348_v19  ;;  %v3535_v19 = vld [vmem:[%s6452_s3 + $0x70] sm:$0xff] }
0x1180   :  { %v3315_v34 = vadd.f32 %v3314_v40, %v3313_v51  ;;  %3603 = vmatpush.msra.mxu3 %v3539_v62 }
0x1181   :  { %3507 = vmatpush.msrb.mxu0 %v3347_v14 }
0x1182   :  { %v3316_v5 = vmul.f32 %v3315_v34, %v5522_v27  ;;  %v58_v27 = vld [vmem:[%s6450_s1 + $0x120] sm:$0x1]  ;;  %3604 = vmatpush.msra.mxu3 %v3538_v52  ;;  %s3688_s1 = sshll.u32 %s4464_s29, 4  ;;  %s3689_s1 = int_to_ptr.vmem [resolvable:$true] %s3688_s1 }
0x1183   :  { %v1742_v44 = vadd.f32 %v5588_v37, %v58_v27  ;;  %3583 = vmatpush.msra.mxu0 %v3531_v17 }
0x1184   :  { %4025 = vmatmul.msk.f32.vlgmr.msrb.gmra.mxu1 %vm90_vm2, %v3316_v5  ;;  %3605 = vmatpush.msra.mxu3 %v3537_v31 }
0x1185   :  { %3584 = vmatpush.msra.mxu0 %v3530_v54 }
0x1186   :  { %3606 = vmatpush.msra.mxu3 %v3536_v38 }
0x1187   :  { %3585 = vmatpush.msra.mxu0 %v3529_v3  ;;  %v4046_v3 = vld [vmem:[%s6452_s3 + $0x1e0] ss:$8 sm:$0x3] }
0x1188   :  { %3607 = vmatpush.msra.mxu3 %v3535_v19 }
0x1189   :  { %3586 = vmatpush.msra.mxu0 %v3528_v8 }
0x118a   :  { %3608 = vmatpush.msra.mxu3 %v3534_v22 }
0x118c   :  { %3609 = vmatpush.msra.mxu3 %v3533_v46 }
0x11ef   :  { %v3411_v39 = vpop.f32.mrf.mxu0 }
0x11f0   :  { %v3414_v24 = vperm.slane %v3411_v39, 0  ;;  %v3563_v39 = vld [vmem:[%s6452_s3 + $0x1c8] sm:$0xff] }
0x1201   :  { %v3337_v63 = vpop.f32.mrf.mxu1 }
0x1202   :  { %v3338_v7 = vadd.f32 %v3337_v63, %v58_v27 }
0x1204   :  { %v3341_v53 = vrot.slane %v3338_v7, 7 }
0x1206   :  { %v6305_v36 = vsel %vm3343_vm0, %v1742_v44, %v3341_v53 }
0x1207   :  { %4043 = vmatmul.msk.f32.vlgmr.msra.gmra.mxu1 %vm90_vm2, %v6305_v36  ;;  %v3355_v61 = vmul.f32 %v6305_v36, %v6305_v36  ;;  %3346 = vst.msk [vmem:[#allocation4] sm:$0x3] %vm3345_vm1, %v6305_v36 }
0x1208   :  { %3693 = dma.vmem_to_hbm [thread:$0]  %s3689_s1, 32, %s3691_s2, [#allocation5]  }
0x1209   :  { %v3356_v0 = vsel %vm3345_vm1, %v3355_v61, 0.0  ;;  %v3565_v61 = vld [vmem:[%s6452_s3 + $0x1d8] sm:$0xff] }
0x120a   :  { %3357 = vadd.xlane.f32.xlu0 %v3356_v0  ;;  %v3562_v0 = vld [vmem:[%s6452_s3 + $0x1c0] sm:$0xff]  ;;  %3653 = vmatpush.msrb.mxu1 %v3565_v61 }
0x120c   :  { %3654 = vmatpush.msrb.mxu1 %v3563_v39 }
0x127d   :  { %v3358_v16 = vpop.xlane.xlu0 %3357 }
0x127e   :  { %v3415_v6 = vadd.f32 %v3414_v24, %v3358_v16  ;;  %v3560_v24 = vld [vmem:[%s6452_s3 + $0x1b0] sm:$0xff]  ;;  %v3561_v16 = vld [vmem:[%s6452_s3 + $0x1b8] sm:$0xff] }
0x127f   :  { %3655 = vmatpush.msrb.mxu1 %v3561_v16 }
0x1284   :  { %v3460_v37 = vpop.f32.mrf.mxu1 }
0x1285   :  { %v3463_v13 = vmul.f32 2.0, %v3460_v37  ;;  %v3558_v37 = vld [vmem:[%s6452_s3 + $0x1a0] sm:$0xff] }
0x1287   :  { %v3464_v59 = vsub.f32 %v3415_v6, %v3463_v13  ;;  %v3559_v6 = vld [vmem:[%s6452_s3 + $0x1a8] sm:$0xff]  ;;  %v3556_v13 = vld [vmem:[%s6452_s3 + $0x190] sm:$0xff] }
0x1288   :  { %3656 = vmatpush.msrb.mxu1 %v3559_v6 }
0x1289   :  { %v3466_v1 = vsel %vm3465_vm3, %v3464_v59, inf }
0x128a   :  { %3467 = vmin.xlane.f32.xlu1 %v3466_v1 }
0x12fd   :  { %v3468_v32 = vpop.xlane.xlu1 %3467 }
0x12fe   :  { %vm3469_vm4 = vcmp.eq.f32.partialorder %v3464_v59, %v3468_v32  ;;  %v3557_v59 = vld [vmem:[%s6452_s3 + $0x198] sm:$0xff] }
0x12ff   :  { %v3470_v11 = vsel %vm3469_vm4, %v6463_v48, 64  ;;  %3657 = vmatpush.msrb.mxu1 %v3557_v59 }
0x1300   :  { %v3471_v60 = vsel %vm3465_vm3, %v3470_v11, 2147483647  ;;  %v3555_v11 = vld [vmem:[%s6452_s3 + $0x188] sm:$0xff] }
0x1301   :  { %v3473_v49 = vshra.s32 %v3471_v60, 16  ;;  %v3472_v57 = vand.u32 65535, %v3471_v60  ;;  %3658 = vmatpush.msrb.mxu1 %v3555_v11  ;;  %v3552_v60 = vld [vmem:[%s6452_s3 + $0x170] sm:$0xff] }
0x1303   :  { %v3475_v45 = vcvt.s32.f32 %v3473_v49  ;;  %v3474_v28 = vcvt.s32.f32 %v3472_v57  ;;  %v3553_v49 = vld [vmem:[%s6452_s3 + $0x178] sm:$0xff]  ;;  %v3551_v57 = vld [vmem:[%s6452_s3 + $0x168] sm:$0xff] }
0x1304   :  { %3659 = vmatpush.msrb.mxu1 %v3553_v49 }
0x1305   :  { %3476 = vmin.xlane.f32.xlu2 %v3475_v45 }
0x1306   :  { %3660 = vmatpush.msrb.mxu1 %v3551_v57 }
0x1378   :  { %v3477_v25 = vpop.xlane.xlu2 %3476 }
0x1379   :  { %vm3478_vm5 = vcmp.eq.f32.partialorder %v3475_v45, %v3477_v25  ;;  %v3483_v29 = vcvt.f32.s32 %v3477_v25  ;;  %v3550_v45 = vld [vmem:[%s6452_s3 + $0x160] sm:$0xff]  ;;  %v3549_v25 = vld [vmem:[%s6452_s3 + $0x150] ss:$0 sm:$0xff] }
0x137a   :  { %v3479_v41 = vsel %vm3478_vm5, %v3474_v28, inf }
0x137b   :  { %3480 = vmin.xlane.f32.xlu0 %v3479_v41  ;;  %v3484_v21 = vshll.u32 %v3483_v29, 16  ;;  %v3619_v29 = vperm.slane %v4046_v3, 1 }
0x13ee   :  { %v3481_v47 = vpop.xlane.xlu0 %3480 }
0x13ef   :  { %v3482_v43 = vcvt.f32.s32 %v3481_v47  ;;  %v3618_v47 = vperm.slane %v4046_v3, 0 }
0x13f1   :  { %v3485_v42 = vadd.s32 %v3484_v21, %v3482_v43 }
0x13f3   :  { %vm3486_vm6 = vcmp.eq.s32.totalorder %v6463_v48, %v3485_v42  ;;  %v3554_v48 = vld [vmem:[%s6452_s3 + $0x180] sm:$0xff] }
0x13f4   :  { %v4044_v20 = vsel %vm3486_vm6, 1.0, %v6464_v23 }
0x13f5   :  { %4045 = vmatmul.msk.f32.vlgmr.msrb.gmra.mxu0 %vm279_vm13, %v4044_v20 }
0x1472   :  { %v3509_v12 = vpop.f32.mrf.mxu0 }
0x1473   :  { %v3512_v33 = vsub.f32 %v3509_v12, %v6305_v36  ;;  %4047 = vmatmul.msk.f32.vlgmr.msra.gmra.mxu0 %vm90_vm2, %v3509_v12  ;;  %v3564_v36 = vld [vmem:[%s6452_s3 + $0x1d0] sm:$0xff] }
0x1474   :  { %3633 = vmatpush.msrb.mxu0 %v3564_v36 }
0x1475   :  { %v3513_v18 = vmul.f32 %v3512_v33, %v3512_v33 }
0x1476   :  { %3634 = vmatpush.msrb.mxu0 %v3562_v0 }
0x1477   :  { %v3514_v4 = vsel %vm3345_vm1, %v3513_v18, 0.0 }
0x1478   :  { %3515 = vadd.xlane.f32.xlu1 %v3514_v4  ;;  %3635 = vmatpush.msrb.mxu0 %v3560_v24 }
0x147a   :  { %3636 = vmatpush.msrb.mxu0 %v3558_v37 }
0x147c   :  { %3637 = vmatpush.msrb.mxu0 %v3556_v13 }
0x147e   :  { %3638 = vmatpush.msrb.mxu0 %v3554_v48 }
0x1480   :  { %3639 = vmatpush.msrb.mxu0 %v3552_v60 }
0x1482   :  { %3640 = vmatpush.msrb.mxu0 %v3550_v45 }
0x14eb   :  { %v3516_v51 = vpop.xlane.xlu1 %3515 }
0x14ec   :  { %v3517_v14 = vrot.slane %v3516_v51, 4 }
0x14ee   :  { %v3518_v40 = vadd.f32 %v3517_v14, %v3516_v51 }
0x14f0   :  { %v3519_v34 = vrot.slane %v3518_v40, 2  ;;  %v3588_v5 = vpop.f32.mrf.mxu0 }
0x14f1   :  { %v3589_v15 = vadd.f32 %v3588_v5, %v3532_v9 }
0x14f2   :  { %v3520_v27 = vadd.f32 %v3519_v34, %v3518_v40 }
0x14f3   :  { %vm3591_vm2 = vcmp.gt.f32.partialorder %v3589_v15, 0.0  ;;  %v3592_v63 = vmul.f32 0.001, %v3589_v15 }
0x14f4   :  { %v3521_v7 = vrot.slane %v3520_v27, 1 }
0x14f5   :  { %v3593_v44 = vsel %vm3591_vm2, %v3589_v15, %v3592_v63 }
0x14f6   :  { %3610 = vmatmul.f32.vlgmr.msra.gmra.mxu3 %v3593_v44  ;;  %v3522_v53 = vadd.f32 %v3521_v7, %v3520_v27 }
0x14f8   :  { %4050 = vpush %v3522_v53 }
0x1529   :  { %s4051_s13 = spop %4050 }
0x152a   :  { %v3524_v1 = vstv %s4051_s13  ;;  %s3677_s13 = sshll.u32 %s4466_s5, 4  ;;  %s3678_s13 = int_to_ptr.vmem [resolvable:$true] %s3677_s13 }
0x152b   :  { %v3525_v32 = vmul.f32 0.15625, %v3524_v1 }
0x152d   :  { %3527 = vst.msk [vmem:[#allocation6] sm:$0x1] %vm3526_vm7, %v3525_v32 }
0x152e   :  { %3704 = dma.vmem_to_hbm [thread:$0]  %s3700_s7, 16, %s3702_s10, [#allocation5]  }
0x1579   :  { %v3611_v28 = vpop.f32.mrf.mxu3 }
0x157a   :  { %v3612_v41 = vadd.f32 %v3611_v28, %v3549_v25 }
0x157c   :  { %vm3614_vm8 = vcmp.gt.f32.partialorder %v3612_v41, 0.0  ;;  %v3615_v17 = vmul.f32 0.001, %v3612_v41 }
0x157e   :  { %v3616_v54 = vsel %vm3614_vm8, %v3612_v41, %v3615_v17 }
0x157f   :  { %4048 = vmatmul.msk.f32.vlgmr.msrb.gmra.mxu0 %vm279_vm13, %v3616_v54  ;;  %4049 = vmatmul.msk.f32.vlgmr.msrb.gmra.mxu1 %vm279_vm13, %v3616_v54 }
0x15fc   :  { %v3642_v21 = vpop.f32.mrf.mxu0  ;;  %v3662_v43 = vpop.f32.mrf.mxu1 }
0x15fd   :  { %v3663_v42 = vadd.f32 %v3662_v43, %v3619_v29  ;;  %v3643_v23 = vadd.f32 %v3642_v21, %v3618_v47 }
0x15ff   :  { %v3667_v20 = vrot.slane %v3663_v42, 6 }
0x1601   :  { %v3669_v8 = vsel %vm3668_vm9, %v3643_v23, %v3667_v20 }
0x1602   :  { %3671 = vst [vmem:[#allocation2] sm:$0xf] %v3669_v8 }
0x1603   :  { %3682 = dma.vmem_to_hbm [thread:$0]  %s3678_s13, 64, %s3680_s16, [#allocation3]  }
0x1604   :  { %4457 = dma.done.wait [#allocation3], 64  }
0x1605   :  { %4458 = vsyncadd [#allocation3], 4294967232 }
0x1606   :  { %4459 = dma.done.wait [#allocation5], 48  }
0x1607   :  { %4460 = vsyncadd [#allocation5], 4294967248 }
0x1608   :  { %3717 = vsyncpa [#allocation3], 1 }
0x1609   :  { %3718 = vsyncpa [#allocation5], 1 }

</bundles_post_ra>
